<compile_context>
chip_gen: v7x
topology: tpu7x:2x2x1
jax: 0.10.0
libtpu: 0.0.40
codegen_flags: <defaults>
</compile_context>

<pallas_src>
import math
import numpy as np
import jax
import jax.numpy as jnp
from jax.experimental import pallas as pl
from jax.experimental.pallas import tpu as pltpu

THETA = -0.1436
MU = 0.1686
SIGMA = 0.1213
T_BLK = 8  # time steps per grid iteration


def _make_vg_kernel(t_blk):
    def kernel(rec_ref, coef_ref, disc_ref, kcall_ref, kput_ref, z_ref, g_ref,
               ss_ref, ss_otm_ref, ss1_ref, ss1_itm_ref, x_scr):
        b = pl.program_id(0)

        @pl.when(b == 0)
        def _init():
            x_scr[...] = jnp.zeros_like(x_scr)

        kc = kcall_ref[...]            # (K, 1)
        kp = kput_ref[...]             # (K, 1)

        x = x_scr[...]                 # (1, MC) VG log-increment state

        for l in range(t_blk):         # static inner time loop over the block
            r1 = z_ref[pl.ds(l, 1), :]     # (1, MC)
            r2 = g_ref[pl.ds(l, 1), :]     # (1, MC)
            # X_new = X_old + theta*gamma + sigma*sqrt(gamma)*z  (runs every step)
            x = x + THETA * r2 + SIGMA * jnp.sqrt(r2) * r1

            t = b * t_blk + l              # global 0-based step (time index t+1)
            row = rec_ref[t]               # output row, or -1 if not recorded

            x_rec = x

            @pl.when(row >= 0)
            def _record(x_rec=x_rec, t=t, row=row):
                # S = S0 * exp((rate+w)*i*h + X) = coef[t] * exp(X)
                s = coef_ref[t] * jnp.exp(x_rec)                   # (1, MC)
                disc = disc_ref[t]
                mean_s = jnp.mean(s, axis=-1, keepdims=True)       # (1, 1)

                call_pay = jnp.maximum(s - kc, 0.0)                # (K, MC)
                put_pay = jnp.maximum(s - kp, 0.0)                 # (K, MC)
                m_call = jnp.mean(call_pay, axis=-1, keepdims=True)  # (K, 1)
                m_put = jnp.mean(put_pay, axis=-1, keepdims=True)    # (K, 1)

                ss_ref[row] = m_call * disc                        # E[(S-Kc)+]
                ss1_ref[row] = m_put * disc                        # E[(S-Kp)+]
                # parity: E[(K-S)+] = E[(S-K)+] - E[S] + K
                ss_otm_ref[row] = (m_put - mean_s + kp) * disc     # E[(Kp-S)+]
                ss1_itm_ref[row] = (m_call - mean_s + kc) * disc   # E[(Kc-S)+]

        x_scr[...] = x

    return kernel


def vg_forward(timegrid, strikes_call, strikes_put, S0, rate, indices, z, gamma,
               MC_samples, t_blk=T_BLK):
    timegrid = np.asarray(timegrid, dtype=np.float64)
    n_steps = len(timegrid) - 1
    h = float(timegrid[1] - timegrid[0])
    K = len(strikes_call)
    MC = int(MC_samples)
    S0 = float(S0)
    rate = float(rate)

    z = jnp.asarray(z, jnp.float32)
    gamma = jnp.asarray(gamma, jnp.float32)
    # Prefer time-major (n_steps, MC) inputs (no HBM transpose); accept the
    # module's (MC, n_steps) layout as a fallback.
    if z.shape == (MC, n_steps) and n_steps != MC:
        z = z.T
    if gamma.shape == (MC, n_steps) and n_steps != MC:
        gamma = gamma.T
    assert z.shape == (n_steps, MC) and gamma.shape == (n_steps, MC)

    n_blocks = -(-n_steps // t_blk)
    n_pad = n_blocks * t_blk
    if n_pad > n_steps:
        pad = ((0, n_pad - n_steps), (0, 0))
        z = jnp.pad(z, pad)          # zero increments -> X unchanged on padded steps
        gamma = jnp.pad(gamma, pad)

    # recorded steps (ascending, deduplicated) -> output row index, else -1
    rec_list = sorted({int(i) for i in indices if 1 <= int(i) <= n_steps})
    n_rec = len(rec_list)
    rec_row = np.full((n_pad,), -1, dtype=np.int32)
    for r, i in enumerate(rec_list):
        rec_row[i - 1] = r

    # per-step drift coefficient and discount, precomputed on host (SMEM tables)
    w = (1.0 / MU) * math.log(1.0 - THETA * MU - SIGMA * SIGMA * MU / 2.0)
    steps = np.arange(1, n_pad + 1, dtype=np.float64)
    coef = (S0 * np.exp((rate + w) * steps * h)).astype(np.float32)
    disc = np.exp(-rate * steps / n_steps).astype(np.float32)

    kcall = jnp.asarray(strikes_call, jnp.float32).reshape(K, 1)
    kput = jnp.asarray(strikes_put, jnp.float32).reshape(K, 1)

    kernel = _make_vg_kernel(t_blk)
    out_shape = tuple(jax.ShapeDtypeStruct((n_rec, K, 1), jnp.float32)
                      for _ in range(4))
    smem_spec = pl.BlockSpec(memory_space=pltpu.MemorySpace.SMEM)

    outs = pl.pallas_call(
        kernel,
        out_shape=out_shape,
        grid=(n_blocks,),
        in_specs=[
            smem_spec,                                     # rec_row  (int32[n_pad])
            smem_spec,                                     # coef     (f32[n_pad])
            smem_spec,                                     # disc     (f32[n_pad])
            pl.BlockSpec((K, 1), lambda b: (0, 0)),        # strikes_call
            pl.BlockSpec((K, 1), lambda b: (0, 0)),        # strikes_put
            pl.BlockSpec((t_blk, MC), lambda b: (b, 0)),   # z block
            pl.BlockSpec((t_blk, MC), lambda b: (b, 0)),   # gamma block
        ],
        # outputs stay VMEM-resident for the whole grid; one writeback at the end
        out_specs=[pl.BlockSpec((n_rec, K, 1), lambda b: (0, 0, 0))
                   for _ in range(4)],
        scratch_shapes=[pltpu.VMEM((1, MC), jnp.float32)],  # X carry
        compiler_params=pltpu.CompilerParams(
            dimension_semantics=("arbitrary",)),            # sequential in time
    )(jnp.asarray(rec_row), jnp.asarray(coef), jnp.asarray(disc),
      kcall, kput, z, gamma)

    # [calls; put-OTM; puts; call-ITM], each (n_rec, K)
    return jnp.concatenate([o[:, :, 0] for o in outs], axis=0)


def vg_reference(timegrid, strikes_call, strikes_put, S0, rate, indices, z, gamma):
    """Pure-numpy reference matching the PyTorch forward semantics (z: (MC, n_steps))."""
    z = np.asarray(z, np.float64)
    gamma = np.asarray(gamma, np.float64)
    h = float(timegrid[1] - timegrid[0])
    w = (1.0 / MU) * math.log(1.0 - THETA * MU - SIGMA * SIGMA * MU / 2.0)
    n_steps = len(timegrid) - 1
    MC = z.shape[0]
    X = np.zeros(MC)
    rows = [[], [], [], []]
    for i in range(1, len(timegrid)):
        r1 = z[:, i - 1]
        r2 = gamma[:, i - 1]
        X = X + THETA * r2 + SIGMA * np.sqrt(r2) * r1
        S = S0 * np.exp((rate + w) * i * h + X)
        if int(i) in indices:
            disc = math.exp(-rate * i / n_steps)
            rows[0].append([np.mean(np.maximum(S - k, 0.0)) * disc for k in strikes_call])
            rows[1].append([np.mean(np.maximum(k - S, 0.0)) * disc for k in strikes_put])
            rows[2].append([np.mean(np.maximum(S - k, 0.0)) * disc for k in strikes_put])
            rows[3].append([np.mean(np.maximum(k - S, 0.0)) * disc for k in strikes_call])
    return np.concatenate([np.asarray(r) for r in rows], axis=0).astype(np.float32)


if __name__ == "__main__":
    MC_samples = 1024
    n_steps = 8
    timegrid = np.linspace(0.0, 1.0, n_steps + 1)
    strikes_call = [0.9, 1.0, 1.1, 1.2]
    strikes_put = [1.1, 1.0, 0.9, 0.8]
    indices = [2, 4, 8]
    S0 = 1.0
    rate = 0.025

    key = jax.random.PRNGKey(0)
    kz, kg = jax.random.split(key)
    h = float(timegrid[1] - timegrid[0])
    # time-major samples (n_steps, MC): no host transpose needed before the kernel
    z_tm = jax.random.normal(kz, (n_steps, MC_samples), dtype=jnp.float32)
    gamma_tm = jax.random.gamma(kg, h / MU, (n_steps, MC_samples),
                                dtype=jnp.float32) * MU  # positive VG time increments

    out = vg_forward(timegrid, strikes_call, strikes_put, S0, rate, indices,
                     z_tm, gamma_tm, MC_samples)
    out = jax.block_until_ready(out)

    ref = vg_reference(timegrid, strikes_call, strikes_put, S0, rate, indices,
                       np.asarray(z_tm).T, np.asarray(gamma_tm).T)
    np.testing.assert_allclose(np.asarray(out), ref, rtol=1e-3, atol=1e-3)
    print("KERNEL_OK")
</pallas_src>

<mosaic_0001>
module attributes {stable_mosaic.version = 11 : i64} {
  func.func @kernel(%arg0: i32, %arg1: memref<8xi32, #tpu.memory_space<smem>>, %arg2: memref<8xf32, #tpu.memory_space<smem>>, %arg3: memref<8xf32, #tpu.memory_space<smem>>, %arg4: memref<4x1xf32, #tpu.memory_space<vmem>>, %arg5: memref<4x1xf32, #tpu.memory_space<vmem>>, %arg6: memref<8x1024xf32, #tpu.memory_space<vmem>>, %arg7: memref<8x1024xf32, #tpu.memory_space<vmem>>, %arg8: memref<3x4x1xf32, #tpu.memory_space<vmem>>, %arg9: memref<3x4x1xf32, #tpu.memory_space<vmem>>, %arg10: memref<3x4x1xf32, #tpu.memory_space<vmem>>, %arg11: memref<3x4x1xf32, #tpu.memory_space<vmem>>, %arg12: memref<1x1024xf32, #tpu.memory_space<vmem>>) attributes {dimension_semantics = [#tpu.dimension_semantics<arbitrary>], iteration_bounds = array<i64: 1>, scalar_prefetch = 0 : i64, scratch_operands = 1 : i64, tpu.core_type = #tpu.core_type<tc>, window_params = [{transform_indices = @transform_0, window_bounds = array<i64: 8>}, {transform_indices = @transform_1, window_bounds = array<i64: 8>}, {transform_indices = @transform_2, window_bounds = array<i64: 8>}, {pipeline_mode = #tpu.pipeline_mode<synchronous>, transform_indices = @transform_3, window_bounds = array<i64: 4, 1>}, {pipeline_mode = #tpu.pipeline_mode<synchronous>, transform_indices = @transform_4, window_bounds = array<i64: 4, 1>}, {transform_indices = @transform_5, window_bounds = array<i64: 8, 1024>}, {transform_indices = @transform_6, window_bounds = array<i64: 8, 1024>}, {pipeline_mode = #tpu.pipeline_mode<synchronous>, transform_indices = @transform_7, window_bounds = array<i64: 3, 4, 1>}, {pipeline_mode = #tpu.pipeline_mode<synchronous>, transform_indices = @transform_8, window_bounds = array<i64: 3, 4, 1>}, {pipeline_mode = #tpu.pipeline_mode<synchronous>, transform_indices = @transform_9, window_bounds = array<i64: 3, 4, 1>}, {pipeline_mode = #tpu.pipeline_mode<synchronous>, transform_indices = @transform_10, window_bounds = array<i64: 3, 4, 1>}]} {
    %c0_i32 = arith.constant 0 : i32
    %0 = arith.cmpi eq, %arg0, %c0_i32 : i32
    %1 = arith.extui %0 : i1 to i32
    %c0_i32_0 = arith.constant 0 : i32
    %2 = arith.cmpi ne, %1, %c0_i32_0 : i32
    scf.if %2 {
      %cst_72 = arith.constant 0.000000e+00 : f32
      %143 = vector.broadcast %cst_72 : f32 to vector<1x1024xf32>
      %c0_73 = arith.constant 0 : index
      %c0_74 = arith.constant 0 : index
      %144 = vector.load %arg12[%c0_73, %c0_74] : memref<1x1024xf32, #tpu.memory_space<vmem>>, vector<1x1024xf32>
      tpu.vector_store %arg12[%c0_73, %c0_74], %143 {strides = array<i32>} : memref<1x1024xf32, #tpu.memory_space<vmem>>, vector<1x1024xf32>,
    } else {
    }
    %c0 = arith.constant 0 : index
    %c0_1 = arith.constant 0 : index
    %3 = vector.load %arg4[%c0, %c0_1] : memref<4x1xf32, #tpu.memory_space<vmem>>, vector<4x1xf32>
    %c0_2 = arith.constant 0 : index
    %c0_3 = arith.constant 0 : index
    %4 = vector.load %arg5[%c0_2, %c0_3] : memref<4x1xf32, #tpu.memory_space<vmem>>, vector<4x1xf32>
    %c0_4 = arith.constant 0 : index
    %c0_5 = arith.constant 0 : index
    %5 = vector.load %arg12[%c0_4, %c0_5] : memref<1x1024xf32, #tpu.memory_space<vmem>>, vector<1x1024xf32>
    %c0_6 = arith.constant 0 : index
    %c0_7 = arith.constant 0 : index
    %6 = vector.load %arg6[%c0_6, %c0_7] : memref<8x1024xf32, #tpu.memory_space<vmem>>, vector<1x1024xf32>
    %c0_8 = arith.constant 0 : index
    %c0_9 = arith.constant 0 : index
    %7 = vector.load %arg7[%c0_8, %c0_9] : memref<8x1024xf32, #tpu.memory_space<vmem>>, vector<1x1024xf32>
    %cst = arith.constant -1.436000e-01 : f32
    %8 = vector.broadcast %cst : f32 to vector<1x1024xf32>
    %9 = arith.mulf %8, %7 : vector<1x1024xf32>
    %10 = arith.addf %5, %9 : vector<1x1024xf32>
    %11 = math.sqrt %7 : vector<1x1024xf32>
    %cst_10 = arith.constant 1.213000e-01 : f32
    %12 = vector.broadcast %cst_10 : f32 to vector<1x1024xf32>
    %13 = arith.mulf %12, %11 : vector<1x1024xf32>
    %14 = arith.mulf %13, %6 : vector<1x1024xf32>
    %15 = arith.addf %10, %14 : vector<1x1024xf32>
    %c8_i32 = arith.constant 8 : i32
    %16 = arith.muli %arg0, %c8_i32 : i32
    %c0_i32_11 = arith.constant 0 : i32
    %17 = arith.addi %16, %c0_i32_11 : i32
    %18 = arith.index_cast %17 : i32 to index
    %19 = memref.load %arg1[%18] : memref<8xi32, #tpu.memory_space<smem>>
    %c0_i32_12 = arith.constant 0 : i32
    %20 = arith.cmpi sge, %19, %c0_i32_12 : i32
    %21 = arith.extui %20 : i1 to i32
    %c0_i32_13 = arith.constant 0 : i32
    %22 = arith.cmpi ne, %21, %c0_i32_13 : i32
    scf.if %22 {
      %143 = arith.index_cast %17 : i32 to index
      %144 = memref.load %arg2[%143] : memref<8xf32, #tpu.memory_space<smem>>
      %145 = math.exp %15 : vector<1x1024xf32>
      %146 = vector.broadcast %144 : f32 to vector<1x1024xf32>
      %147 = arith.mulf %146, %145 : vector<1x1024xf32>
      %148 = arith.index_cast %17 : i32 to index
      %149 = memref.load %arg3[%148] : memref<8xf32, #tpu.memory_space<smem>>
      %cst_72 = arith.constant dense<0.000000e+00> : vector<1xf32>
      %150 = vector.multi_reduction <add>, %147, %cst_72 [1] : vector<1x1024xf32> to vector<1xf32>
      %151 = vector.shape_cast %150 : vector<1xf32> to vector<1x1xf32>
      %cst_73 = arith.constant 1.024000e+03 : f32
      %152 = vector.broadcast %cst_73 : f32 to vector<1x1xf32>
      %153 = arith.divf %151, %152 : vector<1x1xf32>
      %154 = vector.broadcast %147 : vector<1x1024xf32> to vector<4x1024xf32>
      %155 = vector.broadcast %3 : vector<4x1xf32> to vector<4x1024xf32>
      %156 = arith.subf %154, %155 : vector<4x1024xf32>
      %cst_74 = arith.constant 0.000000e+00 : f32
      %157 = vector.broadcast %cst_74 : f32 to vector<4x1024xf32>
      %158 = arith.maximumf %156, %157 : vector<4x1024xf32>
      %159 = vector.broadcast %147 : vector<1x1024xf32> to vector<4x1024xf32>
      %160 = vector.broadcast %4 : vector<4x1xf32> to vector<4x1024xf32>
      %161 = arith.subf %159, %160 : vector<4x1024xf32>
      %cst_75 = arith.constant 0.000000e+00 : f32
      %162 = vector.broadcast %cst_75 : f32 to vector<4x1024xf32>
      %163 = arith.maximumf %161, %162 : vector<4x1024xf32>
      %cst_76 = arith.constant dense<0.000000e+00> : vector<4xf32>
      %164 = vector.multi_reduction <add>, %158, %cst_76 [1] : vector<4x1024xf32> to vector<4xf32>
      %165 = vector.shape_cast %164 : vector<4xf32> to vector<4x1xf32>
      %cst_77 = arith.constant 1.024000e+03 : f32
      %166 = vector.broadcast %cst_77 : f32 to vector<4x1xf32>
      %167 = arith.divf %165, %166 : vector<4x1xf32>
      %cst_78 = arith.constant dense<0.000000e+00> : vector<4xf32>
      %168 = vector.multi_reduction <add>, %163, %cst_78 [1] : vector<4x1024xf32> to vector<4xf32>
      %169 = vector.shape_cast %168 : vector<4xf32> to vector<4x1xf32>
      %cst_79 = arith.constant 1.024000e+03 : f32
      %170 = vector.broadcast %cst_79 : f32 to vector<4x1xf32>
      %171 = arith.divf %169, %170 : vector<4x1xf32>
      %172 = vector.broadcast %149 : f32 to vector<4x1xf32>
      %173 = arith.mulf %167, %172 : vector<4x1xf32>
      %174 = arith.index_cast %19 : i32 to index
      %c0_80 = arith.constant 0 : index
      %c0_81 = arith.constant 0 : index
      %175 = vector.load %arg8[%174, %c0_80, %c0_81] : memref<3x4x1xf32, #tpu.memory_space<vmem>>, vector<1x4x1xf32>
      %176 = vector.shape_cast %175 : vector<1x4x1xf32> to vector<4x1xf32>
      %177 = vector.shape_cast %173 : vector<4x1xf32> to vector<1x4x1xf32>
      tpu.vector_store %arg8[%174, %c0_80, %c0_81], %177 {strides = array<i32>} : memref<3x4x1xf32, #tpu.memory_space<vmem>>, vector<1x4x1xf32>,
      %178 = vector.broadcast %149 : f32 to vector<4x1xf32>
      %179 = arith.mulf %171, %178 : vector<4x1xf32>
      %180 = arith.index_cast %19 : i32 to index
      %c0_82 = arith.constant 0 : index
      %c0_83 = arith.constant 0 : index
      %181 = vector.load %arg10[%180, %c0_82, %c0_83] : memref<3x4x1xf32, #tpu.memory_space<vmem>>, vector<1x4x1xf32>
      %182 = vector.shape_cast %181 : vector<1x4x1xf32> to vector<4x1xf32>
      %183 = vector.shape_cast %179 : vector<4x1xf32> to vector<1x4x1xf32>
      tpu.vector_store %arg10[%180, %c0_82, %c0_83], %183 {strides = array<i32>} : memref<3x4x1xf32, #tpu.memory_space<vmem>>, vector<1x4x1xf32>,
      %184 = vector.broadcast %153 : vector<1x1xf32> to vector<4x1xf32>
      %185 = arith.subf %171, %184 : vector<4x1xf32>
      %186 = arith.addf %185, %4 : vector<4x1xf32>
      %187 = vector.broadcast %149 : f32 to vector<4x1xf32>
      %188 = arith.mulf %186, %187 : vector<4x1xf32>
      %189 = arith.index_cast %19 : i32 to index
      %c0_84 = arith.constant 0 : index
      %c0_85 = arith.constant 0 : index
      %190 = vector.load %arg9[%189, %c0_84, %c0_85] : memref<3x4x1xf32, #tpu.memory_space<vmem>>, vector<1x4x1xf32>
      %191 = vector.shape_cast %190 : vector<1x4x1xf32> to vector<4x1xf32>
      %192 = vector.shape_cast %188 : vector<4x1xf32> to vector<1x4x1xf32>
      tpu.vector_store %arg9[%189, %c0_84, %c0_85], %192 {strides = array<i32>} : memref<3x4x1xf32, #tpu.memory_space<vmem>>, vector<1x4x1xf32>,
      %193 = vector.broadcast %153 : vector<1x1xf32> to vector<4x1xf32>
      %194 = arith.subf %167, %193 : vector<4x1xf32>
      %195 = arith.addf %194, %3 : vector<4x1xf32>
      %196 = vector.broadcast %149 : f32 to vector<4x1xf32>
      %197 = arith.mulf %195, %196 : vector<4x1xf32>
      %198 = arith.index_cast %19 : i32 to index
      %c0_86 = arith.constant 0 : index
      %c0_87 = arith.constant 0 : index
      %199 = vector.load %arg11[%198, %c0_86, %c0_87] : memref<3x4x1xf32, #tpu.memory_space<vmem>>, vector<1x4x1xf32>
      %200 = vector.shape_cast %199 : vector<1x4x1xf32> to vector<4x1xf32>
      %201 = vector.shape_cast %197 : vector<4x1xf32> to vector<1x4x1xf32>
      tpu.vector_store %arg11[%198, %c0_86, %c0_87], %201 {strides = array<i32>} : memref<3x4x1xf32, #tpu.memory_space<vmem>>, vector<1x4x1xf32>,
    } else {
    }
    %c1 = arith.constant 1 : index
    %c0_14 = arith.constant 0 : index
    %23 = vector.load %arg6[%c1, %c0_14] : memref<8x1024xf32, #tpu.memory_space<vmem>>, vector<1x1024xf32>
    %c1_15 = arith.constant 1 : index
    %c0_16 = arith.constant 0 : index
    %24 = vector.load %arg7[%c1_15, %c0_16] : memref<8x1024xf32, #tpu.memory_space<vmem>>, vector<1x1024xf32>
    %cst_17 = arith.constant -1.436000e-01 : f32
    %25 = vector.broadcast %cst_17 : f32 to vector<1x1024xf32>
    %26 = arith.mulf %25, %24 : vector<1x1024xf32>
    %27 = arith.addf %15, %26 : vector<1x1024xf32>
    %28 = math.sqrt %24 : vector<1x1024xf32>
    %cst_18 = arith.constant 1.213000e-01 : f32
    %29 = vector.broadcast %cst_18 : f32 to vector<1x1024xf32>
    %30 = arith.mulf %29, %28 : vector<1x1024xf32>
    %31 = arith.mulf %30, %23 : vector<1x1024xf32>
    %32 = arith.addf %27, %31 : vector<1x1024xf32>
    %c8_i32_19 = arith.constant 8 : i32
    %33 = arith.muli %arg0, %c8_i32_19 : i32
    %c1_i32 = arith.constant 1 : i32
    %34 = arith.addi %33, %c1_i32 : i32
    %35 = arith.index_cast %34 : i32 to index
    %36 = memref.load %arg1[%35] : memref<8xi32, #tpu.memory_space<smem>>
    %c0_i32_20 = arith.constant 0 : i32
    %37 = arith.cmpi sge, %36, %c0_i32_20 : i32
    %38 = arith.extui %37 : i1 to i32
    %c0_i32_21 = arith.constant 0 : i32
    %39 = arith.cmpi ne, %38, %c0_i32_21 : i32
    scf.if %39 {
      %143 = arith.index_cast %34 : i32 to index
      %144 = memref.load %arg2[%143] : memref<8xf32, #tpu.memory_space<smem>>
      %145 = math.exp %32 : vector<1x1024xf32>
      %146 = vector.broadcast %144 : f32 to vector<1x1024xf32>
      %147 = arith.mulf %146, %145 : vector<1x1024xf32>
      %148 = arith.index_cast %34 : i32 to index
      %149 = memref.load %arg3[%148] : memref<8xf32, #tpu.memory_space<smem>>
      %cst_72 = arith.constant dense<0.000000e+00> : vector<1xf32>
      %150 = vector.multi_reduction <add>, %147, %cst_72 [1] : vector<1x1024xf32> to vector<1xf32>
      %151 = vector.shape_cast %150 : vector<1xf32> to vector<1x1xf32>
      %cst_73 = arith.constant 1.024000e+03 : f32
      %152 = vector.broadcast %cst_73 : f32 to vector<1x1xf32>
      %153 = arith.divf %151, %152 : vector<1x1xf32>
      %154 = vector.broadcast %147 : vector<1x1024xf32> to vector<4x1024xf32>
      %155 = vector.broadcast %3 : vector<4x1xf32> to vector<4x1024xf32>
      %156 = arith.subf %154, %155 : vector<4x1024xf32>
      %cst_74 = arith.constant 0.000000e+00 : f32
      %157 = vector.broadcast %cst_74 : f32 to vector<4x1024xf32>
      %158 = arith.maximumf %156, %157 : vector<4x1024xf32>
      %159 = vector.broadcast %147 : vector<1x1024xf32> to vector<4x1024xf32>
      %160 = vector.broadcast %4 : vector<4x1xf32> to vector<4x1024xf32>
      %161 = arith.subf %159, %160 : vector<4x1024xf32>
      %cst_75 = arith.constant 0.000000e+00 : f32
      %162 = vector.broadcast %cst_75 : f32 to vector<4x1024xf32>
      %163 = arith.maximumf %161, %162 : vector<4x1024xf32>
      %cst_76 = arith.constant dense<0.000000e+00> : vector<4xf32>
      %164 = vector.multi_reduction <add>, %158, %cst_76 [1] : vector<4x1024xf32> to vector<4xf32>
      %165 = vector.shape_cast %164 : vector<4xf32> to vector<4x1xf32>
      %cst_77 = arith.constant 1.024000e+03 : f32
      %166 = vector.broadcast %cst_77 : f32 to vector<4x1xf32>
      %167 = arith.divf %165, %166 : vector<4x1xf32>
      %cst_78 = arith.constant dense<0.000000e+00> : vector<4xf32>
      %168 = vector.multi_reduction <add>, %163, %cst_78 [1] : vector<4x1024xf32> to vector<4xf32>
      %169 = vector.shape_cast %168 : vector<4xf32> to vector<4x1xf32>
      %cst_79 = arith.constant 1.024000e+03 : f32
      %170 = vector.broadcast %cst_79 : f32 to vector<4x1xf32>
      %171 = arith.divf %169, %170 : vector<4x1xf32>
      %172 = vector.broadcast %149 : f32 to vector<4x1xf32>
      %173 = arith.mulf %167, %172 : vector<4x1xf32>
      %174 = arith.index_cast %36 : i32 to index
      %c0_80 = arith.constant 0 : index
      %c0_81 = arith.constant 0 : index
      %175 = vector.load %arg8[%174, %c0_80, %c0_81] : memref<3x4x1xf32, #tpu.memory_space<vmem>>, vector<1x4x1xf32>
      %176 = vector.shape_cast %175 : vector<1x4x1xf32> to vector<4x1xf32>
      %177 = vector.shape_cast %173 : vector<4x1xf32> to vector<1x4x1xf32>
      tpu.vector_store %arg8[%174, %c0_80, %c0_81], %177 {strides = array<i32>} : memref<3x4x1xf32, #tpu.memory_space<vmem>>, vector<1x4x1xf32>,
      %178 = vector.broadcast %149 : f32 to vector<4x1xf32>
      %179 = arith.mulf %171, %178 : vector<4x1xf32>
      %180 = arith.index_cast %36 : i32 to index
      %c0_82 = arith.constant 0 : index
      %c0_83 = arith.constant 0 : index
      %181 = vector.load %arg10[%180, %c0_82, %c0_83] : memref<3x4x1xf32, #tpu.memory_space<vmem>>, vector<1x4x1xf32>
      %182 = vector.shape_cast %181 : vector<1x4x1xf32> to vector<4x1xf32>
      %183 = vector.shape_cast %179 : vector<4x1xf32> to vector<1x4x1xf32>
      tpu.vector_store %arg10[%180, %c0_82, %c0_83], %183 {strides = array<i32>} : memref<3x4x1xf32, #tpu.memory_space<vmem>>, vector<1x4x1xf32>,
      %184 = vector.broadcast %153 : vector<1x1xf32> to vector<4x1xf32>
      %185 = arith.subf %171, %184 : vector<4x1xf32>
      %186 = arith.addf %185, %4 : vector<4x1xf32>
      %187 = vector.broadcast %149 : f32 to vector<4x1xf32>
      %188 = arith.mulf %186, %187 : vector<4x1xf32>
      %189 = arith.index_cast %36 : i32 to index
      %c0_84 = arith.constant 0 : index
      %c0_85 = arith.constant 0 : index
      %190 = vector.load %arg9[%189, %c0_84, %c0_85] : memref<3x4x1xf32, #tpu.memory_space<vmem>>, vector<1x4x1xf32>
      %191 = vector.shape_cast %190 : vector<1x4x1xf32> to vector<4x1xf32>
      %192 = vector.shape_cast %188 : vector<4x1xf32> to vector<1x4x1xf32>
      tpu.vector_store %arg9[%189, %c0_84, %c0_85], %192 {strides = array<i32>} : memref<3x4x1xf32, #tpu.memory_space<vmem>>, vector<1x4x1xf32>,
      %193 = vector.broadcast %153 : vector<1x1xf32> to vector<4x1xf32>
      %194 = arith.subf %167, %193 : vector<4x1xf32>
      %195 = arith.addf %194, %3 : vector<4x1xf32>
      %196 = vector.broadcast %149 : f32 to vector<4x1xf32>
      %197 = arith.mulf %195, %196 : vector<4x1xf32>
      %198 = arith.index_cast %36 : i32 to index
      %c0_86 = arith.constant 0 : index
      %c0_87 = arith.constant 0 : index
      %199 = vector.load %arg11[%198, %c0_86, %c0_87] : memref<3x4x1xf32, #tpu.memory_space<vmem>>, vector<1x4x1xf32>
      %200 = vector.shape_cast %199 : vector<1x4x1xf32> to vector<4x1xf32>
      %201 = vector.shape_cast %197 : vector<4x1xf32> to vector<1x4x1xf32>
      tpu.vector_store %arg11[%198, %c0_86, %c0_87], %201 {strides = array<i32>} : memref<3x4x1xf32, #tpu.memory_space<vmem>>, vector<1x4x1xf32>,
    } else {
    }
    %c2 = arith.constant 2 : index
    %c0_22 = arith.constant 0 : index
    %40 = vector.load %arg6[%c2, %c0_22] : memref<8x1024xf32, #tpu.memory_space<vmem>>, vector<1x1024xf32>
    %c2_23 = arith.constant 2 : index
    %c0_24 = arith.constant 0 : index
    %41 = vector.load %arg7[%c2_23, %c0_24] : memref<8x1024xf32, #tpu.memory_space<vmem>>, vector<1x1024xf32>
    %cst_25 = arith.constant -1.436000e-01 : f32
    %42 = vector.broadcast %cst_25 : f32 to vector<1x1024xf32>
    %43 = arith.mulf %42, %41 : vector<1x1024xf32>
    %44 = arith.addf %32, %43 : vector<1x1024xf32>
    %45 = math.sqrt %41 : vector<1x1024xf32>
    %cst_26 = arith.constant 1.213000e-01 : f32
    %46 = vector.broadcast %cst_26 : f32 to vector<1x1024xf32>
    %47 = arith.mulf %46, %45 : vector<1x1024xf32>
    %48 = arith.mulf %47, %40 : vector<1x1024xf32>
    %49 = arith.addf %44, %48 : vector<1x1024xf32>
    %c8_i32_27 = arith.constant 8 : i32
    %50 = arith.muli %arg0, %c8_i32_27 : i32
    %c2_i32 = arith.constant 2 : i32
    %51 = arith.addi %50, %c2_i32 : i32
    %52 = arith.index_cast %51 : i32 to index
    %53 = memref.load %arg1[%52] : memref<8xi32, #tpu.memory_space<smem>>
    %c0_i32_28 = arith.constant 0 : i32
    %54 = arith.cmpi sge, %53, %c0_i32_28 : i32
    %55 = arith.extui %54 : i1 to i32
    %c0_i32_29 = arith.constant 0 : i32
    %56 = arith.cmpi ne, %55, %c0_i32_29 : i32
    scf.if %56 {
      %143 = arith.index_cast %51 : i32 to index
      %144 = memref.load %arg2[%143] : memref<8xf32, #tpu.memory_space<smem>>
      %145 = math.exp %49 : vector<1x1024xf32>
      %146 = vector.broadcast %144 : f32 to vector<1x1024xf32>
      %147 = arith.mulf %146, %145 : vector<1x1024xf32>
      %148 = arith.index_cast %51 : i32 to index
      %149 = memref.load %arg3[%148] : memref<8xf32, #tpu.memory_space<smem>>
      %cst_72 = arith.constant dense<0.000000e+00> : vector<1xf32>
      %150 = vector.multi_reduction <add>, %147, %cst_72 [1] : vector<1x1024xf32> to vector<1xf32>
      %151 = vector.shape_cast %150 : vector<1xf32> to vector<1x1xf32>
      %cst_73 = arith.constant 1.024000e+03 : f32
      %152 = vector.broadcast %cst_73 : f32 to vector<1x1xf32>
      %153 = arith.divf %151, %152 : vector<1x1xf32>
      %154 = vector.broadcast %147 : vector<1x1024xf32> to vector<4x1024xf32>
      %155 = vector.broadcast %3 : vector<4x1xf32> to vector<4x1024xf32>
      %156 = arith.subf %154, %155 : vector<4x1024xf32>
      %cst_74 = arith.constant 0.000000e+00 : f32
      %157 = vector.broadcast %cst_74 : f32 to vector<4x1024xf32>
      %158 = arith.maximumf %156, %157 : vector<4x1024xf32>
      %159 = vector.broadcast %147 : vector<1x1024xf32> to vector<4x1024xf32>
      %160 = vector.broadcast %4 : vector<4x1xf32> to vector<4x1024xf32>
      %161 = arith.subf %159, %160 : vector<4x1024xf32>
      %cst_75 = arith.constant 0.000000e+00 : f32
      %162 = vector.broadcast %cst_75 : f32 to vector<4x1024xf32>
      %163 = arith.maximumf %161, %162 : vector<4x1024xf32>
      %cst_76 = arith.constant dense<0.000000e+00> : vector<4xf32>
      %164 = vector.multi_reduction <add>, %158, %cst_76 [1] : vector<4x1024xf32> to vector<4xf32>
      %165 = vector.shape_cast %164 : vector<4xf32> to vector<4x1xf32>
      %cst_77 = arith.constant 1.024000e+03 : f32
      %166 = vector.broadcast %cst_77 : f32 to vector<4x1xf32>
      %167 = arith.divf %165, %166 : vector<4x1xf32>
      %cst_78 = arith.constant dense<0.000000e+00> : vector<4xf32>
      %168 = vector.multi_reduction <add>, %163, %cst_78 [1] : vector<4x1024xf32> to vector<4xf32>
      %169 = vector.shape_cast %168 : vector<4xf32> to vector<4x1xf32>
      %cst_79 = arith.constant 1.024000e+03 : f32
      %170 = vector.broadcast %cst_79 : f32 to vector<4x1xf32>
      %171 = arith.divf %169, %170 : vector<4x1xf32>
      %172 = vector.broadcast %149 : f32 to vector<4x1xf32>
      %173 = arith.mulf %167, %172 : vector<4x1xf32>
      %174 = arith.index_cast %53 : i32 to index
      %c0_80 = arith.constant 0 : index
      %c0_81 = arith.constant 0 : index
      %175 = vector.load %arg8[%174, %c0_80, %c0_81] : memref<3x4x1xf32, #tpu.memory_space<vmem>>, vector<1x4x1xf32>
      %176 = vector.shape_cast %175 : vector<1x4x1xf32> to vector<4x1xf32>
      %177 = vector.shape_cast %173 : vector<4x1xf32> to vector<1x4x1xf32>
      tpu.vector_store %arg8[%174, %c0_80, %c0_81], %177 {strides = array<i32>} : memref<3x4x1xf32, #tpu.memory_space<vmem>>, vector<1x4x1xf32>,
      %178 = vector.broadcast %149 : f32 to vector<4x1xf32>
      %179 = arith.mulf %171, %178 : vector<4x1xf32>
      %180 = arith.index_cast %53 : i32 to index
      %c0_82 = arith.constant 0 : index
      %c0_83 = arith.constant 0 : index
      %181 = vector.load %arg10[%180, %c0_82, %c0_83] : memref<3x4x1xf32, #tpu.memory_space<vmem>>, vector<1x4x1xf32>
      %182 = vector.shape_cast %181 : vector<1x4x1xf32> to vector<4x1xf32>
      %183 = vector.shape_cast %179 : vector<4x1xf32> to vector<1x4x1xf32>
      tpu.vector_store %arg10[%180, %c0_82, %c0_83], %183 {strides = array<i32>} : memref<3x4x1xf32, #tpu.memory_space<vmem>>, vector<1x4x1xf32>,
      %184 = vector.broadcast %153 : vector<1x1xf32> to vector<4x1xf32>
      %185 = arith.subf %171, %184 : vector<4x1xf32>
      %186 = arith.addf %185, %4 : vector<4x1xf32>
      %187 = vector.broadcast %149 : f32 to vector<4x1xf32>
      %188 = arith.mulf %186, %187 : vector<4x1xf32>
      %189 = arith.index_cast %53 : i32 to index
      %c0_84 = arith.constant 0 : index
      %c0_85 = arith.constant 0 : index
      %190 = vector.load %arg9[%189, %c0_84, %c0_85] : memref<3x4x1xf32, #tpu.memory_space<vmem>>, vector<1x4x1xf32>
      %191 = vector.shape_cast %190 : vector<1x4x1xf32> to vector<4x1xf32>
      %192 = vector.shape_cast %188 : vector<4x1xf32> to vector<1x4x1xf32>
      tpu.vector_store %arg9[%189, %c0_84, %c0_85], %192 {strides = array<i32>} : memref<3x4x1xf32, #tpu.memory_space<vmem>>, vector<1x4x1xf32>,
      %193 = vector.broadcast %153 : vector<1x1xf32> to vector<4x1xf32>
      %194 = arith.subf %167, %193 : vector<4x1xf32>
      %195 = arith.addf %194, %3 : vector<4x1xf32>
      %196 = vector.broadcast %149 : f32 to vector<4x1xf32>
      %197 = arith.mulf %195, %196 : vector<4x1xf32>
      %198 = arith.index_cast %53 : i32 to index
      %c0_86 = arith.constant 0 : index
      %c0_87 = arith.constant 0 : index
      %199 = vector.load %arg11[%198, %c0_86, %c0_87] : memref<3x4x1xf32, #tpu.memory_space<vmem>>, vector<1x4x1xf32>
      %200 = vector.shape_cast %199 : vector<1x4x1xf32> to vector<4x1xf32>
      %201 = vector.shape_cast %197 : vector<4x1xf32> to vector<1x4x1xf32>
      tpu.vector_store %arg11[%198, %c0_86, %c0_87], %201 {strides = array<i32>} : memref<3x4x1xf32, #tpu.memory_space<vmem>>, vector<1x4x1xf32>,
    } else {
    }
    %c3 = arith.constant 3 : index
    %c0_30 = arith.constant 0 : index
    %57 = vector.load %arg6[%c3, %c0_30] : memref<8x1024xf32, #tpu.memory_space<vmem>>, vector<1x1024xf32>
    %c3_31 = arith.constant 3 : index
    %c0_32 = arith.constant 0 : index
    %58 = vector.load %arg7[%c3_31, %c0_32] : memref<8x1024xf32, #tpu.memory_space<vmem>>, vector<1x1024xf32>
    %cst_33 = arith.constant -1.436000e-01 : f32
    %59 = vector.broadcast %cst_33 : f32 to vector<1x1024xf32>
    %60 = arith.mulf %59, %58 : vector<1x1024xf32>
    %61 = arith.addf %49, %60 : vector<1x1024xf32>
    %62 = math.sqrt %58 : vector<1x1024xf32>
    %cst_34 = arith.constant 1.213000e-01 : f32
    %63 = vector.broadcast %cst_34 : f32 to vector<1x1024xf32>
    %64 = arith.mulf %63, %62 : vector<1x1024xf32>
    %65 = arith.mulf %64, %57 : vector<1x1024xf32>
    %66 = arith.addf %61, %65 : vector<1x1024xf32>
    %c8_i32_35 = arith.constant 8 : i32
    %67 = arith.muli %arg0, %c8_i32_35 : i32
    %c3_i32 = arith.constant 3 : i32
    %68 = arith.addi %67, %c3_i32 : i32
    %69 = arith.index_cast %68 : i32 to index
    %70 = memref.load %arg1[%69] : memref<8xi32, #tpu.memory_space<smem>>
    %c0_i32_36 = arith.constant 0 : i32
    %71 = arith.cmpi sge, %70, %c0_i32_36 : i32
    %72 = arith.extui %71 : i1 to i32
    %c0_i32_37 = arith.constant 0 : i32
    %73 = arith.cmpi ne, %72, %c0_i32_37 : i32
    scf.if %73 {
      %143 = arith.index_cast %68 : i32 to index
      %144 = memref.load %arg2[%143] : memref<8xf32, #tpu.memory_space<smem>>
      %145 = math.exp %66 : vector<1x1024xf32>
      %146 = vector.broadcast %144 : f32 to vector<1x1024xf32>
      %147 = arith.mulf %146, %145 : vector<1x1024xf32>
      %148 = arith.index_cast %68 : i32 to index
      %149 = memref.load %arg3[%148] : memref<8xf32, #tpu.memory_space<smem>>
      %cst_72 = arith.constant dense<0.000000e+00> : vector<1xf32>
      %150 = vector.multi_reduction <add>, %147, %cst_72 [1] : vector<1x1024xf32> to vector<1xf32>
      %151 = vector.shape_cast %150 : vector<1xf32> to vector<1x1xf32>
      %cst_73 = arith.constant 1.024000e+03 : f32
      %152 = vector.broadcast %cst_73 : f32 to vector<1x1xf32>
      %153 = arith.divf %151, %152 : vector<1x1xf32>
      %154 = vector.broadcast %147 : vector<1x1024xf32> to vector<4x1024xf32>
      %155 = vector.broadcast %3 : vector<4x1xf32> to vector<4x1024xf32>
      %156 = arith.subf %154, %155 : vector<4x1024xf32>
      %cst_74 = arith.constant 0.000000e+00 : f32
      %157 = vector.broadcast %cst_74 : f32 to vector<4x1024xf32>
      %158 = arith.maximumf %156, %157 : vector<4x1024xf32>
      %159 = vector.broadcast %147 : vector<1x1024xf32> to vector<4x1024xf32>
      %160 = vector.broadcast %4 : vector<4x1xf32> to vector<4x1024xf32>
      %161 = arith.subf %159, %160 : vector<4x1024xf32>
      %cst_75 = arith.constant 0.000000e+00 : f32
      %162 = vector.broadcast %cst_75 : f32 to vector<4x1024xf32>
      %163 = arith.maximumf %161, %162 : vector<4x1024xf32>
      %cst_76 = arith.constant dense<0.000000e+00> : vector<4xf32>
      %164 = vector.multi_reduction <add>, %158, %cst_76 [1] : vector<4x1024xf32> to vector<4xf32>
      %165 = vector.shape_cast %164 : vector<4xf32> to vector<4x1xf32>
      %cst_77 = arith.constant 1.024000e+03 : f32
      %166 = vector.broadcast %cst_77 : f32 to vector<4x1xf32>
      %167 = arith.divf %165, %166 : vector<4x1xf32>
      %cst_78 = arith.constant dense<0.000000e+00> : vector<4xf32>
      %168 = vector.multi_reduction <add>, %163, %cst_78 [1] : vector<4x1024xf32> to vector<4xf32>
      %169 = vector.shape_cast %168 : vector<4xf32> to vector<4x1xf32>
      %cst_79 = arith.constant 1.024000e+03 : f32
      %170 = vector.broadcast %cst_79 : f32 to vector<4x1xf32>
      %171 = arith.divf %169, %170 : vector<4x1xf32>
      %172 = vector.broadcast %149 : f32 to vector<4x1xf32>
      %173 = arith.mulf %167, %172 : vector<4x1xf32>
      %174 = arith.index_cast %70 : i32 to index
      %c0_80 = arith.constant 0 : index
      %c0_81 = arith.constant 0 : index
      %175 = vector.load %arg8[%174, %c0_80, %c0_81] : memref<3x4x1xf32, #tpu.memory_space<vmem>>, vector<1x4x1xf32>
      %176 = vector.shape_cast %175 : vector<1x4x1xf32> to vector<4x1xf32>
      %177 = vector.shape_cast %173 : vector<4x1xf32> to vector<1x4x1xf32>
      tpu.vector_store %arg8[%174, %c0_80, %c0_81], %177 {strides = array<i32>} : memref<3x4x1xf32, #tpu.memory_space<vmem>>, vector<1x4x1xf32>,
      %178 = vector.broadcast %149 : f32 to vector<4x1xf32>
      %179 = arith.mulf %171, %178 : vector<4x1xf32>
      %180 = arith.index_cast %70 : i32 to index
      %c0_82 = arith.constant 0 : index
      %c0_83 = arith.constant 0 : index
      %181 = vector.load %arg10[%180, %c0_82, %c0_83] : memref<3x4x1xf32, #tpu.memory_space<vmem>>, vector<1x4x1xf32>
      %182 = vector.shape_cast %181 : vector<1x4x1xf32> to vector<4x1xf32>
      %183 = vector.shape_cast %179 : vector<4x1xf32> to vector<1x4x1xf32>
      tpu.vector_store %arg10[%180, %c0_82, %c0_83], %183 {strides = array<i32>} : memref<3x4x1xf32, #tpu.memory_space<vmem>>, vector<1x4x1xf32>,
      %184 = vector.broadcast %153 : vector<1x1xf32> to vector<4x1xf32>
      %185 = arith.subf %171, %184 : vector<4x1xf32>
      %186 = arith.addf %185, %4 : vector<4x1xf32>
      %187 = vector.broadcast %149 : f32 to vector<4x1xf32>
      %188 = arith.mulf %186, %187 : vector<4x1xf32>
      %189 = arith.index_cast %70 : i32 to index
      %c0_84 = arith.constant 0 : index
      %c0_85 = arith.constant 0 : index
      %190 = vector.load %arg9[%189, %c0_84, %c0_85] : memref<3x4x1xf32, #tpu.memory_space<vmem>>, vector<1x4x1xf32>
      %191 = vector.shape_cast %190 : vector<1x4x1xf32> to vector<4x1xf32>
      %192 = vector.shape_cast %188 : vector<4x1xf32> to vector<1x4x1xf32>
      tpu.vector_store %arg9[%189, %c0_84, %c0_85], %192 {strides = array<i32>} : memref<3x4x1xf32, #tpu.memory_space<vmem>>, vector<1x4x1xf32>,
      %193 = vector.broadcast %153 : vector<1x1xf32> to vector<4x1xf32>
      %194 = arith.subf %167, %193 : vector<4x1xf32>
      %195 = arith.addf %194, %3 : vector<4x1xf32>
      %196 = vector.broadcast %149 : f32 to vector<4x1xf32>
      %197 = arith.mulf %195, %196 : vector<4x1xf32>
      %198 = arith.index_cast %70 : i32 to index
      %c0_86 = arith.constant 0 : index
      %c0_87 = arith.constant 0 : index
      %199 = vector.load %arg11[%198, %c0_86, %c0_87] : memref<3x4x1xf32, #tpu.memory_space<vmem>>, vector<1x4x1xf32>
      %200 = vector.shape_cast %199 : vector<1x4x1xf32> to vector<4x1xf32>
      %201 = vector.shape_cast %197 : vector<4x1xf32> to vector<1x4x1xf32>
      tpu.vector_store %arg11[%198, %c0_86, %c0_87], %201 {strides = array<i32>} : memref<3x4x1xf32, #tpu.memory_space<vmem>>, vector<1x4x1xf32>,
    } else {
    }
    %c4 = arith.constant 4 : index
    %c0_38 = arith.constant 0 : index
    %74 = vector.load %arg6[%c4, %c0_38] : memref<8x1024xf32, #tpu.memory_space<vmem>>, vector<1x1024xf32>
    %c4_39 = arith.constant 4 : index
    %c0_40 = arith.constant 0 : index
    %75 = vector.load %arg7[%c4_39, %c0_40] : memref<8x1024xf32, #tpu.memory_space<vmem>>, vector<1x1024xf32>
    %cst_41 = arith.constant -1.436000e-01 : f32
    %76 = vector.broadcast %cst_41 : f32 to vector<1x1024xf32>
    %77 = arith.mulf %76, %75 : vector<1x1024xf32>
    %78 = arith.addf %66, %77 : vector<1x1024xf32>
    %79 = math.sqrt %75 : vector<1x1024xf32>
    %cst_42 = arith.constant 1.213000e-01 : f32
    %80 = vector.broadcast %cst_42 : f32 to vector<1x1024xf32>
    %81 = arith.mulf %80, %79 : vector<1x1024xf32>
    %82 = arith.mulf %81, %74 : vector<1x1024xf32>
    %83 = arith.addf %78, %82 : vector<1x1024xf32>
    %c8_i32_43 = arith.constant 8 : i32
    %84 = arith.muli %arg0, %c8_i32_43 : i32
    %c4_i32 = arith.constant 4 : i32
    %85 = arith.addi %84, %c4_i32 : i32
    %86 = arith.index_cast %85 : i32 to index
    %87 = memref.load %arg1[%86] : memref<8xi32, #tpu.memory_space<smem>>
    %c0_i32_44 = arith.constant 0 : i32
    %88 = arith.cmpi sge, %87, %c0_i32_44 : i32
    %89 = arith.extui %88 : i1 to i32
    %c0_i32_45 = arith.constant 0 : i32
    %90 = arith.cmpi ne, %89, %c0_i32_45 : i32
    scf.if %90 {
      %143 = arith.index_cast %85 : i32 to index
      %144 = memref.load %arg2[%143] : memref<8xf32, #tpu.memory_space<smem>>
      %145 = math.exp %83 : vector<1x1024xf32>
      %146 = vector.broadcast %144 : f32 to vector<1x1024xf32>
      %147 = arith.mulf %146, %145 : vector<1x1024xf32>
      %148 = arith.index_cast %85 : i32 to index
      %149 = memref.load %arg3[%148] : memref<8xf32, #tpu.memory_space<smem>>
      %cst_72 = arith.constant dense<0.000000e+00> : vector<1xf32>
      %150 = vector.multi_reduction <add>, %147, %cst_72 [1] : vector<1x1024xf32> to vector<1xf32>
      %151 = vector.shape_cast %150 : vector<1xf32> to vector<1x1xf32>
      %cst_73 = arith.constant 1.024000e+03 : f32
      %152 = vector.broadcast %cst_73 : f32 to vector<1x1xf32>
      %153 = arith.divf %151, %152 : vector<1x1xf32>
      %154 = vector.broadcast %147 : vector<1x1024xf32> to vector<4x1024xf32>
      %155 = vector.broadcast %3 : vector<4x1xf32> to vector<4x1024xf32>
      %156 = arith.subf %154, %155 : vector<4x1024xf32>
      %cst_74 = arith.constant 0.000000e+00 : f32
      %157 = vector.broadcast %cst_74 : f32 to vector<4x1024xf32>
      %158 = arith.maximumf %156, %157 : vector<4x1024xf32>
      %159 = vector.broadcast %147 : vector<1x1024xf32> to vector<4x1024xf32>
      %160 = vector.broadcast %4 : vector<4x1xf32> to vector<4x1024xf32>
      %161 = arith.subf %159, %160 : vector<4x1024xf32>
      %cst_75 = arith.constant 0.000000e+00 : f32
      %162 = vector.broadcast %cst_75 : f32 to vector<4x1024xf32>
      %163 = arith.maximumf %161, %162 : vector<4x1024xf32>
      %cst_76 = arith.constant dense<0.000000e+00> : vector<4xf32>
      %164 = vector.multi_reduction <add>, %158, %cst_76 [1] : vector<4x1024xf32> to vector<4xf32>
      %165 = vector.shape_cast %164 : vector<4xf32> to vector<4x1xf32>
      %cst_77 = arith.constant 1.024000e+03 : f32
      %166 = vector.broadcast %cst_77 : f32 to vector<4x1xf32>
      %167 = arith.divf %165, %166 : vector<4x1xf32>
      %cst_78 = arith.constant dense<0.000000e+00> : vector<4xf32>
      %168 = vector.multi_reduction <add>, %163, %cst_78 [1] : vector<4x1024xf32> to vector<4xf32>
      %169 = vector.shape_cast %168 : vector<4xf32> to vector<4x1xf32>
      %cst_79 = arith.constant 1.024000e+03 : f32
      %170 = vector.broadcast %cst_79 : f32 to vector<4x1xf32>
      %171 = arith.divf %169, %170 : vector<4x1xf32>
      %172 = vector.broadcast %149 : f32 to vector<4x1xf32>
      %173 = arith.mulf %167, %172 : vector<4x1xf32>
      %174 = arith.index_cast %87 : i32 to index
      %c0_80 = arith.constant 0 : index
      %c0_81 = arith.constant 0 : index
      %175 = vector.load %arg8[%174, %c0_80, %c0_81] : memref<3x4x1xf32, #tpu.memory_space<vmem>>, vector<1x4x1xf32>
      %176 = vector.shape_cast %175 : vector<1x4x1xf32> to vector<4x1xf32>
      %177 = vector.shape_cast %173 : vector<4x1xf32> to vector<1x4x1xf32>
      tpu.vector_store %arg8[%174, %c0_80, %c0_81], %177 {strides = array<i32>} : memref<3x4x1xf32, #tpu.memory_space<vmem>>, vector<1x4x1xf32>,
      %178 = vector.broadcast %149 : f32 to vector<4x1xf32>
      %179 = arith.mulf %171, %178 : vector<4x1xf32>
      %180 = arith.index_cast %87 : i32 to index
      %c0_82 = arith.constant 0 : index
      %c0_83 = arith.constant 0 : index
      %181 = vector.load %arg10[%180, %c0_82, %c0_83] : memref<3x4x1xf32, #tpu.memory_space<vmem>>, vector<1x4x1xf32>
      %182 = vector.shape_cast %181 : vector<1x4x1xf32> to vector<4x1xf32>
      %183 = vector.shape_cast %179 : vector<4x1xf32> to vector<1x4x1xf32>
      tpu.vector_store %arg10[%180, %c0_82, %c0_83], %183 {strides = array<i32>} : memref<3x4x1xf32, #tpu.memory_space<vmem>>, vector<1x4x1xf32>,
      %184 = vector.broadcast %153 : vector<1x1xf32> to vector<4x1xf32>
      %185 = arith.subf %171, %184 : vector<4x1xf32>
      %186 = arith.addf %185, %4 : vector<4x1xf32>
      %187 = vector.broadcast %149 : f32 to vector<4x1xf32>
      %188 = arith.mulf %186, %187 : vector<4x1xf32>
      %189 = arith.index_cast %87 : i32 to index
      %c0_84 = arith.constant 0 : index
      %c0_85 = arith.constant 0 : index
      %190 = vector.load %arg9[%189, %c0_84, %c0_85] : memref<3x4x1xf32, #tpu.memory_space<vmem>>, vector<1x4x1xf32>
      %191 = vector.shape_cast %190 : vector<1x4x1xf32> to vector<4x1xf32>
      %192 = vector.shape_cast %188 : vector<4x1xf32> to vector<1x4x1xf32>
      tpu.vector_store %arg9[%189, %c0_84, %c0_85], %192 {strides = array<i32>} : memref<3x4x1xf32, #tpu.memory_space<vmem>>, vector<1x4x1xf32>,
      %193 = vector.broadcast %153 : vector<1x1xf32> to vector<4x1xf32>
      %194 = arith.subf %167, %193 : vector<4x1xf32>
      %195 = arith.addf %194, %3 : vector<4x1xf32>
      %196 = vector.broadcast %149 : f32 to vector<4x1xf32>
      %197 = arith.mulf %195, %196 : vector<4x1xf32>
      %198 = arith.index_cast %87 : i32 to index
      %c0_86 = arith.constant 0 : index
      %c0_87 = arith.constant 0 : index
      %199 = vector.load %arg11[%198, %c0_86, %c0_87] : memref<3x4x1xf32, #tpu.memory_space<vmem>>, vector<1x4x1xf32>
      %200 = vector.shape_cast %199 : vector<1x4x1xf32> to vector<4x1xf32>
      %201 = vector.shape_cast %197 : vector<4x1xf32> to vector<1x4x1xf32>
      tpu.vector_store %arg11[%198, %c0_86, %c0_87], %201 {strides = array<i32>} : memref<3x4x1xf32, #tpu.memory_space<vmem>>, vector<1x4x1xf32>,
    } else {
    }
    %c5 = arith.constant 5 : index
    %c0_46 = arith.constant 0 : index
    %91 = vector.load %arg6[%c5, %c0_46] : memref<8x1024xf32, #tpu.memory_space<vmem>>, vector<1x1024xf32>
    %c5_47 = arith.constant 5 : index
    %c0_48 = arith.constant 0 : index
    %92 = vector.load %arg7[%c5_47, %c0_48] : memref<8x1024xf32, #tpu.memory_space<vmem>>, vector<1x1024xf32>
    %cst_49 = arith.constant -1.436000e-01 : f32
    %93 = vector.broadcast %cst_49 : f32 to vector<1x1024xf32>
    %94 = arith.mulf %93, %92 : vector<1x1024xf32>
    %95 = arith.addf %83, %94 : vector<1x1024xf32>
    %96 = math.sqrt %92 : vector<1x1024xf32>
    %cst_50 = arith.constant 1.213000e-01 : f32
    %97 = vector.broadcast %cst_50 : f32 to vector<1x1024xf32>
    %98 = arith.mulf %97, %96 : vector<1x1024xf32>
    %99 = arith.mulf %98, %91 : vector<1x1024xf32>
    %100 = arith.addf %95, %99 : vector<1x1024xf32>
    %c8_i32_51 = arith.constant 8 : i32
    %101 = arith.muli %arg0, %c8_i32_51 : i32
    %c5_i32 = arith.constant 5 : i32
    %102 = arith.addi %101, %c5_i32 : i32
    %103 = arith.index_cast %102 : i32 to index
    %104 = memref.load %arg1[%103] : memref<8xi32, #tpu.memory_space<smem>>
    %c0_i32_52 = arith.constant 0 : i32
    %105 = arith.cmpi sge, %104, %c0_i32_52 : i32
    %106 = arith.extui %105 : i1 to i32
    %c0_i32_53 = arith.constant 0 : i32
    %107 = arith.cmpi ne, %106, %c0_i32_53 : i32
    scf.if %107 {
      %143 = arith.index_cast %102 : i32 to index
      %144 = memref.load %arg2[%143] : memref<8xf32, #tpu.memory_space<smem>>
      %145 = math.exp %100 : vector<1x1024xf32>
      %146 = vector.broadcast %144 : f32 to vector<1x1024xf32>
      %147 = arith.mulf %146, %145 : vector<1x1024xf32>
      %148 = arith.index_cast %102 : i32 to index
      %149 = memref.load %arg3[%148] : memref<8xf32, #tpu.memory_space<smem>>
      %cst_72 = arith.constant dense<0.000000e+00> : vector<1xf32>
      %150 = vector.multi_reduction <add>, %147, %cst_72 [1] : vector<1x1024xf32> to vector<1xf32>
      %151 = vector.shape_cast %150 : vector<1xf32> to vector<1x1xf32>
      %cst_73 = arith.constant 1.024000e+03 : f32
      %152 = vector.broadcast %cst_73 : f32 to vector<1x1xf32>
      %153 = arith.divf %151, %152 : vector<1x1xf32>
      %154 = vector.broadcast %147 : vector<1x1024xf32> to vector<4x1024xf32>
      %155 = vector.broadcast %3 : vector<4x1xf32> to vector<4x1024xf32>
      %156 = arith.subf %154, %155 : vector<4x1024xf32>
      %cst_74 = arith.constant 0.000000e+00 : f32
      %157 = vector.broadcast %cst_74 : f32 to vector<4x1024xf32>
      %158 = arith.maximumf %156, %157 : vector<4x1024xf32>
      %159 = vector.broadcast %147 : vector<1x1024xf32> to vector<4x1024xf32>
      %160 = vector.broadcast %4 : vector<4x1xf32> to vector<4x1024xf32>
      %161 = arith.subf %159, %160 : vector<4x1024xf32>
      %cst_75 = arith.constant 0.000000e+00 : f32
      %162 = vector.broadcast %cst_75 : f32 to vector<4x1024xf32>
      %163 = arith.maximumf %161, %162 : vector<4x1024xf32>
      %cst_76 = arith.constant dense<0.000000e+00> : vector<4xf32>
      %164 = vector.multi_reduction <add>, %158, %cst_76 [1] : vector<4x1024xf32> to vector<4xf32>
      %165 = vector.shape_cast %164 : vector<4xf32> to vector<4x1xf32>
      %cst_77 = arith.constant 1.024000e+03 : f32
      %166 = vector.broadcast %cst_77 : f32 to vector<4x1xf32>
      %167 = arith.divf %165, %166 : vector<4x1xf32>
      %cst_78 = arith.constant dense<0.000000e+00> : vector<4xf32>
      %168 = vector.multi_reduction <add>, %163, %cst_78 [1] : vector<4x1024xf32> to vector<4xf32>
      %169 = vector.shape_cast %168 : vector<4xf32> to vector<4x1xf32>
      %cst_79 = arith.constant 1.024000e+03 : f32
      %170 = vector.broadcast %cst_79 : f32 to vector<4x1xf32>
      %171 = arith.divf %169, %170 : vector<4x1xf32>
      %172 = vector.broadcast %149 : f32 to vector<4x1xf32>
      %173 = arith.mulf %167, %172 : vector<4x1xf32>
      %174 = arith.index_cast %104 : i32 to index
      %c0_80 = arith.constant 0 : index
      %c0_81 = arith.constant 0 : index
      %175 = vector.load %arg8[%174, %c0_80, %c0_81] : memref<3x4x1xf32, #tpu.memory_space<vmem>>, vector<1x4x1xf32>
      %176 = vector.shape_cast %175 : vector<1x4x1xf32> to vector<4x1xf32>
      %177 = vector.shape_cast %173 : vector<4x1xf32> to vector<1x4x1xf32>
      tpu.vector_store %arg8[%174, %c0_80, %c0_81], %177 {strides = array<i32>} : memref<3x4x1xf32, #tpu.memory_space<vmem>>, vector<1x4x1xf32>,
      %178 = vector.broadcast %149 : f32 to vector<4x1xf32>
      %179 = arith.mulf %171, %178 : vector<4x1xf32>
      %180 = arith.index_cast %104 : i32 to index
      %c0_82 = arith.constant 0 : index
      %c0_83 = arith.constant 0 : index
      %181 = vector.load %arg10[%180, %c0_82, %c0_83] : memref<3x4x1xf32, #tpu.memory_space<vmem>>, vector<1x4x1xf32>
      %182 = vector.shape_cast %181 : vector<1x4x1xf32> to vector<4x1xf32>
      %183 = vector.shape_cast %179 : vector<4x1xf32> to vector<1x4x1xf32>
      tpu.vector_store %arg10[%180, %c0_82, %c0_83], %183 {strides = array<i32>} : memref<3x4x1xf32, #tpu.memory_space<vmem>>, vector<1x4x1xf32>,
      %184 = vector.broadcast %153 : vector<1x1xf32> to vector<4x1xf32>
      %185 = arith.subf %171, %184 : vector<4x1xf32>
      %186 = arith.addf %185, %4 : vector<4x1xf32>
      %187 = vector.broadcast %149 : f32 to vector<4x1xf32>
      %188 = arith.mulf %186, %187 : vector<4x1xf32>
      %189 = arith.index_cast %104 : i32 to index
      %c0_84 = arith.constant 0 : index
      %c0_85 = arith.constant 0 : index
      %190 = vector.load %arg9[%189, %c0_84, %c0_85] : memref<3x4x1xf32, #tpu.memory_space<vmem>>, vector<1x4x1xf32>
      %191 = vector.shape_cast %190 : vector<1x4x1xf32> to vector<4x1xf32>
      %192 = vector.shape_cast %188 : vector<4x1xf32> to vector<1x4x1xf32>
      tpu.vector_store %arg9[%189, %c0_84, %c0_85], %192 {strides = array<i32>} : memref<3x4x1xf32, #tpu.memory_space<vmem>>, vector<1x4x1xf32>,
      %193 = vector.broadcast %153 : vector<1x1xf32> to vector<4x1xf32>
      %194 = arith.subf %167, %193 : vector<4x1xf32>
      %195 = arith.addf %194, %3 : vector<4x1xf32>
      %196 = vector.broadcast %149 : f32 to vector<4x1xf32>
      %197 = arith.mulf %195, %196 : vector<4x1xf32>
      %198 = arith.index_cast %104 : i32 to index
      %c0_86 = arith.constant 0 : index
      %c0_87 = arith.constant 0 : index
      %199 = vector.load %arg11[%198, %c0_86, %c0_87] : memref<3x4x1xf32, #tpu.memory_space<vmem>>, vector<1x4x1xf32>
      %200 = vector.shape_cast %199 : vector<1x4x1xf32> to vector<4x1xf32>
      %201 = vector.shape_cast %197 : vector<4x1xf32> to vector<1x4x1xf32>
      tpu.vector_store %arg11[%198, %c0_86, %c0_87], %201 {strides = array<i32>} : memref<3x4x1xf32, #tpu.memory_space<vmem>>, vector<1x4x1xf32>,
    } else {
    }
    %c6 = arith.constant 6 : index
    %c0_54 = arith.constant 0 : index
    %108 = vector.load %arg6[%c6, %c0_54] : memref<8x1024xf32, #tpu.memory_space<vmem>>, vector<1x1024xf32>
    %c6_55 = arith.constant 6 : index
    %c0_56 = arith.constant 0 : index
    %109 = vector.load %arg7[%c6_55, %c0_56] : memref<8x1024xf32, #tpu.memory_space<vmem>>, vector<1x1024xf32>
    %cst_57 = arith.constant -1.436000e-01 : f32
    %110 = vector.broadcast %cst_57 : f32 to vector<1x1024xf32>
    %111 = arith.mulf %110, %109 : vector<1x1024xf32>
    %112 = arith.addf %100, %111 : vector<1x1024xf32>
    %113 = math.sqrt %109 : vector<1x1024xf32>
    %cst_58 = arith.constant 1.213000e-01 : f32
    %114 = vector.broadcast %cst_58 : f32 to vector<1x1024xf32>
    %115 = arith.mulf %114, %113 : vector<1x1024xf32>
    %116 = arith.mulf %115, %108 : vector<1x1024xf32>
    %117 = arith.addf %112, %116 : vector<1x1024xf32>
    %c8_i32_59 = arith.constant 8 : i32
    %118 = arith.muli %arg0, %c8_i32_59 : i32
    %c6_i32 = arith.constant 6 : i32
    %119 = arith.addi %118, %c6_i32 : i32
    %120 = arith.index_cast %119 : i32 to index
    %121 = memref.load %arg1[%120] : memref<8xi32, #tpu.memory_space<smem>>
    %c0_i32_60 = arith.constant 0 : i32
    %122 = arith.cmpi sge, %121, %c0_i32_60 : i32
    %123 = arith.extui %122 : i1 to i32
    %c0_i32_61 = arith.constant 0 : i32
    %124 = arith.cmpi ne, %123, %c0_i32_61 : i32
    scf.if %124 {
      %143 = arith.index_cast %119 : i32 to index
      %144 = memref.load %arg2[%143] : memref<8xf32, #tpu.memory_space<smem>>
      %145 = math.exp %117 : vector<1x1024xf32>
      %146 = vector.broadcast %144 : f32 to vector<1x1024xf32>
      %147 = arith.mulf %146, %145 : vector<1x1024xf32>
      %148 = arith.index_cast %119 : i32 to index
      %149 = memref.load %arg3[%148] : memref<8xf32, #tpu.memory_space<smem>>
      %cst_72 = arith.constant dense<0.000000e+00> : vector<1xf32>
      %150 = vector.multi_reduction <add>, %147, %cst_72 [1] : vector<1x1024xf32> to vector<1xf32>
      %151 = vector.shape_cast %150 : vector<1xf32> to vector<1x1xf32>
      %cst_73 = arith.constant 1.024000e+03 : f32
      %152 = vector.broadcast %cst_73 : f32 to vector<1x1xf32>
      %153 = arith.divf %151, %152 : vector<1x1xf32>
      %154 = vector.broadcast %147 : vector<1x1024xf32> to vector<4x1024xf32>
      %155 = vector.broadcast %3 : vector<4x1xf32> to vector<4x1024xf32>
      %156 = arith.subf %154, %155 : vector<4x1024xf32>
      %cst_74 = arith.constant 0.000000e+00 : f32
      %157 = vector.broadcast %cst_74 : f32 to vector<4x1024xf32>
      %158 = arith.maximumf %156, %157 : vector<4x1024xf32>
      %159 = vector.broadcast %147 : vector<1x1024xf32> to vector<4x1024xf32>
      %160 = vector.broadcast %4 : vector<4x1xf32> to vector<4x1024xf32>
      %161 = arith.subf %159, %160 : vector<4x1024xf32>
      %cst_75 = arith.constant 0.000000e+00 : f32
      %162 = vector.broadcast %cst_75 : f32 to vector<4x1024xf32>
      %163 = arith.maximumf %161, %162 : vector<4x1024xf32>
      %cst_76 = arith.constant dense<0.000000e+00> : vector<4xf32>
      %164 = vector.multi_reduction <add>, %158, %cst_76 [1] : vector<4x1024xf32> to vector<4xf32>
      %165 = vector.shape_cast %164 : vector<4xf32> to vector<4x1xf32>
      %cst_77 = arith.constant 1.024000e+03 : f32
      %166 = vector.broadcast %cst_77 : f32 to vector<4x1xf32>
      %167 = arith.divf %165, %166 : vector<4x1xf32>
      %cst_78 = arith.constant dense<0.000000e+00> : vector<4xf32>
      %168 = vector.multi_reduction <add>, %163, %cst_78 [1] : vector<4x1024xf32> to vector<4xf32>
      %169 = vector.shape_cast %168 : vector<4xf32> to vector<4x1xf32>
      %cst_79 = arith.constant 1.024000e+03 : f32
      %170 = vector.broadcast %cst_79 : f32 to vector<4x1xf32>
      %171 = arith.divf %169, %170 : vector<4x1xf32>
      %172 = vector.broadcast %149 : f32 to vector<4x1xf32>
      %173 = arith.mulf %167, %172 : vector<4x1xf32>
      %174 = arith.index_cast %121 : i32 to index
      %c0_80 = arith.constant 0 : index
      %c0_81 = arith.constant 0 : index
      %175 = vector.load %arg8[%174, %c0_80, %c0_81] : memref<3x4x1xf32, #tpu.memory_space<vmem>>, vector<1x4x1xf32>
      %176 = vector.shape_cast %175 : vector<1x4x1xf32> to vector<4x1xf32>
      %177 = vector.shape_cast %173 : vector<4x1xf32> to vector<1x4x1xf32>
      tpu.vector_store %arg8[%174, %c0_80, %c0_81], %177 {strides = array<i32>} : memref<3x4x1xf32, #tpu.memory_space<vmem>>, vector<1x4x1xf32>,
      %178 = vector.broadcast %149 : f32 to vector<4x1xf32>
      %179 = arith.mulf %171, %178 : vector<4x1xf32>
      %180 = arith.index_cast %121 : i32 to index
      %c0_82 = arith.constant 0 : index
      %c0_83 = arith.constant 0 : index
      %181 = vector.load %arg10[%180, %c0_82, %c0_83] : memref<3x4x1xf32, #tpu.memory_space<vmem>>, vector<1x4x1xf32>
      %182 = vector.shape_cast %181 : vector<1x4x1xf32> to vector<4x1xf32>
      %183 = vector.shape_cast %179 : vector<4x1xf32> to vector<1x4x1xf32>
      tpu.vector_store %arg10[%180, %c0_82, %c0_83], %183 {strides = array<i32>} : memref<3x4x1xf32, #tpu.memory_space<vmem>>, vector<1x4x1xf32>,
      %184 = vector.broadcast %153 : vector<1x1xf32> to vector<4x1xf32>
      %185 = arith.subf %171, %184 : vector<4x1xf32>
      %186 = arith.addf %185, %4 : vector<4x1xf32>
      %187 = vector.broadcast %149 : f32 to vector<4x1xf32>
      %188 = arith.mulf %186, %187 : vector<4x1xf32>
      %189 = arith.index_cast %121 : i32 to index
      %c0_84 = arith.constant 0 : index
      %c0_85 = arith.constant 0 : index
      %190 = vector.load %arg9[%189, %c0_84, %c0_85] : memref<3x4x1xf32, #tpu.memory_space<vmem>>, vector<1x4x1xf32>
      %191 = vector.shape_cast %190 : vector<1x4x1xf32> to vector<4x1xf32>
      %192 = vector.shape_cast %188 : vector<4x1xf32> to vector<1x4x1xf32>
      tpu.vector_store %arg9[%189, %c0_84, %c0_85], %192 {strides = array<i32>} : memref<3x4x1xf32, #tpu.memory_space<vmem>>, vector<1x4x1xf32>,
      %193 = vector.broadcast %153 : vector<1x1xf32> to vector<4x1xf32>
      %194 = arith.subf %167, %193 : vector<4x1xf32>
      %195 = arith.addf %194, %3 : vector<4x1xf32>
      %196 = vector.broadcast %149 : f32 to vector<4x1xf32>
      %197 = arith.mulf %195, %196 : vector<4x1xf32>
      %198 = arith.index_cast %121 : i32 to index
      %c0_86 = arith.constant 0 : index
      %c0_87 = arith.constant 0 : index
      %199 = vector.load %arg11[%198, %c0_86, %c0_87] : memref<3x4x1xf32, #tpu.memory_space<vmem>>, vector<1x4x1xf32>
      %200 = vector.shape_cast %199 : vector<1x4x1xf32> to vector<4x1xf32>
      %201 = vector.shape_cast %197 : vector<4x1xf32> to vector<1x4x1xf32>
      tpu.vector_store %arg11[%198, %c0_86, %c0_87], %201 {strides = array<i32>} : memref<3x4x1xf32, #tpu.memory_space<vmem>>, vector<1x4x1xf32>,
    } else {
    }
    %c7 = arith.constant 7 : index
    %c0_62 = arith.constant 0 : index
    %125 = vector.load %arg6[%c7, %c0_62] : memref<8x1024xf32, #tpu.memory_space<vmem>>, vector<1x1024xf32>
    %c7_63 = arith.constant 7 : index
    %c0_64 = arith.constant 0 : index
    %126 = vector.load %arg7[%c7_63, %c0_64] : memref<8x1024xf32, #tpu.memory_space<vmem>>, vector<1x1024xf32>
    %cst_65 = arith.constant -1.436000e-01 : f32
    %127 = vector.broadcast %cst_65 : f32 to vector<1x1024xf32>
    %128 = arith.mulf %127, %126 : vector<1x1024xf32>
    %129 = arith.addf %117, %128 : vector<1x1024xf32>
    %130 = math.sqrt %126 : vector<1x1024xf32>
    %cst_66 = arith.constant 1.213000e-01 : f32
    %131 = vector.broadcast %cst_66 : f32 to vector<1x1024xf32>
    %132 = arith.mulf %131, %130 : vector<1x1024xf32>
    %133 = arith.mulf %132, %125 : vector<1x1024xf32>
    %134 = arith.addf %129, %133 : vector<1x1024xf32>
    %c8_i32_67 = arith.constant 8 : i32
    %135 = arith.muli %arg0, %c8_i32_67 : i32
    %c7_i32 = arith.constant 7 : i32
    %136 = arith.addi %135, %c7_i32 : i32
    %137 = arith.index_cast %136 : i32 to index
    %138 = memref.load %arg1[%137] : memref<8xi32, #tpu.memory_space<smem>>
    %c0_i32_68 = arith.constant 0 : i32
    %139 = arith.cmpi sge, %138, %c0_i32_68 : i32
    %140 = arith.extui %139 : i1 to i32
    %c0_i32_69 = arith.constant 0 : i32
    %141 = arith.cmpi ne, %140, %c0_i32_69 : i32
    scf.if %141 {
      %143 = arith.index_cast %136 : i32 to index
      %144 = memref.load %arg2[%143] : memref<8xf32, #tpu.memory_space<smem>>
      %145 = math.exp %134 : vector<1x1024xf32>
      %146 = vector.broadcast %144 : f32 to vector<1x1024xf32>
      %147 = arith.mulf %146, %145 : vector<1x1024xf32>
      %148 = arith.index_cast %136 : i32 to index
      %149 = memref.load %arg3[%148] : memref<8xf32, #tpu.memory_space<smem>>
      %cst_72 = arith.constant dense<0.000000e+00> : vector<1xf32>
      %150 = vector.multi_reduction <add>, %147, %cst_72 [1] : vector<1x1024xf32> to vector<1xf32>
      %151 = vector.shape_cast %150 : vector<1xf32> to vector<1x1xf32>
      %cst_73 = arith.constant 1.024000e+03 : f32
      %152 = vector.broadcast %cst_73 : f32 to vector<1x1xf32>
      %153 = arith.divf %151, %152 : vector<1x1xf32>
      %154 = vector.broadcast %147 : vector<1x1024xf32> to vector<4x1024xf32>
      %155 = vector.broadcast %3 : vector<4x1xf32> to vector<4x1024xf32>
      %156 = arith.subf %154, %155 : vector<4x1024xf32>
      %cst_74 = arith.constant 0.000000e+00 : f32
      %157 = vector.broadcast %cst_74 : f32 to vector<4x1024xf32>
      %158 = arith.maximumf %156, %157 : vector<4x1024xf32>
      %159 = vector.broadcast %147 : vector<1x1024xf32> to vector<4x1024xf32>
      %160 = vector.broadcast %4 : vector<4x1xf32> to vector<4x1024xf32>
      %161 = arith.subf %159, %160 : vector<4x1024xf32>
      %cst_75 = arith.constant 0.000000e+00 : f32
      %162 = vector.broadcast %cst_75 : f32 to vector<4x1024xf32>
      %163 = arith.maximumf %161, %162 : vector<4x1024xf32>
      %cst_76 = arith.constant dense<0.000000e+00> : vector<4xf32>
      %164 = vector.multi_reduction <add>, %158, %cst_76 [1] : vector<4x1024xf32> to vector<4xf32>
      %165 = vector.shape_cast %164 : vector<4xf32> to vector<4x1xf32>
      %cst_77 = arith.constant 1.024000e+03 : f32
      %166 = vector.broadcast %cst_77 : f32 to vector<4x1xf32>
      %167 = arith.divf %165, %166 : vector<4x1xf32>
      %cst_78 = arith.constant dense<0.000000e+00> : vector<4xf32>
      %168 = vector.multi_reduction <add>, %163, %cst_78 [1] : vector<4x1024xf32> to vector<4xf32>
      %169 = vector.shape_cast %168 : vector<4xf32> to vector<4x1xf32>
      %cst_79 = arith.constant 1.024000e+03 : f32
      %170 = vector.broadcast %cst_79 : f32 to vector<4x1xf32>
      %171 = arith.divf %169, %170 : vector<4x1xf32>
      %172 = vector.broadcast %149 : f32 to vector<4x1xf32>
      %173 = arith.mulf %167, %172 : vector<4x1xf32>
      %174 = arith.index_cast %138 : i32 to index
      %c0_80 = arith.constant 0 : index
      %c0_81 = arith.constant 0 : index
      %175 = vector.load %arg8[%174, %c0_80, %c0_81] : memref<3x4x1xf32, #tpu.memory_space<vmem>>, vector<1x4x1xf32>
      %176 = vector.shape_cast %175 : vector<1x4x1xf32> to vector<4x1xf32>
      %177 = vector.shape_cast %173 : vector<4x1xf32> to vector<1x4x1xf32>
      tpu.vector_store %arg8[%174, %c0_80, %c0_81], %177 {strides = array<i32>} : memref<3x4x1xf32, #tpu.memory_space<vmem>>, vector<1x4x1xf32>,
      %178 = vector.broadcast %149 : f32 to vector<4x1xf32>
      %179 = arith.mulf %171, %178 : vector<4x1xf32>
      %180 = arith.index_cast %138 : i32 to index
      %c0_82 = arith.constant 0 : index
      %c0_83 = arith.constant 0 : index
      %181 = vector.load %arg10[%180, %c0_82, %c0_83] : memref<3x4x1xf32, #tpu.memory_space<vmem>>, vector<1x4x1xf32>
      %182 = vector.shape_cast %181 : vector<1x4x1xf32> to vector<4x1xf32>
      %183 = vector.shape_cast %179 : vector<4x1xf32> to vector<1x4x1xf32>
      tpu.vector_store %arg10[%180, %c0_82, %c0_83], %183 {strides = array<i32>} : memref<3x4x1xf32, #tpu.memory_space<vmem>>, vector<1x4x1xf32>,
      %184 = vector.broadcast %153 : vector<1x1xf32> to vector<4x1xf32>
      %185 = arith.subf %171, %184 : vector<4x1xf32>
      %186 = arith.addf %185, %4 : vector<4x1xf32>
      %187 = vector.broadcast %149 : f32 to vector<4x1xf32>
      %188 = arith.mulf %186, %187 : vector<4x1xf32>
      %189 = arith.index_cast %138 : i32 to index
      %c0_84 = arith.constant 0 : index
      %c0_85 = arith.constant 0 : index
      %190 = vector.load %arg9[%189, %c0_84, %c0_85] : memref<3x4x1xf32, #tpu.memory_space<vmem>>, vector<1x4x1xf32>
      %191 = vector.shape_cast %190 : vector<1x4x1xf32> to vector<4x1xf32>
      %192 = vector.shape_cast %188 : vector<4x1xf32> to vector<1x4x1xf32>
      tpu.vector_store %arg9[%189, %c0_84, %c0_85], %192 {strides = array<i32>} : memref<3x4x1xf32, #tpu.memory_space<vmem>>, vector<1x4x1xf32>,
      %193 = vector.broadcast %153 : vector<1x1xf32> to vector<4x1xf32>
      %194 = arith.subf %167, %193 : vector<4x1xf32>
      %195 = arith.addf %194, %3 : vector<4x1xf32>
      %196 = vector.broadcast %149 : f32 to vector<4x1xf32>
      %197 = arith.mulf %195, %196 : vector<4x1xf32>
      %198 = arith.index_cast %138 : i32 to index
      %c0_86 = arith.constant 0 : index
      %c0_87 = arith.constant 0 : index
      %199 = vector.load %arg11[%198, %c0_86, %c0_87] : memref<3x4x1xf32, #tpu.memory_space<vmem>>, vector<1x4x1xf32>
      %200 = vector.shape_cast %199 : vector<1x4x1xf32> to vector<4x1xf32>
      %201 = vector.shape_cast %197 : vector<4x1xf32> to vector<1x4x1xf32>
      tpu.vector_store %arg11[%198, %c0_86, %c0_87], %201 {strides = array<i32>} : memref<3x4x1xf32, #tpu.memory_space<vmem>>, vector<1x4x1xf32>,
    } else {
    }
    %c0_70 = arith.constant 0 : index
    %c0_71 = arith.constant 0 : index
    %142 = vector.load %arg12[%c0_70, %c0_71] : memref<1x1024xf32, #tpu.memory_space<vmem>>, vector<1x1024xf32>
    tpu.vector_store %arg12[%c0_70, %c0_71], %134 {strides = array<i32>} : memref<1x1024xf32, #tpu.memory_space<vmem>>, vector<1x1024xf32>,
    return
  }
  func.func @transform_0(%arg0: i32) -> i32 {
    %c0_i32 = arith.constant 0 : i32
    %c0_i32_0 = arith.constant 0 : i32
    return %c0_i32 : i32
  }
  func.func @transform_1(%arg0: i32) -> i32 {
    %c0_i32 = arith.constant 0 : i32
    %c0_i32_0 = arith.constant 0 : i32
    return %c0_i32 : i32
  }
  func.func @transform_2(%arg0: i32) -> i32 {
    %c0_i32 = arith.constant 0 : i32
    %c0_i32_0 = arith.constant 0 : i32
    return %c0_i32 : i32
  }
  func.func @transform_3(%arg0: i32) -> (i32, i32) {
    %c0_i32 = arith.constant 0 : i32
    %c0_i32_0 = arith.constant 0 : i32
    %c0_i32_1 = arith.constant 0 : i32
    return %c0_i32, %c0_i32_0 : i32, i32
  }
  func.func @transform_4(%arg0: i32) -> (i32, i32) {
    %c0_i32 = arith.constant 0 : i32
    %c0_i32_0 = arith.constant 0 : i32
    %c0_i32_1 = arith.constant 0 : i32
    return %c0_i32, %c0_i32_0 : i32, i32
  }
  func.func @transform_5(%arg0: i32) -> (i32, i32) {
    %c0_i32 = arith.constant 0 : i32
    %c0_i32_0 = arith.constant 0 : i32
    return %arg0, %c0_i32 : i32, i32
  }
  func.func @transform_6(%arg0: i32) -> (i32, i32) {
    %c0_i32 = arith.constant 0 : i32
    %c0_i32_0 = arith.constant 0 : i32
    return %arg0, %c0_i32 : i32, i32
  }
  func.func @transform_7(%arg0: i32) -> (i32, i32, i32) {
    %c0_i32 = arith.constant 0 : i32
    %c0_i32_0 = arith.constant 0 : i32
    %c0_i32_1 = arith.constant 0 : i32
    %c0_i32_2 = arith.constant 0 : i32
    return %c0_i32, %c0_i32_0, %c0_i32_1 : i32, i32, i32
  }
  func.func @transform_8(%arg0: i32) -> (i32, i32, i32) {
    %c0_i32 = arith.constant 0 : i32
    %c0_i32_0 = arith.constant 0 : i32
    %c0_i32_1 = arith.constant 0 : i32
    %c0_i32_2 = arith.constant 0 : i32
    return %c0_i32, %c0_i32_0, %c0_i32_1 : i32, i32, i32
  }
  func.func @transform_9(%arg0: i32) -> (i32, i32, i32) {
    %c0_i32 = arith.constant 0 : i32
    %c0_i32_0 = arith.constant 0 : i32
    %c0_i32_1 = arith.constant 0 : i32
    %c0_i32_2 = arith.constant 0 : i32
    return %c0_i32, %c0_i32_0, %c0_i32_1 : i32, i32, i32
  }
  func.func @transform_10(%arg0: i32) -> (i32, i32, i32) {
    %c0_i32 = arith.constant 0 : i32
    %c0_i32_0 = arith.constant 0 : i32
    %c0_i32_1 = arith.constant 0 : i32
    %c0_i32_2 = arith.constant 0 : i32
    return %c0_i32, %c0_i32_0, %c0_i32_1 : i32, i32, i32
  }
}

</mosaic_0001>

<bundles_post_ra>
// kernel: tpu_custom_call.1
= control target key start
LH: loop header
LB: loop body
LE: loop exit
PB: predicated region body
PF: predicated region fallthrough
CT: control target
= control target key end

     0   :  { %16 = vsyncpa [#allocation5], 0  ;;  %s2675_s0 = inlined_call_operand.vmem [shape: s32[8], index: 0, kind: input, shape index: {}]   ;;  %s2676_s1 = inlined_call_operand.vmem [shape: f32[8], index: 1, kind: input, shape index: {}]   ;;  %s2677_s2 = inlined_call_operand.vmem [shape: f32[8], index: 2, kind: input, shape index: {}]   ;;  %s2678_s3 = inlined_call_operand.vmem [shape: f32[4,1], index: 3, kind: input, shape index: {}]   ;;  %s2679_s4 = inlined_call_operand.vmem [shape: f32[4,1], index: 4, kind: input, shape index: {}]   ;;  %s2680_s5 = inlined_call_operand.hbm [shape: f32[8,1024], index: 5, kind: input, shape index: {}]   ;;  %s2681_s6 = inlined_call_operand.hbm [shape: f32[8,1024], index: 6, kind: input, shape index: {}]   ;;  %s2682_s7 = inlined_call_operand.vmem [shape: f32[3,4,1], index: 7, kind: output, shape index: {0}]   ;;  %s2683_s8 = inlined_call_operand.vmem [shape: f32[3,4,1], index: 8, kind: output, shape index: {1}]   ;;  %s2684_s9 = inlined_call_operand.vmem [shape: f32[3,4,1], index: 9, kind: output, shape index: {2}]   ;;  %s2685_s10 = inlined_call_operand.vmem [shape: f32[3,4,1], index: 10, kind: output, shape index: {3}]  }
   0x1   :  { %17 = vsyncpa [#allocation7], 0 }
   0x2   :  { %18 = vsyncpa [#allocation4], 0  ;;  %s36_s15 = sshll.u32 %s2676_s1, 4  ;;  %s37_s15 = int_to_ptr.vmem [resolvable:$true] %s36_s15 }
   0x3   :  { %19 = vsyncpa [#allocation11], 0  ;;  %s26_s18 = sshll.u32 %s2675_s0, 4  ;;  %s1832_s19 = scalar_lea.vmem %s37_s15, 16  ;;  %s27_s18 = int_to_ptr.vmem [resolvable:$true] %s26_s18 }
   0x4   :  { %p1833_p0 = scmp.ne.s32.totalorder %s37_s15, %s1832_s19  ;;  %p1837_p1 = scmp.lt.s32.totalorder %s37_s15, %s37_s15 }
   0x5   :  { %p1838_p2 = scmp.lt.s32.totalorder %s1832_s19, %s1832_s19 }
   0x7   :  { %p1839_p3 = por %p1838_p2, %p1837_p1 }
   0x9   :  { %p1840_p4 = pnand %p1839_p3, %p1833_p0 }
   0xb   :  { %1843 = shalt.err (!%p1840_p4)
}
   0xc   :  { %s1920_s20 = smov [#allocation6]   ;;  %s1844_s21 = scalar_lea.vmem %s27_s18, 16 }
   0xd   :  { %39 = dma.vmem_to_smem %s37_s15, 16, %s1920_s20, [#allocation7]  }
   0xe   :  { %p1845_p5 = scmp.ne.s32.totalorder %s27_s18, %s1844_s21  ;;  %p1849_p6 = scmp.lt.s32.totalorder %s27_s18, %s27_s18 }
   0xf   :  { %p1850_p7 = scmp.lt.s32.totalorder %s1844_s21, %s1844_s21 }
  0x11   :  { %p1851_p8 = por %p1850_p7, %p1849_p6 }
  0x13   :  { %p1852_p9 = pnand %p1851_p8, %p1845_p5 }
  0x15   :  { %1855 = shalt.err (!%p1852_p9)
}
  0x16   :  { %s1921_s1 = smov [#allocation3]   ;;  %s46_s23 = sshll.u32 %s2677_s2, 4  ;;  %s47_s23 = int_to_ptr.vmem [resolvable:$true] %s46_s23 }
  0x17   :  { %29 = dma.vmem_to_smem %s27_s18, 16, %s1921_s1, [#allocation5]  }
  0x18   :  { %s1856_s24 = scalar_lea.vmem %s47_s23, 16  ;;  %p1861_p11 = scmp.lt.s32.totalorder %s47_s23, %s47_s23 }
  0x19   :  { %p1857_p10 = scmp.ne.s32.totalorder %s47_s23, %s1856_s24  ;;  %p1862_p12 = scmp.lt.s32.totalorder %s1856_s24, %s1856_s24 }
  0x1b   :  { %p1863_p13 = por %p1862_p12, %p1861_p11 }
  0x1d   :  { %p1864_p0 = pnand %p1863_p13, %p1857_p10 }
  0x1f   :  { %1867 = shalt.err (!%p1864_p0)
}
  0x20   :  { %s1922_s25 = smov [#allocation8]   ;;  %s1923_s26 = smov [#allocation9]  }
  0x21   :  { %49 = dma.vmem_to_smem %s47_s23, 16, %s1922_s25, [#allocation7]  }
  0x22   :  { %s60_s27 = sshll.u32 %s1923_s26, 4  ;;  %s1924_s28 = smov [#allocation10]   ;;  %s61_s27 = int_to_ptr.vmem [resolvable:$true] %s60_s27 }
  0x23   :  { %s70_s29 = sshll.u32 %s1924_s28, 4  ;;  %s1868_s12 = scalar_lea.hbm %s2680_s5, 1024  ;;  %s71_s29 = int_to_ptr.vmem [resolvable:$true] %s70_s29 }
  0x24   :  { %p1869_p1 = scmp.ne.s32.totalorder %s2680_s5, %s1868_s12  ;;  %p1872_p2 = scmp.lt.u32.totalorder %s1868_s12, %s2680_s5 }
  0x26   :  { %p1874_p3 = pnand %p1872_p2, %p1869_p1 }
  0x28   :  { %1877 = shalt.err (!%p1874_p3)
}
  0x29   :  { %s1878_s16 = scalar_lea.vmem %s61_s27, 1024  ;;  %p1883_p5 = scmp.lt.s32.totalorder %s61_s27, %s61_s27 }
  0x2a   :  { %p1879_p4 = scmp.ne.s32.totalorder %s61_s27, %s1878_s16  ;;  %p1884_p6 = scmp.lt.s32.totalorder %s1878_s16, %s1878_s16 }
  0x2c   :  { %p1885_p7 = por %p1884_p6, %p1883_p5 }
  0x2e   :  { %p1886_p8 = pnand %p1885_p7, %p1879_p4 }
  0x30   :  { %1889 = shalt.err (!%p1886_p8)
}
  0x31   :  { %63 = dma.hbm_to_vmem [thread:$0]  %s2680_s5, 1024, %s61_s27, [#allocation4]  }
  0x32   :  { %s1890_s21 = scalar_lea.hbm %s2681_s6, 1024 }
  0x33   :  { %p1891_p9 = scmp.ne.s32.totalorder %s2681_s6, %s1890_s21  ;;  %p1894_p10 = scmp.lt.u32.totalorder %s1890_s21, %s2681_s6 }
  0x35   :  { %p1896_p11 = pnand %p1894_p10, %p1891_p9 }
  0x37   :  { %1899 = shalt.err (!%p1896_p11)
}
  0x38   :  { %s1900_s24 = scalar_lea.vmem %s71_s29, 1024  ;;  %p1905_p13 = scmp.lt.s32.totalorder %s71_s29, %s71_s29 }
  0x39   :  { %p1901_p12 = scmp.ne.s32.totalorder %s71_s29, %s1900_s24  ;;  %p1906_p0 = scmp.lt.s32.totalorder %s1900_s24, %s1900_s24 }
  0x3b   :  { %p1907_p1 = por %p1906_p0, %p1905_p13 }
  0x3d   :  { %p1908_p2 = pnand %p1907_p1, %p1901_p12 }
  0x3f   :  { %1911 = shalt.err (!%p1908_p2)
}
  0x40   :  { %73 = dma.hbm_to_vmem [thread:$0]  %s2681_s6, 1024, %s71_s29, [#allocation11]  }
  0x41   :  { %1912 = dma.done.wait [#allocation5], 16  }
  0x42   :  { %1913 = vsyncadd [#allocation5], 4294967280 }
  0x43   :  { %1914 = dma.done.wait [#allocation7], 32  }
  0x44   :  { %1915 = vsyncadd [#allocation7], 4294967264 }
  0x45   :  { %1916 = dma.done.wait [#allocation4], 1024  }
  0x46   :  { %1917 = vsyncadd [#allocation4], 4294966272 }
  0x47   :  { %1918 = dma.done.wait [#allocation11], 1024  }
  0x48   :  { %1919 = vsyncadd [#allocation11], 4294966272 }
  0x49   :  { %89 = sfence }
  0x4a   :  { %v2024_v0 = vld [vmem:[%s2678_s3] sm:$0xf]  ;;  %s2031_s6 = sld [smem:[#allocation3]] }
  0x4b   :  { %v101_v1 = vld [vmem:[#allocation10] ss:$8 sm:$0xf] }
  0x4c   :  { %v102_v2 = vld [vmem:[#allocation10] ss:$8 sm:$0xf0] }
  0x4d   :  { %v2029_v3 = vld [vmem:[%s2679_s4] sm:$0xf]  ;;  %v103_v4 = vor.u32 %v102_v2, %v101_v1 }
  0x4e   :  { %v98_v5 = vld [vmem:[#allocation9] ss:$8 sm:$0xf] }
  0x4f   :  { %1792 = vrsqrt.f32 %v103_v4  ;;  %v99_v7 = vld [vmem:[#allocation9] ss:$8 sm:$0xf0]  ;;  %vm108_vm0 = vcmp.eq.f32.partialorder %v103_v4, inf  ;;  %v111_v8 = vand.u32 2147483648, %v103_v4  ;;  %vm110_vm1 = vcmp.eq.f32.partialorder %v103_v4, 0.0 }
  0x50   :  { %v104_v9 = vmul.f32 -0.1436, %v103_v4  ;;  %v100_v11 = vor.u32 %v99_v7, %v98_v5  ;;  %p1741_p3 = scmp.lt.s32.totalorder %s2031_s6, 0 }
  0x51   :  { %v1925_v18 = vmov (!%p1741_p3), 0   ;;  %s122_s3 = sld [smem:[#allocation6]] (!%p1741_p3)  ;;  %v129_v19 = vlaneseq (!%p1741_p3)  ;;  %vm169_vm2 = vcmask (!%p1741_p3), 1040384   ;;  %vm231_vm3 = vcmask (!%p1741_p3), 1043456   ;;  %s1742_s29 = sshll.u32 (!%p1741_p3), %s2031_s6, 2 }
  0x52   :  { %1794 = vset.pattern.permute.xlu0 (!%p1741_p3), %v1925_v18  ;;  %s127_s4 = sld [smem:[#allocation8]] (!%p1741_p3)  ;;  %s271_s2 = scalar_lea.vmem (!%p1741_p3), %s2682_s7, %s1742_s29  ;;  %vm272_vm4 = vcmask (!%p1741_p3), 3072  }
  0x53   :  { %191 = vperm.xlu0 (!%p1741_p3), %1794, %v2024_v0   ;;  %v2039_v20 = vshrl.u32 (!%p1741_p3), %v129_v19, 7  ;;  %s289_s15 = scalar_lea.vmem (!%p1741_p3), %s2685_s10, %s1742_s29  ;;  %s275_s18 = scalar_lea.vmem (!%p1741_p3), %s2684_s9, %s1742_s29 }
  0x54   :  { %s284_s21 = scalar_lea.vmem (!%p1741_p3), %s2683_s8, %s1742_s29 }
  0x55   :  { %v131_v22 = vsub.s32 (!%p1741_p3), 0, %v2039_v20  ;;  %v135_v23 = vsub.s32 (!%p1741_p3), 1, %v2039_v20  ;;  %v139_v24 = vsub.s32 (!%p1741_p3), 2, %v2039_v20  ;;  %v143_v27 = vsub.s32 (!%p1741_p3), 3, %v2039_v20 }
  0x56   :  { %v147_v31 = vsub.s32 (!%p1741_p3), 4, %v2039_v20  ;;  %v151_v32 = vsub.s32 (!%p1741_p3), 5, %v2039_v20  ;;  %v155_v39 = vsub.s32 (!%p1741_p3), 6, %v2039_v20  ;;  %v159_v43 = vsub.s32 (!%p1741_p3), 7, %v2039_v20 }
  0x57   :  { %212 = vperm.xlu0 (!%p1741_p3), %1794, %v2029_v3   ;;  %v125_v21 = vstv (!%p1741_p3), %s122_s3 }
  0x59   :  { %v1793_v6 = vpop.eup %1792 }
  0x5a   :  { %v107_v10 = vmul.f32 %v1793_v6, %v103_v4 }
  0x5c   :  { %v109_v12 = vsel %vm108_vm0, %v103_v4, %v107_v10  ;;  %121 = sbr.rel (%p1741_p3) target bundleno = 386 (0x182), region = 57 }
  0x5d   :  { %v112_v13 = vsel %vm110_vm1, %v111_v8, %v109_v12 }
  0x5e   :  { %v113_v14 = vmul.f32 0.1213, %v112_v13 }
  0x60   :  { %v114_v15 = vmul.f32 %v113_v14, %v100_v11 }
  0x62   :  { %v2033_v16 = vadd.f32 %v114_v15, %v104_v9 }
  0x64   :  { %v123_v17 = vmul.f32 1.442695, %v2033_v16 }
  0x66   :  { %1795 = vpow2.f32 %v123_v17 }
  0x70   :  { %v1796_v25 = vpop.eup %1795 }
  0x71   :  { %v126_v26 = vmul.f32 %v1796_v25, %v125_v21 }
  0x73   :  { %v132_v28 = vrot.slane %v126_v26, %v131_v22  ;;  %v136_v29 = vrot.slane %v126_v26, %v135_v23  ;;  %v140_v30 = vrot.slane %v126_v26, %v139_v24  ;;  %v144_v33 = vrot.slane %v126_v26, %v143_v27 }
  0x74   :  { %v148_v38 = vrot.slane %v126_v26, %v147_v31  ;;  %v2054_v42 = vrot.slane %v126_v26, %v151_v32  ;;  %v2058_v46 = vrot.slane %v126_v26, %v155_v39  ;;  %v2062_v49 = vrot.slane %v126_v26, %v159_v43 }
  0x75   :  { %v170_v34 = vsel %vm169_vm2, %v132_v28, 0.0  ;;  %v171_v35 = vsel %vm169_vm2, %v136_v29, 0.0  ;;  %v173_v36 = vsel %vm169_vm2, %v140_v30, 0.0  ;;  %v175_v40 = vsel %vm169_vm2, %v144_v33, 0.0 }
  0x76   :  { %v172_v37 = vadd.f32 %v171_v35, %v170_v34  ;;  %v177_v44 = vsel %vm169_vm2, %v148_v38, 0.0  ;;  %v179_v47 = vsel %vm169_vm2, %v2054_v42, 0.0  ;;  %v181_v50 = vsel %vm169_vm2, %v2058_v46, 0.0 }
  0x77   :  { %v183_v52 = vsel %vm169_vm2, %v2062_v49, 0.0 }
  0x78   :  { %v174_v41 = vadd.f32 %v173_v36, %v172_v37 }
  0x7a   :  { %v176_v45 = vadd.f32 %v175_v40, %v174_v41 }
  0x7c   :  { %v178_v48 = vadd.f32 %v177_v44, %v176_v45 }
  0x7e   :  { %v180_v51 = vadd.f32 %v179_v47, %v178_v48 }
  0x80   :  { %v182_v53 = vadd.f32 %v181_v50, %v180_v51 }
  0x82   :  { %v184_v54 = vadd.f32 %v183_v52, %v182_v53 }
  0x84   :  { %185 = vadd.xlane.f32.xlu1 %v184_v54 }
  0xd2   :  { %v192_v55 = vpop.permute.xlu0 %191 }
  0xd3   :  { %v194_v56 = vsub.f32 %v132_v28, %v192_v55  ;;  %v195_v57 = vsub.f32 %v136_v29, %v192_v55  ;;  %v196_v58 = vsub.f32 %v140_v30, %v192_v55  ;;  %v197_v59 = vsub.f32 %v144_v33, %v192_v55 }
  0xd4   :  { %v198_v60 = vsub.f32 %v148_v38, %v192_v55  ;;  %v199_v2 = vsub.f32 %v2054_v42, %v192_v55  ;;  %v200_v7 = vsub.f32 %v2058_v46, %v192_v55  ;;  %v201_v14 = vsub.f32 %v2062_v49, %v192_v55 }
  0xd5   :  { %v202_v61 = vmax.f32 %v194_v56, 0.0  ;;  %v203_v62 = vmax.f32 %v195_v57, 0.0  ;;  %v204_v63 = vmax.f32 %v196_v58, 0.0  ;;  %v205_v4 = vmax.f32 %v197_v59, 0.0 }
  0xd6   :  { %v213_v1 = vpop.permute.xlu0 %212  ;;  %v206_v8 = vmax.f32 %v198_v60, 0.0  ;;  %v207_v18 = vmax.f32 %v199_v2, 0.0  ;;  %v208_v27 = vmax.f32 %v200_v7, 0.0 }
  0xd7   :  { %v232_v5 = vsel %vm231_vm3, %v202_v61, 0.0  ;;  %v233_v6 = vsel %vm231_vm3, %v203_v62, 0.0  ;;  %v235_v10 = vsel %vm231_vm3, %v204_v63, 0.0  ;;  %v215_v11 = vsub.f32 %v132_v28, %v213_v1 }
  0xd8   :  { %v234_v9 = vadd.f32 %v233_v6, %v232_v5  ;;  %v216_v12 = vsub.f32 %v136_v29, %v213_v1  ;;  %v217_v13 = vsub.f32 %v140_v30, %v213_v1  ;;  %v218_v17 = vsub.f32 %v144_v33, %v213_v1 }
  0xd9   :  { %v237_v19 = vsel %vm231_vm3, %v205_v4, 0.0  ;;  %v223_v21 = vmax.f32 %v215_v11, 0.0  ;;  %v219_v25 = vsub.f32 %v148_v38, %v213_v1  ;;  %v239_v31 = vsel %vm231_vm3, %v206_v8, 0.0 }
  0xda   :  { %v236_v15 = vadd.f32 %v235_v10, %v234_v9  ;;  %v224_v23 = vmax.f32 %v216_v12, 0.0  ;;  %v225_v26 = vmax.f32 %v217_v13, 0.0  ;;  %v220_v29 = vsub.f32 %v2054_v42, %v213_v1 }
  0xdb   :  { %v250_v32 = vsel %vm231_vm3, %v223_v21, 0.0  ;;  %v226_v30 = vmax.f32 %v218_v17, 0.0  ;;  %v209_v33 = vmax.f32 %v201_v14, 0.0  ;;  %v241_v35 = vsel %vm231_vm3, %v207_v18, 0.0 }
  0xdc   :  { %v238_v24 = vadd.f32 %v237_v19, %v236_v15  ;;  %v251_v34 = vsel %vm231_vm3, %v224_v23, 0.0  ;;  %v221_v39 = vsub.f32 %v2058_v46, %v213_v1  ;;  %v227_v38 = vmax.f32 %v219_v25, 0.0 }
  0xdd   :  { %v252_v36 = vadd.f32 %v251_v34, %v250_v32  ;;  %v253_v40 = vsel %vm231_vm3, %v225_v26, 0.0  ;;  %v243_v41 = vsel %vm231_vm3, %v208_v27, 0.0  ;;  %v222_v45 = vsub.f32 %v2062_v49, %v213_v1 }
  0xde   :  { %v240_v28 = vadd.f32 %v239_v31, %v238_v24  ;;  %v228_v42 = vmax.f32 %v220_v29, 0.0  ;;  %v255_v47 = vsel %vm231_vm3, %v226_v30, 0.0  ;;  %v245_v48 = vsel %vm231_vm3, %v209_v33, 0.0 }
  0xdf   :  { %v254_v43 = vadd.f32 %v253_v40, %v252_v36  ;;  %v229_v52 = vmax.f32 %v221_v39, 0.0  ;;  %v257_v46 = vsel %vm231_vm3, %v227_v38, 0.0  ;;  %v230_v54 = vmax.f32 %v222_v45, 0.0 }
  0xe0   :  { %v242_v37 = vadd.f32 %v241_v35, %v240_v28  ;;  %v259_v55 = vsel %vm231_vm3, %v228_v42, 0.0  ;;  %v268_v63 = vstv %s127_s4 }
  0xe1   :  { %v256_v50 = vadd.f32 %v255_v47, %v254_v43  ;;  %v261_v57 = vsel %vm231_vm3, %v229_v52, 0.0  ;;  %v263_v58 = vsel %vm231_vm3, %v230_v54, 0.0 }
  0xe2   :  { %v244_v44 = vadd.f32 %v243_v41, %v242_v37 }
  0xe3   :  { %v258_v53 = vadd.f32 %v257_v46, %v256_v50 }
  0xe4   :  { %v246_v51 = vadd.f32 %v245_v48, %v244_v44 }
  0xe5   :  { %v260_v56 = vadd.f32 %v259_v55, %v258_v53 }
  0xe6   :  { %247 = vadd.xlane.f32.xlu1 %v246_v51 }
  0xe7   :  { %v262_v49 = vadd.f32 %v261_v57, %v260_v56 }
  0xe9   :  { %v264_v59 = vadd.f32 %v263_v58, %v262_v49 }
  0xeb   :  { %265 = vadd.xlane.f32.xlu0 %v264_v59 }
 0x111   :  { %v186_v60 = vpop.xlane.xlu1 %185 }
 0x112   :  { %v188_v61 = vmul.f32 0.0009765625, %v186_v60 }
 0x114   :  { %v280_v62 = vrot.slane %v188_v61, %v131_v22 }
 0x173   :  { %v248_v1 = vpop.xlane.xlu1 %247 }
 0x174   :  { %v249_v2 = vmul.f32 0.0009765625, %v248_v1 }
 0x176   :  { %v269_v4 = vmul.f32 %v268_v63, %v249_v2  ;;  %v286_v5 = vsub.f32 %v249_v2, %v280_v62 }
 0x178   :  { %273 = vst.msk [vmem:[%s271_s2] sm:$0xf] %vm272_vm4, %v269_v4  ;;  %v287_v6 = vadd.f32 %v286_v5, %v2024_v0  ;;  %v266_v22 = vpop.xlane.xlu0 %265 }
 0x179   :  { %v267_v7 = vmul.f32 0.0009765625, %v266_v22 }
 0x17a   :  { %v288_v20 = vmul.f32 %v287_v6, %v268_v63 }
 0x17b   :  { %v274_v8 = vmul.f32 %v268_v63, %v267_v7  ;;  %v281_v9 = vsub.f32 %v267_v7, %v280_v62 }
 0x17c   :  { %290 = vst.msk [vmem:[%s289_s15] sm:$0xf] %vm272_vm4, %v288_v20 }
 0x17d   :  { %276 = vst.msk [vmem:[%s275_s18] sm:$0xf] %vm272_vm4, %v274_v8  ;;  %v282_v10 = vadd.f32 %v281_v9, %v2029_v3 }
 0x17f   :  { %v283_v11 = vmul.f32 %v282_v10, %v268_v63 }
 0x181   :  { %285 = vst.msk [vmem:[%s284_s21] sm:$0xf] %vm272_vm4, %v283_v11 }
 0x182 PF:  { %v296_v12 = vld [vmem:[#allocation10 + $0x1] ss:$8 sm:$0xf]  ;;  %s2111_s1 = sld [smem:[#allocation3 + $0x1]] }
 0x183   :  { %v297_v13 = vld [vmem:[#allocation10 + $0x1] ss:$8 sm:$0xf0] }
 0x184   :  { %v298_v14 = vor.u32 %v297_v13, %v296_v12  ;;  %v292_v15 = vld [vmem:[#allocation9 + $0x1] ss:$8 sm:$0xf] }
 0x185   :  { %v293_v18 = vld [vmem:[#allocation9 + $0x1] ss:$8 sm:$0xf0] }
 0x186   :  { %1797 = vrsqrt.f32 %v298_v14  ;;  %vm303_vm5 = vcmp.eq.f32.partialorder %v298_v14, inf  ;;  %v306_v19 = vand.u32 2147483648, %v298_v14  ;;  %v299_v21 = vmul.f32 -0.1436, %v298_v14 }
 0x187   :  { %vm305_vm6 = vcmp.eq.f32.partialorder %v298_v14, 0.0  ;;  %v294_v24 = vor.u32 %v293_v18, %v292_v15 }
 0x188   :  { %v300_v27 = vadd.f32 %v299_v21, %v2033_v16  ;;  %p1744_p4 = scmp.lt.s32.totalorder %s2111_s1, 0 }
 0x189   :  { %v1926_v30 = vmov (!%p1744_p4), 0   ;;  %s1745_s0 = sld [smem:[#allocation6 + $0x1]] (!%p1744_p4)  ;;  %v324_v34 = vlaneseq (!%p1744_p4)  ;;  %vm364_vm7 = vcmask (!%p1744_p4), 1040384   ;;  %vm426_vm8 = vcmask (!%p1744_p4), 1043456   ;;  %s1747_s23 = sshll.u32 (!%p1744_p4), %s2111_s1, 2 }
 0x18a   :  { %1799 = vset.pattern.permute.xlu0 (!%p1744_p4), %v1926_v30  ;;  %s1746_s22 = sld [smem:[#allocation8 + $0x1]] (!%p1744_p4)  ;;  %s466_s25 = scalar_lea.vmem (!%p1744_p4), %s2682_s7, %s1747_s23  ;;  %vm467_vm9 = vcmask (!%p1744_p4), 3072  }
 0x18b   :  { %386 = vperm.xlu0 (!%p1744_p4), %1799, %v2024_v0   ;;  %v2120_v33 = vshrl.u32 (!%p1744_p4), %v324_v34, 7  ;;  %s484_s28 = scalar_lea.vmem (!%p1744_p4), %s2685_s10, %s1747_s23  ;;  %s470_s3 = scalar_lea.vmem (!%p1744_p4), %s2684_s9, %s1747_s23 }
 0x18c   :  { %s479_s11 = scalar_lea.vmem (!%p1744_p4), %s2683_s8, %s1747_s23 }
 0x18d   :  { %v326_v35 = vsub.s32 (!%p1744_p4), 0, %v2120_v33  ;;  %v330_v36 = vsub.s32 (!%p1744_p4), 1, %v2120_v33  ;;  %v334_v37 = vsub.s32 (!%p1744_p4), 2, %v2120_v33  ;;  %v338_v40 = vsub.s32 (!%p1744_p4), 3, %v2120_v33 }
 0x18e   :  { %v342_v45 = vsub.s32 (!%p1744_p4), 4, %v2120_v33  ;;  %v346_v42 = vsub.s32 (!%p1744_p4), 5, %v2120_v33  ;;  %v350_v53 = vsub.s32 (!%p1744_p4), 6, %v2120_v33  ;;  %v354_v57 = vsub.s32 (!%p1744_p4), 7, %v2120_v33 }
 0x18f   :  { %407 = vperm.xlu0 (!%p1744_p4), %1799, %v2029_v3   ;;  %v320_v16 = vstv (!%p1744_p4), %s1745_s0 }
 0x190   :  { %v1798_v17 = vpop.eup %1797 }
 0x191   :  { %v302_v23 = vmul.f32 %v1798_v17, %v298_v14 }
 0x193   :  { %v304_v25 = vsel %vm303_vm5, %v298_v14, %v302_v23  ;;  %316 = sbr.rel (%p1744_p4) target bundleno = 698 (0x2ba), region = 61 }
 0x194   :  { %v307_v26 = vsel %vm305_vm6, %v306_v19, %v304_v25 }
 0x195   :  { %v308_v31 = vmul.f32 0.1213, %v307_v26 }
 0x197   :  { %v309_v32 = vmul.f32 %v308_v31, %v294_v24 }
 0x199   :  { %v2114_v28 = vadd.f32 %v309_v32, %v300_v27 }
 0x19b   :  { %v318_v29 = vmul.f32 1.442695, %v2114_v28 }
 0x19d   :  { %1800 = vpow2.f32 %v318_v29 }
 0x1a7   :  { %v1801_v39 = vpop.eup %1800 }
 0x1a8   :  { %v321_v38 = vmul.f32 %v1801_v39, %v320_v16 }
 0x1aa   :  { %v327_v41 = vrot.slane %v321_v38, %v326_v35  ;;  %v331_v43 = vrot.slane %v321_v38, %v330_v36  ;;  %v335_v44 = vrot.slane %v321_v38, %v334_v37  ;;  %v339_v47 = vrot.slane %v321_v38, %v338_v40 }
 0x1ab   :  { %v343_v46 = vrot.slane %v321_v38, %v342_v45  ;;  %v2135_v56 = vrot.slane %v321_v38, %v346_v42  ;;  %v2139_v59 = vrot.slane %v321_v38, %v350_v53  ;;  %v2143_v62 = vrot.slane %v321_v38, %v354_v57 }
 0x1ac   :  { %v365_v48 = vsel %vm364_vm7, %v327_v41, 0.0  ;;  %v366_v50 = vsel %vm364_vm7, %v331_v43, 0.0  ;;  %v368_v51 = vsel %vm364_vm7, %v335_v44, 0.0  ;;  %v370_v54 = vsel %vm364_vm7, %v339_v47, 0.0 }
 0x1ad   :  { %v367_v52 = vadd.f32 %v366_v50, %v365_v48  ;;  %v372_v49 = vsel %vm364_vm7, %v343_v46, 0.0  ;;  %v374_v60 = vsel %vm364_vm7, %v2135_v56, 0.0  ;;  %v376_v63 = vsel %vm364_vm7, %v2139_v59, 0.0 }
 0x1ae   :  { %v378_v2 = vsel %vm364_vm7, %v2143_v62, 0.0 }
 0x1af   :  { %v369_v55 = vadd.f32 %v368_v51, %v367_v52 }
 0x1b1   :  { %v371_v58 = vadd.f32 %v370_v54, %v369_v55 }
 0x1b3   :  { %v373_v61 = vadd.f32 %v372_v49, %v371_v58 }
 0x1b5   :  { %v375_v1 = vadd.f32 %v374_v60, %v373_v61 }
 0x1b7   :  { %v377_v4 = vadd.f32 %v376_v63, %v375_v1 }
 0x1b9   :  { %v379_v5 = vadd.f32 %v378_v2, %v377_v4 }
 0x1bb   :  { %380 = vadd.xlane.f32.xlu1 %v379_v5 }
 0x20a   :  { %v387_v6 = vpop.permute.xlu0 %386 }
 0x20b   :  { %v389_v20 = vsub.f32 %v327_v41, %v387_v6  ;;  %v390_v22 = vsub.f32 %v331_v43, %v387_v6  ;;  %v391_v7 = vsub.f32 %v335_v44, %v387_v6  ;;  %v392_v8 = vsub.f32 %v339_v47, %v387_v6 }
 0x20c   :  { %v393_v9 = vsub.f32 %v343_v46, %v387_v6  ;;  %v394_v14 = vsub.f32 %v2135_v56, %v387_v6  ;;  %v395_v19 = vsub.f32 %v2139_v59, %v387_v6  ;;  %v396_v31 = vsub.f32 %v2143_v62, %v387_v6 }
 0x20d   :  { %v397_v10 = vmax.f32 %v389_v20, 0.0  ;;  %v398_v11 = vmax.f32 %v390_v22, 0.0  ;;  %v399_v12 = vmax.f32 %v391_v7, 0.0  ;;  %v400_v15 = vmax.f32 %v392_v8, 0.0 }
 0x20e   :  { %v408_v13 = vpop.permute.xlu0 %407  ;;  %v401_v21 = vmax.f32 %v393_v9, 0.0  ;;  %v402_v30 = vmax.f32 %v394_v14, 0.0  ;;  %v403_v40 = vmax.f32 %v395_v19, 0.0 }
 0x20f   :  { %v427_v17 = vsel %vm426_vm8, %v397_v10, 0.0  ;;  %v428_v18 = vsel %vm426_vm8, %v398_v11, 0.0  ;;  %v430_v24 = vsel %vm426_vm8, %v399_v12, 0.0  ;;  %v410_v25 = vsub.f32 %v327_v41, %v408_v13 }
 0x210   :  { %v429_v23 = vadd.f32 %v428_v18, %v427_v17  ;;  %v411_v26 = vsub.f32 %v331_v43, %v408_v13  ;;  %v412_v27 = vsub.f32 %v335_v44, %v408_v13  ;;  %v413_v29 = vsub.f32 %v339_v47, %v408_v13 }
 0x211   :  { %v432_v34 = vsel %vm426_vm8, %v400_v15, 0.0  ;;  %v418_v16 = vmax.f32 %v410_v25, 0.0  ;;  %v414_v39 = vsub.f32 %v343_v46, %v408_v13  ;;  %v434_v45 = vsel %vm426_vm8, %v401_v21, 0.0 }
 0x212   :  { %v431_v32 = vadd.f32 %v430_v24, %v429_v23  ;;  %v419_v36 = vmax.f32 %v411_v26, 0.0  ;;  %v420_v38 = vmax.f32 %v412_v27, 0.0  ;;  %v415_v43 = vsub.f32 %v2135_v56, %v408_v13 }
 0x213   :  { %v445_v42 = vsel %vm426_vm8, %v418_v16, 0.0  ;;  %v421_v44 = vmax.f32 %v413_v29, 0.0  ;;  %v404_v47 = vmax.f32 %v396_v31, 0.0  ;;  %v436_v50 = vsel %vm426_vm8, %v402_v30, 0.0 }
 0x214   :  { %v433_v37 = vadd.f32 %v432_v34, %v431_v32  ;;  %v446_v48 = vsel %vm426_vm8, %v419_v36, 0.0  ;;  %v416_v53 = vsub.f32 %v2139_v59, %v408_v13  ;;  %v422_v46 = vmax.f32 %v414_v39, 0.0 }
 0x215   :  { %v447_v51 = vadd.f32 %v446_v48, %v445_v42  ;;  %v448_v54 = vsel %vm426_vm8, %v420_v38, 0.0  ;;  %v438_v55 = vsel %vm426_vm8, %v403_v40, 0.0  ;;  %v417_v58 = vsub.f32 %v2143_v62, %v408_v13 }
 0x216   :  { %v435_v41 = vadd.f32 %v434_v45, %v433_v37  ;;  %v423_v56 = vmax.f32 %v415_v43, 0.0  ;;  %v450_v60 = vsel %vm426_vm8, %v421_v44, 0.0  ;;  %v440_v61 = vsel %vm426_vm8, %v404_v47, 0.0 }
 0x217   :  { %v449_v57 = vadd.f32 %v448_v54, %v447_v51  ;;  %v424_v2 = vmax.f32 %v416_v53, 0.0  ;;  %v452_v59 = vsel %vm426_vm8, %v422_v46, 0.0  ;;  %v425_v5 = vmax.f32 %v417_v58, 0.0 }
 0x218   :  { %v437_v52 = vadd.f32 %v436_v50, %v435_v41  ;;  %v454_v6 = vsel %vm426_vm8, %v423_v56, 0.0  ;;  %v463_v12 = vstv %s1746_s22 }
 0x219   :  { %v451_v63 = vadd.f32 %v450_v60, %v449_v57  ;;  %v456_v22 = vsel %vm426_vm8, %v424_v2, 0.0  ;;  %v458_v7 = vsel %vm426_vm8, %v425_v5, 0.0 }
 0x21a   :  { %v439_v49 = vadd.f32 %v438_v55, %v437_v52 }
 0x21b   :  { %v453_v4 = vadd.f32 %v452_v59, %v451_v63 }
 0x21c   :  { %v441_v1 = vadd.f32 %v440_v61, %v439_v49 }
 0x21d   :  { %v455_v20 = vadd.f32 %v454_v6, %v453_v4 }
 0x21e   :  { %442 = vadd.xlane.f32.xlu1 %v441_v1 }
 0x21f   :  { %v457_v62 = vadd.f32 %v456_v22, %v455_v20 }
 0x221   :  { %v459_v8 = vadd.f32 %v458_v7, %v457_v62 }
 0x223   :  { %460 = vadd.xlane.f32.xlu0 %v459_v8 }
 0x248   :  { %v381_v9 = vpop.xlane.xlu1 %380 }
 0x249   :  { %v383_v10 = vmul.f32 0.0009765625, %v381_v9 }
 0x24b   :  { %v475_v11 = vrot.slane %v383_v10, %v326_v35 }
 0x2ab   :  { %v443_v13 = vpop.xlane.xlu1 %442 }
 0x2ac   :  { %v444_v14 = vmul.f32 0.0009765625, %v443_v13 }
 0x2ae   :  { %v464_v15 = vmul.f32 %v463_v12, %v444_v14  ;;  %v481_v17 = vsub.f32 %v444_v14, %v475_v11 }
 0x2b0   :  { %468 = vst.msk [vmem:[%s466_s25] sm:$0xf] %vm467_vm9, %v464_v15  ;;  %v482_v18 = vadd.f32 %v481_v17, %v2024_v0  ;;  %v461_v35 = vpop.xlane.xlu0 %460 }
 0x2b1   :  { %v462_v19 = vmul.f32 0.0009765625, %v461_v35 }
 0x2b2   :  { %v483_v33 = vmul.f32 %v482_v18, %v463_v12 }
 0x2b3   :  { %v469_v21 = vmul.f32 %v463_v12, %v462_v19  ;;  %v476_v23 = vsub.f32 %v462_v19, %v475_v11 }
 0x2b4   :  { %485 = vst.msk [vmem:[%s484_s28] sm:$0xf] %vm467_vm9, %v483_v33 }
 0x2b5   :  { %471 = vst.msk [vmem:[%s470_s3] sm:$0xf] %vm467_vm9, %v469_v21  ;;  %v477_v24 = vadd.f32 %v476_v23, %v2029_v3 }
 0x2b7   :  { %v478_v25 = vmul.f32 %v477_v24, %v463_v12 }
 0x2b9   :  { %480 = vst.msk [vmem:[%s479_s11] sm:$0xf] %vm467_vm9, %v478_v25 }
 0x2ba PF:  { %v491_v26 = vld [vmem:[#allocation10 + $0x2] ss:$8 sm:$0xf]  ;;  %s2192_s12 = sld [smem:[#allocation3 + $0x2]] }
 0x2bb   :  { %v492_v27 = vld [vmem:[#allocation10 + $0x2] ss:$8 sm:$0xf0] }
 0x2bc   :  { %v493_v31 = vor.u32 %v492_v27, %v491_v26  ;;  %v487_v32 = vld [vmem:[#allocation9 + $0x2] ss:$8 sm:$0xf] }
 0x2bd   :  { %v488_v30 = vld [vmem:[#allocation9 + $0x2] ss:$8 sm:$0xf0] }
 0x2be   :  { %1802 = vrsqrt.f32 %v493_v31  ;;  %vm498_vm10 = vcmp.eq.f32.partialorder %v493_v31, inf  ;;  %v501_v34 = vand.u32 2147483648, %v493_v31  ;;  %v494_v16 = vmul.f32 -0.1436, %v493_v31 }
 0x2bf   :  { %vm500_vm11 = vcmp.eq.f32.partialorder %v493_v31, 0.0  ;;  %v489_v37 = vor.u32 %v488_v30, %v487_v32 }
 0x2c0   :  { %v495_v40 = vadd.f32 %v494_v16, %v2114_v28  ;;  %p1749_p5 = scmp.lt.s32.totalorder %s2192_s12, 0 }
 0x2c1   :  { %v1927_v44 = vmov (!%p1749_p5), 0   ;;  %s1750_s2 = sld [smem:[#allocation6 + $0x2]] (!%p1749_p5)  ;;  %v519_v48 = vlaneseq (!%p1749_p5)  ;;  %vm559_vm12 = vcmask (!%p1749_p5), 1040384   ;;  %vm621_vm13 = vcmask (!%p1749_p5), 1043456   ;;  %s1752_s14 = sshll.u32 (!%p1749_p5), %s2192_s12, 2 }
 0x2c2   :  { %1804 = vset.pattern.permute.xlu0 (!%p1749_p5), %v1927_v44  ;;  %s1751_s13 = sld [smem:[#allocation8 + $0x2]] (!%p1749_p5)  ;;  %s661_s17 = scalar_lea.vmem (!%p1749_p5), %s2682_s7, %s1752_s14  ;;  %vm662_vm14 = vcmask (!%p1749_p5), 3072  }
 0x2c3   :  { %581 = vperm.xlu0 (!%p1749_p5), %1804, %v2024_v0   ;;  %v2201_v47 = vshrl.u32 (!%p1749_p5), %v519_v48, 7  ;;  %s679_s20 = scalar_lea.vmem (!%p1749_p5), %s2685_s10, %s1752_s14  ;;  %s665_s0 = scalar_lea.vmem (!%p1749_p5), %s2684_s9, %s1752_s14 }
 0x2c4   :  { %s674_s24 = scalar_lea.vmem (!%p1749_p5), %s2683_s8, %s1752_s14 }
 0x2c5   :  { %v521_v50 = vsub.s32 (!%p1749_p5), 0, %v2201_v47  ;;  %v525_v51 = vsub.s32 (!%p1749_p5), 1, %v2201_v47  ;;  %v529_v52 = vsub.s32 (!%p1749_p5), 2, %v2201_v47  ;;  %v533_v54 = vsub.s32 (!%p1749_p5), 3, %v2201_v47 }
 0x2c6   :  { %v537_v58 = vsub.s32 (!%p1749_p5), 4, %v2201_v47  ;;  %v541_v56 = vsub.s32 (!%p1749_p5), 5, %v2201_v47  ;;  %v545_v4 = vsub.s32 (!%p1749_p5), 6, %v2201_v47  ;;  %v549_v22 = vsub.s32 (!%p1749_p5), 7, %v2201_v47 }
 0x2c7   :  { %602 = vperm.xlu0 (!%p1749_p5), %1804, %v2029_v3   ;;  %v515_v28 = vstv (!%p1749_p5), %s1750_s2 }
 0x2c8   :  { %v1803_v29 = vpop.eup %1802 }
 0x2c9   :  { %v497_v36 = vmul.f32 %v1803_v29, %v493_v31 }
 0x2cb   :  { %v499_v39 = vsel %vm498_vm10, %v493_v31, %v497_v36  ;;  %511 = sbr.rel (%p1749_p5) target bundleno = 1010 (0x3f2), region = 65 }
 0x2cc   :  { %v502_v38 = vsel %vm500_vm11, %v501_v34, %v499_v39 }
 0x2cd   :  { %v503_v45 = vmul.f32 0.1213, %v502_v38 }
 0x2cf   :  { %v504_v42 = vmul.f32 %v503_v45, %v489_v37 }
 0x2d1   :  { %v2195_v41 = vadd.f32 %v504_v42, %v495_v40 }
 0x2d3   :  { %v513_v43 = vmul.f32 1.442695, %v2195_v41 }
 0x2d5   :  { %1805 = vpow2.f32 %v513_v43 }
 0x2df   :  { %v1806_v53 = vpop.eup %1805 }
 0x2e0   :  { %v516_v46 = vmul.f32 %v1806_v53, %v515_v28 }
 0x2e2   :  { %v522_v55 = vrot.slane %v516_v46, %v521_v50  ;;  %v526_v57 = vrot.slane %v516_v46, %v525_v51  ;;  %v530_v49 = vrot.slane %v516_v46, %v529_v52  ;;  %v534_v60 = vrot.slane %v516_v46, %v533_v54 }
 0x2e3   :  { %v538_v59 = vrot.slane %v516_v46, %v537_v58  ;;  %v2216_v20 = vrot.slane %v516_v46, %v541_v56  ;;  %v2220_v8 = vrot.slane %v516_v46, %v545_v4  ;;  %v2224_v11 = vrot.slane %v516_v46, %v549_v22 }
 0x2e4   :  { %v560_v61 = vsel %vm559_vm12, %v522_v55, 0.0  ;;  %v561_v63 = vsel %vm559_vm12, %v526_v57, 0.0  ;;  %v563_v1 = vsel %vm559_vm12, %v530_v49, 0.0  ;;  %v565_v5 = vsel %vm559_vm12, %v534_v60, 0.0 }
 0x2e5   :  { %v562_v2 = vadd.f32 %v561_v63, %v560_v61  ;;  %v567_v62 = vsel %vm559_vm12, %v538_v59, 0.0  ;;  %v569_v9 = vsel %vm559_vm12, %v2216_v20, 0.0  ;;  %v571_v12 = vsel %vm559_vm12, %v2220_v8, 0.0 }
 0x2e6   :  { %v573_v14 = vsel %vm559_vm12, %v2224_v11, 0.0 }
 0x2e7   :  { %v564_v6 = vadd.f32 %v563_v1, %v562_v2 }
 0x2e9   :  { %v566_v7 = vadd.f32 %v565_v5, %v564_v6 }
 0x2eb   :  { %v568_v10 = vadd.f32 %v567_v62, %v566_v7 }
 0x2ed   :  { %v570_v13 = vadd.f32 %v569_v9, %v568_v10 }
 0x2ef   :  { %v572_v15 = vadd.f32 %v571_v12, %v570_v13 }
 0x2f1   :  { %v574_v17 = vadd.f32 %v573_v14, %v572_v15 }
 0x2f3   :  { %575 = vadd.xlane.f32.xlu1 %v574_v17 }
 0x342   :  { %v582_v18 = vpop.permute.xlu0 %581 }
 0x343   :  { %v584_v33 = vsub.f32 %v522_v55, %v582_v18  ;;  %v585_v35 = vsub.f32 %v526_v57, %v582_v18  ;;  %v586_v19 = vsub.f32 %v530_v49, %v582_v18  ;;  %v587_v21 = vsub.f32 %v534_v60, %v582_v18 }
 0x344   :  { %v588_v23 = vsub.f32 %v538_v59, %v582_v18  ;;  %v589_v31 = vsub.f32 %v2216_v20, %v582_v18  ;;  %v590_v34 = vsub.f32 %v2220_v8, %v582_v18  ;;  %v591_v45 = vsub.f32 %v2224_v11, %v582_v18 }
 0x345   :  { %v592_v24 = vmax.f32 %v584_v33, 0.0  ;;  %v593_v25 = vmax.f32 %v585_v35, 0.0  ;;  %v594_v26 = vmax.f32 %v586_v19, 0.0  ;;  %v595_v32 = vmax.f32 %v587_v21, 0.0 }
 0x346   :  { %v603_v27 = vpop.permute.xlu0 %602  ;;  %v596_v16 = vmax.f32 %v588_v23, 0.0  ;;  %v597_v44 = vmax.f32 %v589_v31, 0.0  ;;  %v598_v54 = vmax.f32 %v590_v34, 0.0 }
 0x347   :  { %v622_v29 = vsel %vm621_vm13, %v592_v24, 0.0  ;;  %v623_v30 = vsel %vm621_vm13, %v593_v25, 0.0  ;;  %v625_v37 = vsel %vm621_vm13, %v594_v26, 0.0  ;;  %v605_v39 = vsub.f32 %v522_v55, %v603_v27 }
 0x348   :  { %v624_v36 = vadd.f32 %v623_v30, %v622_v29  ;;  %v606_v38 = vsub.f32 %v526_v57, %v603_v27  ;;  %v607_v40 = vsub.f32 %v530_v49, %v603_v27  ;;  %v608_v43 = vsub.f32 %v534_v60, %v603_v27 }
 0x349   :  { %v627_v48 = vsel %vm621_vm13, %v595_v32, 0.0  ;;  %v613_v28 = vmax.f32 %v605_v39, 0.0  ;;  %v609_v53 = vsub.f32 %v538_v59, %v603_v27  ;;  %v629_v58 = vsel %vm621_vm13, %v596_v16, 0.0 }
 0x34a   :  { %v626_v42 = vadd.f32 %v625_v37, %v624_v36  ;;  %v614_v51 = vmax.f32 %v606_v38, 0.0  ;;  %v615_v46 = vmax.f32 %v607_v40, 0.0  ;;  %v610_v57 = vsub.f32 %v2216_v20, %v603_v27 }
 0x34b   :  { %v640_v56 = vsel %vm621_vm13, %v613_v28, 0.0  ;;  %v616_v49 = vmax.f32 %v608_v43, 0.0  ;;  %v599_v60 = vmax.f32 %v591_v45, 0.0  ;;  %v631_v63 = vsel %vm621_vm13, %v597_v44, 0.0 }
 0x34c   :  { %v628_v52 = vadd.f32 %v627_v48, %v626_v42  ;;  %v641_v61 = vsel %vm621_vm13, %v614_v51, 0.0  ;;  %v611_v4 = vsub.f32 %v2220_v8, %v603_v27  ;;  %v617_v59 = vmax.f32 %v609_v53, 0.0 }
 0x34d   :  { %v642_v1 = vadd.f32 %v641_v61, %v640_v56  ;;  %v643_v5 = vsel %vm621_vm13, %v615_v46, 0.0  ;;  %v633_v6 = vsel %vm621_vm13, %v598_v54, 0.0  ;;  %v612_v7 = vsub.f32 %v2224_v11, %v603_v27 }
 0x34e   :  { %v630_v55 = vadd.f32 %v629_v58, %v628_v52  ;;  %v618_v20 = vmax.f32 %v610_v57, 0.0  ;;  %v645_v9 = vsel %vm621_vm13, %v616_v49, 0.0  ;;  %v635_v10 = vsel %vm621_vm13, %v599_v60, 0.0 }
 0x34f   :  { %v644_v22 = vadd.f32 %v643_v5, %v642_v1  ;;  %v619_v14 = vmax.f32 %v611_v4, 0.0  ;;  %v647_v8 = vsel %vm621_vm13, %v617_v59, 0.0  ;;  %v620_v17 = vmax.f32 %v612_v7, 0.0 }
 0x350   :  { %v632_v2 = vadd.f32 %v631_v63, %v630_v55  ;;  %v649_v18 = vsel %vm621_vm13, %v618_v20, 0.0  ;;  %v658_v26 = vstv %s1751_s13 }
 0x351   :  { %v646_v12 = vadd.f32 %v645_v9, %v644_v22  ;;  %v651_v35 = vsel %vm621_vm13, %v619_v14, 0.0  ;;  %v653_v19 = vsel %vm621_vm13, %v620_v17, 0.0 }
 0x352   :  { %v634_v62 = vadd.f32 %v633_v6, %v632_v2 }
 0x353   :  { %v648_v15 = vadd.f32 %v647_v8, %v646_v12 }
 0x354   :  { %v636_v13 = vadd.f32 %v635_v10, %v634_v62 }
 0x355   :  { %v650_v33 = vadd.f32 %v649_v18, %v648_v15 }
 0x356   :  { %637 = vadd.xlane.f32.xlu1 %v636_v13 }
 0x357   :  { %v652_v11 = vadd.f32 %v651_v35, %v650_v33 }
 0x359   :  { %v654_v21 = vadd.f32 %v653_v19, %v652_v11 }
 0x35b   :  { %655 = vadd.xlane.f32.xlu0 %v654_v21 }
 0x380   :  { %v576_v23 = vpop.xlane.xlu1 %575 }
 0x381   :  { %v578_v24 = vmul.f32 0.0009765625, %v576_v23 }
 0x383   :  { %v670_v25 = vrot.slane %v578_v24, %v521_v50 }
 0x3e3   :  { %v638_v27 = vpop.xlane.xlu1 %637 }
 0x3e4   :  { %v639_v31 = vmul.f32 0.0009765625, %v638_v27 }
 0x3e6   :  { %v659_v32 = vmul.f32 %v658_v26, %v639_v31  ;;  %v676_v29 = vsub.f32 %v639_v31, %v670_v25 }
 0x3e8   :  { %663 = vst.msk [vmem:[%s661_s17] sm:$0xf] %vm662_vm14, %v659_v32  ;;  %v677_v30 = vadd.f32 %v676_v29, %v2024_v0  ;;  %v656_v50 = vpop.xlane.xlu0 %655 }
 0x3e9   :  { %v657_v34 = vmul.f32 0.0009765625, %v656_v50 }
 0x3ea   :  { %v678_v47 = vmul.f32 %v677_v30, %v658_v26 }
 0x3eb   :  { %v664_v16 = vmul.f32 %v658_v26, %v657_v34  ;;  %v671_v36 = vsub.f32 %v657_v34, %v670_v25 }
 0x3ec   :  { %680 = vst.msk [vmem:[%s679_s20] sm:$0xf] %vm662_vm14, %v678_v47 }
 0x3ed   :  { %666 = vst.msk [vmem:[%s665_s0] sm:$0xf] %vm662_vm14, %v664_v16  ;;  %v672_v37 = vadd.f32 %v671_v36, %v2029_v3 }
 0x3ef   :  { %v673_v39 = vmul.f32 %v672_v37, %v658_v26 }
 0x3f1   :  { %675 = vst.msk [vmem:[%s674_s24] sm:$0xf] %vm662_vm14, %v673_v39 }
 0x3f2 PF:  { %v686_v38 = vld [vmem:[#allocation10 + $0x3] ss:$8 sm:$0xf]  ;;  %s2273_s5 = sld [smem:[#allocation3 + $0x3]] }
 0x3f3   :  { %v687_v40 = vld [vmem:[#allocation10 + $0x3] ss:$8 sm:$0xf0] }
 0x3f4   :  { %v688_v45 = vor.u32 %v687_v40, %v686_v38  ;;  %v682_v42 = vld [vmem:[#allocation9 + $0x3] ss:$8 sm:$0xf] }
 0x3f5   :  { %v683_v44 = vld [vmem:[#allocation9 + $0x3] ss:$8 sm:$0xf0] }
 0x3f6   :  { %1807 = vrsqrt.f32 %v688_v45  ;;  %vm693_vm15 = vcmp.eq.f32.partialorder %v688_v45, inf  ;;  %v696_v48 = vand.u32 2147483648, %v688_v45  ;;  %v689_v28 = vmul.f32 -0.1436, %v688_v45 }
 0x3f7   :  { %vm695_vm0 = vcmp.eq.f32.partialorder %v688_v45, 0.0  ;;  %v684_v52 = vor.u32 %v683_v44, %v682_v42 }
 0x3f8   :  { %v690_v54 = vadd.f32 %v689_v28, %v2195_v41  ;;  %p1754_p6 = scmp.lt.s32.totalorder %s2273_s5, 0 }
 0x3f9   :  { %v1928_v49 = vmov (!%p1754_p6), 0   ;;  %s1755_s25 = sld [smem:[#allocation6 + $0x3]] (!%p1754_p6)  ;;  %v714_v61 = vlaneseq (!%p1754_p6)  ;;  %vm754_vm1 = vcmask (!%p1754_p6), 1040384   ;;  %vm816_vm2 = vcmask (!%p1754_p6), 1043456   ;;  %s1757_s27 = sshll.u32 (!%p1754_p6), %s2273_s5, 2 }
 0x3fa   :  { %1809 = vset.pattern.permute.xlu0 (!%p1754_p6), %v1928_v49  ;;  %s1756_s26 = sld [smem:[#allocation8 + $0x3]] (!%p1754_p6)  ;;  %s856_s6 = scalar_lea.vmem (!%p1754_p6), %s2682_s7, %s1757_s27  ;;  %vm857_vm3 = vcmask (!%p1754_p6), 3072  }
 0x3fb   :  { %776 = vperm.xlu0 (!%p1754_p6), %1809, %v2024_v0   ;;  %v2282_v60 = vshrl.u32 (!%p1754_p6), %v714_v61, 7  ;;  %s874_s29 = scalar_lea.vmem (!%p1754_p6), %s2685_s10, %s1757_s27  ;;  %s860_s2 = scalar_lea.vmem (!%p1754_p6), %s2684_s9, %s1757_s27 }
 0x3fc   :  { %s869_s15 = scalar_lea.vmem (!%p1754_p6), %s2683_s8, %s1757_s27 }
 0x3fd   :  { %v716_v63 = vsub.s32 (!%p1754_p6), 0, %v2282_v60  ;;  %v720_v1 = vsub.s32 (!%p1754_p6), 1, %v2282_v60  ;;  %v724_v2 = vsub.s32 (!%p1754_p6), 2, %v2282_v60  ;;  %v728_v5 = vsub.s32 (!%p1754_p6), 3, %v2282_v60 }
 0x3fe   :  { %v732_v7 = vsub.s32 (!%p1754_p6), 4, %v2282_v60  ;;  %v736_v20 = vsub.s32 (!%p1754_p6), 5, %v2282_v60  ;;  %v740_v15 = vsub.s32 (!%p1754_p6), 6, %v2282_v60  ;;  %v744_v35 = vsub.s32 (!%p1754_p6), 7, %v2282_v60 }
 0x3ff   :  { %797 = vperm.xlu0 (!%p1754_p6), %1809, %v2029_v3   ;;  %v710_v41 = vstv (!%p1754_p6), %s1755_s25 }
 0x400   :  { %v1808_v43 = vpop.eup %1807 }
 0x401   :  { %v692_v51 = vmul.f32 %v1808_v43, %v688_v45 }
 0x403   :  { %v694_v53 = vsel %vm693_vm15, %v688_v45, %v692_v51  ;;  %706 = sbr.rel (%p1754_p6) target bundleno = 1322 (0x52a), region = 69 }
 0x404   :  { %v697_v46 = vsel %vm695_vm0, %v696_v48, %v694_v53 }
 0x405   :  { %v698_v58 = vmul.f32 0.1213, %v697_v46 }
 0x407   :  { %v699_v56 = vmul.f32 %v698_v58, %v684_v52 }
 0x409   :  { %v2276_v55 = vadd.f32 %v699_v56, %v690_v54 }
 0x40b   :  { %v708_v57 = vmul.f32 1.442695, %v2276_v55 }
 0x40d   :  { %1810 = vpow2.f32 %v708_v57 }
 0x417   :  { %v1811_v4 = vpop.eup %1810 }
 0x418   :  { %v711_v59 = vmul.f32 %v1811_v4, %v710_v41 }
 0x41a   :  { %v717_v6 = vrot.slane %v711_v59, %v716_v63  ;;  %v721_v22 = vrot.slane %v711_v59, %v720_v1  ;;  %v725_v62 = vrot.slane %v711_v59, %v724_v2  ;;  %v729_v9 = vrot.slane %v711_v59, %v728_v5 }
 0x41b   :  { %v733_v8 = vrot.slane %v711_v59, %v732_v7  ;;  %v2297_v33 = vrot.slane %v711_v59, %v736_v20  ;;  %v2301_v21 = vrot.slane %v711_v59, %v740_v15  ;;  %v2305_v25 = vrot.slane %v711_v59, %v744_v35 }
 0x41c   :  { %v755_v10 = vsel %vm754_vm1, %v717_v6, 0.0  ;;  %v756_v12 = vsel %vm754_vm1, %v721_v22, 0.0  ;;  %v758_v13 = vsel %vm754_vm1, %v725_v62, 0.0  ;;  %v760_v17 = vsel %vm754_vm1, %v729_v9, 0.0 }
 0x41d   :  { %v757_v14 = vadd.f32 %v756_v12, %v755_v10  ;;  %v762_v11 = vsel %vm754_vm1, %v733_v8, 0.0  ;;  %v764_v23 = vsel %vm754_vm1, %v2297_v33, 0.0  ;;  %v766_v26 = vsel %vm754_vm1, %v2301_v21, 0.0 }
 0x41e   :  { %v768_v31 = vsel %vm754_vm1, %v2305_v25, 0.0 }
 0x41f   :  { %v759_v18 = vadd.f32 %v758_v13, %v757_v14 }
 0x421   :  { %v761_v19 = vadd.f32 %v760_v17, %v759_v18 }
 0x423   :  { %v763_v24 = vadd.f32 %v762_v11, %v761_v19 }
 0x425   :  { %v765_v27 = vadd.f32 %v764_v23, %v763_v24 }
 0x427   :  { %v767_v32 = vadd.f32 %v766_v26, %v765_v27 }
 0x429   :  { %v769_v29 = vadd.f32 %v768_v31, %v767_v32 }
 0x42b   :  { %770 = vadd.xlane.f32.xlu1 %v769_v29 }
 0x47a   :  { %v777_v30 = vpop.permute.xlu0 %776 }
 0x47b   :  { %v779_v47 = vsub.f32 %v717_v6, %v777_v30  ;;  %v780_v50 = vsub.f32 %v721_v22, %v777_v30  ;;  %v781_v34 = vsub.f32 %v725_v62, %v777_v30  ;;  %v782_v16 = vsub.f32 %v729_v9, %v777_v30 }
 0x47c   :  { %v783_v36 = vsub.f32 %v733_v8, %v777_v30  ;;  %v784_v45 = vsub.f32 %v2297_v33, %v777_v30  ;;  %v785_v48 = vsub.f32 %v2301_v21, %v777_v30  ;;  %v786_v58 = vsub.f32 %v2305_v25, %v777_v30 }
 0x47d   :  { %v787_v37 = vmax.f32 %v779_v47, 0.0  ;;  %v788_v39 = vmax.f32 %v780_v50, 0.0  ;;  %v789_v38 = vmax.f32 %v781_v34, 0.0  ;;  %v790_v42 = vmax.f32 %v782_v16, 0.0 }
 0x47e   :  { %v798_v40 = vpop.permute.xlu0 %797  ;;  %v791_v28 = vmax.f32 %v783_v36, 0.0  ;;  %v792_v49 = vmax.f32 %v784_v45, 0.0  ;;  %v793_v5 = vmax.f32 %v785_v48, 0.0 }
 0x47f   :  { %v817_v43 = vsel %vm816_vm2, %v787_v37, 0.0  ;;  %v818_v44 = vsel %vm816_vm2, %v788_v39, 0.0  ;;  %v820_v52 = vsel %vm816_vm2, %v789_v38, 0.0  ;;  %v800_v53 = vsub.f32 %v717_v6, %v798_v40 }
 0x480   :  { %v819_v51 = vadd.f32 %v818_v44, %v817_v43  ;;  %v801_v46 = vsub.f32 %v721_v22, %v798_v40  ;;  %v802_v54 = vsub.f32 %v725_v62, %v798_v40  ;;  %v803_v57 = vsub.f32 %v729_v9, %v798_v40 }
 0x481   :  { %v822_v61 = vsel %vm816_vm2, %v790_v42, 0.0  ;;  %v808_v41 = vmax.f32 %v800_v53, 0.0  ;;  %v804_v4 = vsub.f32 %v733_v8, %v798_v40  ;;  %v824_v7 = vsel %vm816_vm2, %v791_v28, 0.0 }
 0x482   :  { %v821_v56 = vadd.f32 %v820_v52, %v819_v51  ;;  %v809_v1 = vmax.f32 %v801_v46, 0.0  ;;  %v810_v59 = vmax.f32 %v802_v54, 0.0  ;;  %v805_v22 = vsub.f32 %v2297_v33, %v798_v40 }
 0x483   :  { %v835_v20 = vsel %vm816_vm2, %v808_v41, 0.0  ;;  %v811_v62 = vmax.f32 %v803_v57, 0.0  ;;  %v794_v9 = vmax.f32 %v786_v58, 0.0  ;;  %v826_v12 = vsel %vm816_vm2, %v792_v49, 0.0 }
 0x484   :  { %v823_v2 = vadd.f32 %v822_v61, %v821_v56  ;;  %v836_v10 = vsel %vm816_vm2, %v809_v1, 0.0  ;;  %v806_v15 = vsub.f32 %v2301_v21, %v798_v40  ;;  %v812_v8 = vmax.f32 %v804_v4, 0.0 }
 0x485   :  { %v837_v13 = vadd.f32 %v836_v10, %v835_v20  ;;  %v838_v17 = vsel %vm816_vm2, %v810_v59, 0.0  ;;  %v828_v18 = vsel %vm816_vm2, %v793_v5, 0.0  ;;  %v807_v19 = vsub.f32 %v2305_v25, %v798_v40 }
 0x486   :  { %v825_v6 = vadd.f32 %v824_v7, %v823_v2  ;;  %v813_v33 = vmax.f32 %v805_v22, 0.0  ;;  %v840_v23 = vsel %vm816_vm2, %v811_v62, 0.0  ;;  %v830_v24 = vsel %vm816_vm2, %v794_v9, 0.0 }
 0x487   :  { %v839_v35 = vadd.f32 %v838_v17, %v837_v13  ;;  %v814_v31 = vmax.f32 %v806_v15, 0.0  ;;  %v842_v21 = vsel %vm816_vm2, %v812_v8, 0.0  ;;  %v815_v29 = vmax.f32 %v807_v19, 0.0 }
 0x488   :  { %v827_v14 = vadd.f32 %v826_v12, %v825_v6  ;;  %v844_v30 = vsel %vm816_vm2, %v813_v33, 0.0  ;;  %v853_v38 = vstv %s1756_s26 }
 0x489   :  { %v841_v26 = vadd.f32 %v840_v23, %v839_v35  ;;  %v846_v50 = vsel %vm816_vm2, %v814_v31, 0.0  ;;  %v848_v34 = vsel %vm816_vm2, %v815_v29, 0.0 }
 0x48a   :  { %v829_v11 = vadd.f32 %v828_v18, %v827_v14 }
 0x48b   :  { %v843_v32 = vadd.f32 %v842_v21, %v841_v26 }
 0x48c   :  { %v831_v27 = vadd.f32 %v830_v24, %v829_v11 }
 0x48d   :  { %v845_v47 = vadd.f32 %v844_v30, %v843_v32 }
 0x48e   :  { %832 = vadd.xlane.f32.xlu1 %v831_v27 }
 0x48f   :  { %v847_v25 = vadd.f32 %v846_v50, %v845_v47 }
 0x491   :  { %v849_v16 = vadd.f32 %v848_v34, %v847_v25 }
 0x493   :  { %850 = vadd.xlane.f32.xlu0 %v849_v16 }
 0x4b8   :  { %v771_v36 = vpop.xlane.xlu1 %770 }
 0x4b9   :  { %v773_v37 = vmul.f32 0.0009765625, %v771_v36 }
 0x4bb   :  { %v865_v39 = vrot.slane %v773_v37, %v716_v63 }
 0x51b   :  { %v833_v40 = vpop.xlane.xlu1 %832 }
 0x51c   :  { %v834_v45 = vmul.f32 0.0009765625, %v833_v40 }
 0x51e   :  { %v854_v42 = vmul.f32 %v853_v38, %v834_v45  ;;  %v871_v43 = vsub.f32 %v834_v45, %v865_v39 }
 0x520   :  { %858 = vst.msk [vmem:[%s856_s6] sm:$0xf] %vm857_vm3, %v854_v42  ;;  %v872_v44 = vadd.f32 %v871_v43, %v2024_v0  ;;  %v851_v63 = vpop.xlane.xlu0 %850 }
 0x521   :  { %v852_v48 = vmul.f32 0.0009765625, %v851_v63 }
 0x522   :  { %v873_v60 = vmul.f32 %v872_v44, %v853_v38 }
 0x523   :  { %v859_v28 = vmul.f32 %v853_v38, %v852_v48  ;;  %v866_v51 = vsub.f32 %v852_v48, %v865_v39 }
 0x524   :  { %875 = vst.msk [vmem:[%s874_s29] sm:$0xf] %vm857_vm3, %v873_v60 }
 0x525   :  { %861 = vst.msk [vmem:[%s860_s2] sm:$0xf] %vm857_vm3, %v859_v28  ;;  %v867_v52 = vadd.f32 %v866_v51, %v2029_v3 }
 0x527   :  { %v868_v53 = vmul.f32 %v867_v52, %v853_v38 }
 0x529   :  { %870 = vst.msk [vmem:[%s869_s15] sm:$0xf] %vm857_vm3, %v868_v53 }
 0x52a PF:  { %v881_v46 = vld [vmem:[#allocation10 + $0x4] ss:$8 sm:$0xf]  ;;  %s2354_s16 = sld [smem:[#allocation3 + $0x4]] }
 0x52b   :  { %v882_v54 = vld [vmem:[#allocation10 + $0x4] ss:$8 sm:$0xf0] }
 0x52c   :  { %v883_v58 = vor.u32 %v882_v54, %v881_v46  ;;  %v877_v56 = vld [vmem:[#allocation9 + $0x4] ss:$8 sm:$0xf] }
 0x52d   :  { %v878_v49 = vld [vmem:[#allocation9 + $0x4] ss:$8 sm:$0xf0] }
 0x52e   :  { %1812 = vrsqrt.f32 %v883_v58  ;;  %vm888_vm4 = vcmp.eq.f32.partialorder %v883_v58, inf  ;;  %v891_v61 = vand.u32 2147483648, %v883_v58  ;;  %v884_v41 = vmul.f32 -0.1436, %v883_v58 }
 0x52f   :  { %vm890_vm5 = vcmp.eq.f32.partialorder %v883_v58, 0.0  ;;  %v879_v2 = vor.u32 %v878_v49, %v877_v56 }
 0x530   :  { %v885_v5 = vadd.f32 %v884_v41, %v2276_v55  ;;  %p1759_p7 = scmp.lt.s32.totalorder %s2354_s16, 0 }
 0x531   :  { %v1929_v62 = vmov (!%p1759_p7), 0   ;;  %s1760_s17 = sld [smem:[#allocation6 + $0x4]] (!%p1759_p7)  ;;  %v909_v10 = vlaneseq (!%p1759_p7)  ;;  %vm949_vm6 = vcmask (!%p1759_p7), 1040384   ;;  %vm1011_vm7 = vcmask (!%p1759_p7), 1043456   ;;  %s1762_s19 = sshll.u32 (!%p1759_p7), %s2354_s16, 2 }
 0x532   :  { %1814 = vset.pattern.permute.xlu0 (!%p1759_p7), %v1929_v62  ;;  %s1761_s18 = sld [smem:[#allocation8 + $0x4]] (!%p1759_p7)  ;;  %s1051_s1 = scalar_lea.vmem (!%p1759_p7), %s2682_s7, %s1762_s19  ;;  %vm1052_vm8 = vcmask (!%p1759_p7), 3072  }
 0x533   :  { %971 = vperm.xlu0 (!%p1759_p7), %1814, %v2024_v0   ;;  %v2363_v9 = vshrl.u32 (!%p1759_p7), %v909_v10, 7  ;;  %s1069_s23 = scalar_lea.vmem (!%p1759_p7), %s2685_s10, %s1762_s19  ;;  %s1055_s25 = scalar_lea.vmem (!%p1759_p7), %s2684_s9, %s1762_s19 }
 0x534   :  { %s1064_s28 = scalar_lea.vmem (!%p1759_p7), %s2683_s8, %s1762_s19 }
 0x535   :  { %v911_v12 = vsub.s32 (!%p1759_p7), 0, %v2363_v9  ;;  %v915_v13 = vsub.s32 (!%p1759_p7), 1, %v2363_v9  ;;  %v919_v14 = vsub.s32 (!%p1759_p7), 2, %v2363_v9  ;;  %v923_v17 = vsub.s32 (!%p1759_p7), 3, %v2363_v9 }
 0x536   :  { %v927_v19 = vsub.s32 (!%p1759_p7), 4, %v2363_v9  ;;  %v931_v33 = vsub.s32 (!%p1759_p7), 5, %v2363_v9  ;;  %v935_v32 = vsub.s32 (!%p1759_p7), 6, %v2363_v9  ;;  %v939_v50 = vsub.s32 (!%p1759_p7), 7, %v2363_v9 }
 0x537   :  { %992 = vperm.xlu0 (!%p1759_p7), %1814, %v2029_v3   ;;  %v905_v55 = vstv (!%p1759_p7), %s1760_s17 }
 0x538   :  { %v1813_v57 = vpop.eup %1812 }
 0x539   :  { %v887_v1 = vmul.f32 %v1813_v57, %v883_v58 }
 0x53b   :  { %v889_v4 = vsel %vm888_vm4, %v883_v58, %v887_v1  ;;  %901 = sbr.rel (%p1759_p7) target bundleno = 1634 (0x662), region = 73 }
 0x53c   :  { %v892_v59 = vsel %vm890_vm5, %v891_v61, %v889_v4 }
 0x53d   :  { %v893_v7 = vmul.f32 0.1213, %v892_v59 }
 0x53f   :  { %v894_v20 = vmul.f32 %v893_v7, %v879_v2 }
 0x541   :  { %v2357_v6 = vadd.f32 %v894_v20, %v885_v5 }
 0x543   :  { %v903_v22 = vmul.f32 1.442695, %v2357_v6 }
 0x545   :  { %1815 = vpow2.f32 %v903_v22 }
 0x54f   :  { %v1816_v15 = vpop.eup %1815 }
 0x550   :  { %v906_v8 = vmul.f32 %v1816_v15, %v905_v55 }
 0x552   :  { %v912_v18 = vrot.slane %v906_v8, %v911_v12  ;;  %v916_v35 = vrot.slane %v906_v8, %v915_v13  ;;  %v920_v11 = vrot.slane %v906_v8, %v919_v14  ;;  %v924_v23 = vrot.slane %v906_v8, %v923_v17 }
 0x553   :  { %v928_v21 = vrot.slane %v906_v8, %v927_v19  ;;  %v2378_v47 = vrot.slane %v906_v8, %v931_v33  ;;  %v2382_v16 = vrot.slane %v906_v8, %v935_v32  ;;  %v2386_v39 = vrot.slane %v906_v8, %v939_v50 }
 0x554   :  { %v950_v24 = vsel %vm949_vm6, %v912_v18, 0.0  ;;  %v951_v26 = vsel %vm949_vm6, %v916_v35, 0.0  ;;  %v953_v27 = vsel %vm949_vm6, %v920_v11, 0.0  ;;  %v955_v29 = vsel %vm949_vm6, %v924_v23, 0.0 }
 0x555   :  { %v952_v31 = vadd.f32 %v951_v26, %v950_v24  ;;  %v957_v25 = vsel %vm949_vm6, %v928_v21, 0.0  ;;  %v959_v36 = vsel %vm949_vm6, %v2378_v47, 0.0  ;;  %v961_v38 = vsel %vm949_vm6, %v2382_v16, 0.0 }
 0x556   :  { %v963_v45 = vsel %vm949_vm6, %v2386_v39, 0.0 }
 0x557   :  { %v954_v30 = vadd.f32 %v953_v27, %v952_v31 }
 0x559   :  { %v956_v34 = vadd.f32 %v955_v29, %v954_v30 }
 0x55b   :  { %v958_v37 = vadd.f32 %v957_v25, %v956_v34 }
 0x55d   :  { %v960_v40 = vadd.f32 %v959_v36, %v958_v37 }
 0x55f   :  { %v962_v42 = vadd.f32 %v961_v38, %v960_v40 }
 0x561   :  { %v964_v43 = vadd.f32 %v963_v45, %v962_v42 }
 0x563   :  { %965 = vadd.xlane.f32.xlu1 %v964_v43 }
 0x5b2   :  { %v972_v44 = vpop.permute.xlu0 %971 }
 0x5b3   :  { %v974_v60 = vsub.f32 %v912_v18, %v972_v44  ;;  %v975_v63 = vsub.f32 %v916_v35, %v972_v44  ;;  %v976_v48 = vsub.f32 %v920_v11, %v972_v44  ;;  %v977_v28 = vsub.f32 %v924_v23, %v972_v44 }
 0x5b4   :  { %v978_v51 = vsub.f32 %v928_v21, %v972_v44  ;;  %v979_v58 = vsub.f32 %v2378_v47, %v972_v44  ;;  %v980_v61 = vsub.f32 %v2382_v16, %v972_v44  ;;  %v981_v7 = vsub.f32 %v2386_v39, %v972_v44 }
 0x5b5   :  { %v982_v52 = vmax.f32 %v974_v60, 0.0  ;;  %v983_v53 = vmax.f32 %v975_v63, 0.0  ;;  %v984_v46 = vmax.f32 %v976_v48, 0.0  ;;  %v985_v56 = vmax.f32 %v977_v28, 0.0 }
 0x5b6   :  { %v993_v54 = vpop.permute.xlu0 %992  ;;  %v986_v41 = vmax.f32 %v978_v51, 0.0  ;;  %v987_v62 = vmax.f32 %v979_v58, 0.0  ;;  %v988_v17 = vmax.f32 %v980_v61, 0.0 }
 0x5b7   :  { %v1012_v57 = vsel %vm1011_vm7, %v982_v52, 0.0  ;;  %v1013_v49 = vsel %vm1011_vm7, %v983_v53, 0.0  ;;  %v1015_v2 = vsel %vm1011_vm7, %v984_v46, 0.0  ;;  %v995_v4 = vsub.f32 %v912_v18, %v993_v54 }
 0x5b8   :  { %v1014_v1 = vadd.f32 %v1013_v49, %v1012_v57  ;;  %v996_v59 = vsub.f32 %v916_v35, %v993_v54  ;;  %v997_v5 = vsub.f32 %v920_v11, %v993_v54  ;;  %v998_v22 = vsub.f32 %v924_v23, %v993_v54 }
 0x5b9   :  { %v1017_v10 = vsel %vm1011_vm7, %v985_v56, 0.0  ;;  %v1003_v55 = vmax.f32 %v995_v4, 0.0  ;;  %v999_v15 = vsub.f32 %v928_v21, %v993_v54  ;;  %v1019_v19 = vsel %vm1011_vm7, %v986_v41, 0.0 }
 0x5ba   :  { %v1016_v20 = vadd.f32 %v1015_v2, %v1014_v1  ;;  %v1004_v13 = vmax.f32 %v996_v59, 0.0  ;;  %v1005_v8 = vmax.f32 %v997_v5, 0.0  ;;  %v1000_v35 = vsub.f32 %v2378_v47, %v993_v54 }
 0x5bb   :  { %v1030_v33 = vsel %vm1011_vm7, %v1003_v55, 0.0  ;;  %v1006_v11 = vmax.f32 %v998_v22, 0.0  ;;  %v989_v23 = vmax.f32 %v981_v7, 0.0  ;;  %v1021_v26 = vsel %vm1011_vm7, %v987_v62, 0.0 }
 0x5bc   :  { %v1018_v14 = vadd.f32 %v1017_v10, %v1016_v20  ;;  %v1031_v24 = vsel %vm1011_vm7, %v1004_v13, 0.0  ;;  %v1001_v32 = vsub.f32 %v2382_v16, %v993_v54  ;;  %v1007_v21 = vmax.f32 %v999_v15, 0.0 }
 0x5bd   :  { %v1032_v27 = vadd.f32 %v1031_v24, %v1030_v33  ;;  %v1033_v29 = vsel %vm1011_vm7, %v1005_v8, 0.0  ;;  %v1023_v30 = vsel %vm1011_vm7, %v988_v17, 0.0  ;;  %v1002_v34 = vsub.f32 %v2386_v39, %v993_v54 }
 0x5be   :  { %v1020_v18 = vadd.f32 %v1019_v19, %v1018_v14  ;;  %v1008_v47 = vmax.f32 %v1000_v35, 0.0  ;;  %v1035_v36 = vsel %vm1011_vm7, %v1006_v11, 0.0  ;;  %v1025_v37 = vsel %vm1011_vm7, %v989_v23, 0.0 }
 0x5bf   :  { %v1034_v50 = vadd.f32 %v1033_v29, %v1032_v27  ;;  %v1009_v45 = vmax.f32 %v1001_v32, 0.0  ;;  %v1037_v16 = vsel %vm1011_vm7, %v1007_v21, 0.0  ;;  %v1010_v43 = vmax.f32 %v1002_v34, 0.0 }
 0x5c0   :  { %v1022_v31 = vadd.f32 %v1021_v26, %v1020_v18  ;;  %v1039_v44 = vsel %vm1011_vm7, %v1008_v47, 0.0  ;;  %v1048_v46 = vstv %s1761_s18 }
 0x5c1   :  { %v1036_v38 = vadd.f32 %v1035_v36, %v1034_v50  ;;  %v1041_v63 = vsel %vm1011_vm7, %v1009_v45, 0.0  ;;  %v1043_v48 = vsel %vm1011_vm7, %v1010_v43, 0.0 }
 0x5c2   :  { %v1024_v25 = vadd.f32 %v1023_v30, %v1022_v31 }
 0x5c3   :  { %v1038_v42 = vadd.f32 %v1037_v16, %v1036_v38 }
 0x5c4   :  { %v1026_v40 = vadd.f32 %v1025_v37, %v1024_v25 }
 0x5c5   :  { %v1040_v60 = vadd.f32 %v1039_v44, %v1038_v42 }
 0x5c6   :  { %1027 = vadd.xlane.f32.xlu1 %v1026_v40 }
 0x5c7   :  { %v1042_v39 = vadd.f32 %v1041_v63, %v1040_v60 }
 0x5c9   :  { %v1044_v28 = vadd.f32 %v1043_v48, %v1042_v39 }
 0x5cb   :  { %1045 = vadd.xlane.f32.xlu0 %v1044_v28 }
 0x5f0   :  { %v966_v51 = vpop.xlane.xlu1 %965 }
 0x5f1   :  { %v968_v52 = vmul.f32 0.0009765625, %v966_v51 }
 0x5f3   :  { %v1060_v53 = vrot.slane %v968_v52, %v911_v12 }
 0x653   :  { %v1028_v54 = vpop.xlane.xlu1 %1027 }
 0x654   :  { %v1029_v58 = vmul.f32 0.0009765625, %v1028_v54 }
 0x656   :  { %v1049_v56 = vmul.f32 %v1048_v46, %v1029_v58  ;;  %v1066_v57 = vsub.f32 %v1029_v58, %v1060_v53 }
 0x658   :  { %1053 = vst.msk [vmem:[%s1051_s1] sm:$0xf] %vm1052_vm8, %v1049_v56  ;;  %v1067_v49 = vadd.f32 %v1066_v57, %v2024_v0  ;;  %v1046_v12 = vpop.xlane.xlu0 %1045 }
 0x659   :  { %v1047_v61 = vmul.f32 0.0009765625, %v1046_v12 }
 0x65a   :  { %v1068_v9 = vmul.f32 %v1067_v49, %v1048_v46 }
 0x65b   :  { %v1054_v41 = vmul.f32 %v1048_v46, %v1047_v61  ;;  %v1061_v1 = vsub.f32 %v1047_v61, %v1060_v53 }
 0x65c   :  { %1070 = vst.msk [vmem:[%s1069_s23] sm:$0xf] %vm1052_vm8, %v1068_v9 }
 0x65d   :  { %1056 = vst.msk [vmem:[%s1055_s25] sm:$0xf] %vm1052_vm8, %v1054_v41  ;;  %v1062_v2 = vadd.f32 %v1061_v1, %v2029_v3 }
 0x65f   :  { %v1063_v4 = vmul.f32 %v1062_v2, %v1048_v46 }
 0x661   :  { %1065 = vst.msk [vmem:[%s1064_s28] sm:$0xf] %vm1052_vm8, %v1063_v4 }
 0x662 PF:  { %v1076_v59 = vld [vmem:[#allocation10 + $0x5] ss:$8 sm:$0xf]  ;;  %s2435_s30 = sld [smem:[#allocation3 + $0x5]] }
 0x663   :  { %v1077_v5 = vld [vmem:[#allocation10 + $0x5] ss:$8 sm:$0xf0] }
 0x664   :  { %v1078_v7 = vor.u32 %v1077_v5, %v1076_v59  ;;  %v1072_v20 = vld [vmem:[#allocation9 + $0x5] ss:$8 sm:$0xf] }
 0x665   :  { %v1073_v62 = vld [vmem:[#allocation9 + $0x5] ss:$8 sm:$0xf0] }
 0x666   :  { %1817 = vrsqrt.f32 %v1078_v7  ;;  %vm1083_vm9 = vcmp.eq.f32.partialorder %v1078_v7, inf  ;;  %v1086_v10 = vand.u32 2147483648, %v1078_v7  ;;  %v1079_v55 = vmul.f32 -0.1436, %v1078_v7 }
 0x667   :  { %vm1085_vm10 = vcmp.eq.f32.partialorder %v1078_v7, 0.0  ;;  %v1074_v14 = vor.u32 %v1073_v62, %v1072_v20 }
 0x668   :  { %v1080_v17 = vadd.f32 %v1079_v55, %v2357_v6  ;;  %p1764_p8 = scmp.lt.s32.totalorder %s2435_s30, 0 }
 0x669   :  { %v1930_v11 = vmov (!%p1764_p8), 0   ;;  %s1765_s6 = sld [smem:[#allocation6 + $0x5]] (!%p1764_p8)  ;;  %v1104_v24 = vlaneseq (!%p1764_p8)  ;;  %vm1144_vm11 = vcmask (!%p1764_p8), 1040384   ;;  %vm1206_vm12 = vcmask (!%p1764_p8), 1043456   ;;  %s1767_s4 = sshll.u32 (!%p1764_p8), %s2435_s30, 2 }
 0x66a   :  { %1819 = vset.pattern.permute.xlu0 (!%p1764_p8), %v1930_v11  ;;  %s1766_s3 = sld [smem:[#allocation8 + $0x5]] (!%p1764_p8)  ;;  %s1246_s12 = scalar_lea.vmem (!%p1764_p8), %s2682_s7, %s1767_s4  ;;  %vm1247_vm13 = vcmask (!%p1764_p8), 3072  }
 0x66b   :  { %1166 = vperm.xlu0 (!%p1764_p8), %1819, %v2024_v0   ;;  %v2444_v23 = vshrl.u32 (!%p1764_p8), %v1104_v24, 7  ;;  %s1264_s14 = scalar_lea.vmem (!%p1764_p8), %s2685_s10, %s1767_s4  ;;  %s1250_s17 = scalar_lea.vmem (!%p1764_p8), %s2684_s9, %s1767_s4 }
 0x66c   :  { %s1259_s20 = scalar_lea.vmem (!%p1764_p8), %s2683_s8, %s1767_s4 }
 0x66d   :  { %v1106_v26 = vsub.s32 (!%p1764_p8), 0, %v2444_v23  ;;  %v1110_v27 = vsub.s32 (!%p1764_p8), 1, %v2444_v23  ;;  %v1114_v31 = vsub.s32 (!%p1764_p8), 2, %v2444_v23  ;;  %v1118_v29 = vsub.s32 (!%p1764_p8), 3, %v2444_v23 }
 0x66e   :  { %v1122_v34 = vsub.s32 (!%p1764_p8), 4, %v2444_v23  ;;  %v1126_v47 = vsub.s32 (!%p1764_p8), 5, %v2444_v23  ;;  %v1130_v42 = vsub.s32 (!%p1764_p8), 6, %v2444_v23  ;;  %v1134_v63 = vsub.s32 (!%p1764_p8), 7, %v2444_v23 }
 0x66f   :  { %1187 = vperm.xlu0 (!%p1764_p8), %1819, %v2029_v3   ;;  %v1100_v6 = vstv (!%p1764_p8), %s1765_s6 }
 0x670   :  { %v1818_v22 = vpop.eup %1817 }
 0x671   :  { %v1082_v13 = vmul.f32 %v1818_v22, %v1078_v7 }
 0x673   :  { %v1084_v15 = vsel %vm1083_vm9, %v1078_v7, %v1082_v13  ;;  %1096 = sbr.rel (%p1764_p8) target bundleno = 1946 (0x79a), region = 77 }
 0x674   :  { %v1087_v8 = vsel %vm1085_vm10, %v1086_v10, %v1084_v15 }
 0x675   :  { %v1088_v19 = vmul.f32 0.1213, %v1087_v8 }
 0x677   :  { %v1089_v33 = vmul.f32 %v1088_v19, %v1074_v14 }
 0x679   :  { %v2438_v18 = vadd.f32 %v1089_v33, %v1080_v17 }
 0x67b   :  { %v1098_v35 = vmul.f32 1.442695, %v2438_v18 }
 0x67d   :  { %1820 = vpow2.f32 %v1098_v35 }
 0x687   :  { %v1821_v32 = vpop.eup %1820 }
 0x688   :  { %v1101_v21 = vmul.f32 %v1821_v32, %v1100_v6 }
 0x68a   :  { %v1107_v30 = vrot.slane %v1101_v21, %v1106_v26  ;;  %v1111_v50 = vrot.slane %v1101_v21, %v1110_v27  ;;  %v1115_v25 = vrot.slane %v1101_v21, %v1114_v31  ;;  %v1119_v36 = vrot.slane %v1101_v21, %v1118_v29 }
 0x68b   :  { %v1123_v16 = vrot.slane %v1101_v21, %v1122_v34  ;;  %v2459_v60 = vrot.slane %v1101_v21, %v1126_v47  ;;  %v2463_v28 = vrot.slane %v1101_v21, %v1130_v42  ;;  %v2467_v53 = vrot.slane %v1101_v21, %v1134_v63 }
 0x68c   :  { %v1145_v37 = vsel %vm1144_vm11, %v1107_v30, 0.0  ;;  %v1146_v38 = vsel %vm1144_vm11, %v1111_v50, 0.0  ;;  %v1148_v40 = vsel %vm1144_vm11, %v1115_v25, 0.0  ;;  %v1150_v43 = vsel %vm1144_vm11, %v1119_v36, 0.0 }
 0x68d   :  { %v1147_v45 = vadd.f32 %v1146_v38, %v1145_v37  ;;  %v1152_v39 = vsel %vm1144_vm11, %v1123_v16, 0.0  ;;  %v1154_v51 = vsel %vm1144_vm11, %v2459_v60, 0.0  ;;  %v1156_v46 = vsel %vm1144_vm11, %v2463_v28, 0.0 }
 0x68e   :  { %v1158_v58 = vsel %vm1144_vm11, %v2467_v53, 0.0 }
 0x68f   :  { %v1149_v44 = vadd.f32 %v1148_v40, %v1147_v45 }
 0x691   :  { %v1151_v48 = vadd.f32 %v1150_v43, %v1149_v44 }
 0x693   :  { %v1153_v52 = vadd.f32 %v1152_v39, %v1151_v48 }
 0x695   :  { %v1155_v54 = vadd.f32 %v1154_v51, %v1153_v52 }
 0x697   :  { %v1157_v56 = vadd.f32 %v1156_v46, %v1155_v54 }
 0x699   :  { %v1159_v57 = vadd.f32 %v1158_v58, %v1157_v56 }
 0x69b   :  { %1160 = vadd.xlane.f32.xlu1 %v1159_v57 }
 0x6ea   :  { %v1167_v49 = vpop.permute.xlu0 %1166 }
 0x6eb   :  { %v1169_v9 = vsub.f32 %v1107_v30, %v1167_v49  ;;  %v1170_v12 = vsub.f32 %v1111_v50, %v1167_v49  ;;  %v1171_v61 = vsub.f32 %v1115_v25, %v1167_v49  ;;  %v1172_v41 = vsub.f32 %v1119_v36, %v1167_v49 }
 0x6ec   :  { %v1173_v1 = vsub.f32 %v1123_v16, %v1167_v49  ;;  %v1174_v7 = vsub.f32 %v2459_v60, %v1167_v49  ;;  %v1175_v10 = vsub.f32 %v2463_v28, %v1167_v49  ;;  %v1176_v19 = vsub.f32 %v2467_v53, %v1167_v49 }
 0x6ed   :  { %v1177_v2 = vmax.f32 %v1169_v9, 0.0  ;;  %v1178_v4 = vmax.f32 %v1170_v12, 0.0  ;;  %v1179_v59 = vmax.f32 %v1171_v61, 0.0  ;;  %v1180_v20 = vmax.f32 %v1172_v41, 0.0 }
 0x6ee   :  { %v1188_v5 = vpop.permute.xlu0 %1187  ;;  %v1181_v55 = vmax.f32 %v1173_v1, 0.0  ;;  %v1182_v11 = vmax.f32 %v1174_v7, 0.0  ;;  %v1183_v29 = vmax.f32 %v1175_v10, 0.0 }
 0x6ef   :  { %v1207_v22 = vsel %vm1206_vm12, %v1177_v2, 0.0  ;;  %v1208_v62 = vsel %vm1206_vm12, %v1178_v4, 0.0  ;;  %v1210_v14 = vsel %vm1206_vm12, %v1179_v59, 0.0  ;;  %v1190_v15 = vsub.f32 %v1107_v30, %v1188_v5 }
 0x6f0   :  { %v1209_v13 = vadd.f32 %v1208_v62, %v1207_v22  ;;  %v1191_v8 = vsub.f32 %v1111_v50, %v1188_v5  ;;  %v1192_v17 = vsub.f32 %v1115_v25, %v1188_v5  ;;  %v1193_v35 = vsub.f32 %v1119_v36, %v1188_v5 }
 0x6f1   :  { %v1212_v24 = vsel %vm1206_vm12, %v1180_v20, 0.0  ;;  %v1198_v6 = vmax.f32 %v1190_v15, 0.0  ;;  %v1194_v32 = vsub.f32 %v1123_v16, %v1188_v5  ;;  %v1214_v34 = vsel %vm1206_vm12, %v1181_v55, 0.0 }
 0x6f2   :  { %v1211_v33 = vadd.f32 %v1210_v14, %v1209_v13  ;;  %v1199_v27 = vmax.f32 %v1191_v8, 0.0  ;;  %v1200_v21 = vmax.f32 %v1192_v17, 0.0  ;;  %v1195_v50 = vsub.f32 %v2459_v60, %v1188_v5 }
 0x6f3   :  { %v1225_v47 = vsel %vm1206_vm12, %v1198_v6, 0.0  ;;  %v1201_v25 = vmax.f32 %v1193_v35, 0.0  ;;  %v1184_v36 = vmax.f32 %v1176_v19, 0.0  ;;  %v1216_v38 = vsel %vm1206_vm12, %v1182_v11, 0.0 }
 0x6f4   :  { %v1213_v31 = vadd.f32 %v1212_v24, %v1211_v33  ;;  %v1226_v37 = vsel %vm1206_vm12, %v1199_v27, 0.0  ;;  %v1196_v42 = vsub.f32 %v2463_v28, %v1188_v5  ;;  %v1202_v16 = vmax.f32 %v1194_v32, 0.0 }
 0x6f5   :  { %v1227_v40 = vadd.f32 %v1226_v37, %v1225_v47  ;;  %v1228_v43 = vsel %vm1206_vm12, %v1200_v21, 0.0  ;;  %v1218_v44 = vsel %vm1206_vm12, %v1183_v29, 0.0  ;;  %v1197_v48 = vsub.f32 %v2467_v53, %v1188_v5 }
 0x6f6   :  { %v1215_v30 = vadd.f32 %v1214_v34, %v1213_v31  ;;  %v1203_v60 = vmax.f32 %v1195_v50, 0.0  ;;  %v1230_v51 = vsel %vm1206_vm12, %v1201_v25, 0.0  ;;  %v1220_v52 = vsel %vm1206_vm12, %v1184_v36, 0.0 }
 0x6f7   :  { %v1229_v63 = vadd.f32 %v1228_v43, %v1227_v40  ;;  %v1204_v58 = vmax.f32 %v1196_v42, 0.0  ;;  %v1232_v28 = vsel %vm1206_vm12, %v1202_v16, 0.0  ;;  %v1205_v57 = vmax.f32 %v1197_v48, 0.0 }
 0x6f8   :  { %v1217_v45 = vadd.f32 %v1216_v38, %v1215_v30  ;;  %v1234_v49 = vsel %vm1206_vm12, %v1203_v60, 0.0  ;;  %v1243_v59 = vstv %s1766_s3 }
 0x6f9   :  { %v1231_v46 = vadd.f32 %v1230_v51, %v1229_v63  ;;  %v1236_v12 = vsel %vm1206_vm12, %v1204_v58, 0.0  ;;  %v1238_v61 = vsel %vm1206_vm12, %v1205_v57, 0.0 }
 0x6fa   :  { %v1219_v39 = vadd.f32 %v1218_v44, %v1217_v45 }
 0x6fb   :  { %v1233_v56 = vadd.f32 %v1232_v28, %v1231_v46 }
 0x6fc   :  { %v1221_v54 = vadd.f32 %v1220_v52, %v1219_v39 }
 0x6fd   :  { %v1235_v9 = vadd.f32 %v1234_v49, %v1233_v56 }
 0x6fe   :  { %1222 = vadd.xlane.f32.xlu1 %v1221_v54 }
 0x6ff   :  { %v1237_v53 = vadd.f32 %v1236_v12, %v1235_v9 }
 0x701   :  { %v1239_v41 = vadd.f32 %v1238_v61, %v1237_v53 }
 0x703   :  { %1240 = vadd.xlane.f32.xlu0 %v1239_v41 }
 0x728   :  { %v1161_v1 = vpop.xlane.xlu1 %1160 }
 0x729   :  { %v1163_v2 = vmul.f32 0.0009765625, %v1161_v1 }
 0x72b   :  { %v1255_v4 = vrot.slane %v1163_v2, %v1106_v26 }
 0x78b   :  { %v1223_v5 = vpop.xlane.xlu1 %1222 }
 0x78c   :  { %v1224_v7 = vmul.f32 0.0009765625, %v1223_v5 }
 0x78e   :  { %v1244_v20 = vmul.f32 %v1243_v59, %v1224_v7  ;;  %v1261_v22 = vsub.f32 %v1224_v7, %v1255_v4 }
 0x790   :  { %1248 = vst.msk [vmem:[%s1246_s12] sm:$0xf] %vm1247_vm13, %v1244_v20  ;;  %v1262_v62 = vadd.f32 %v1261_v22, %v2024_v0  ;;  %v1241_v26 = vpop.xlane.xlu0 %1240 }
 0x791   :  { %v1242_v10 = vmul.f32 0.0009765625, %v1241_v26 }
 0x792   :  { %v1263_v23 = vmul.f32 %v1262_v62, %v1243_v59 }
 0x793   :  { %v1249_v55 = vmul.f32 %v1243_v59, %v1242_v10  ;;  %v1256_v13 = vsub.f32 %v1242_v10, %v1255_v4 }
 0x794   :  { %1265 = vst.msk [vmem:[%s1264_s14] sm:$0xf] %vm1247_vm13, %v1263_v23 }
 0x795   :  { %1251 = vst.msk [vmem:[%s1250_s17] sm:$0xf] %vm1247_vm13, %v1249_v55  ;;  %v1257_v14 = vadd.f32 %v1256_v13, %v2029_v3 }
 0x797   :  { %v1258_v15 = vmul.f32 %v1257_v14, %v1243_v59 }
 0x799   :  { %1260 = vst.msk [vmem:[%s1259_s20] sm:$0xf] %vm1247_vm13, %v1258_v15 }
 0x79a PF:  { %v1271_v8 = vld [vmem:[#allocation10 + $0x6] ss:$8 sm:$0xf]  ;;  %s2516_s21 = sld [smem:[#allocation3 + $0x6]] }
 0x79b   :  { %v1272_v17 = vld [vmem:[#allocation10 + $0x6] ss:$8 sm:$0xf0] }
 0x79c   :  { %v1273_v19 = vor.u32 %v1272_v17, %v1271_v8  ;;  %v1267_v33 = vld [vmem:[#allocation9 + $0x6] ss:$8 sm:$0xf] }
 0x79d   :  { %v1268_v11 = vld [vmem:[#allocation9 + $0x6] ss:$8 sm:$0xf0] }
 0x79e   :  { %1822 = vrsqrt.f32 %v1273_v19  ;;  %vm1278_vm14 = vcmp.eq.f32.partialorder %v1273_v19, inf  ;;  %v1281_v24 = vand.u32 2147483648, %v1273_v19  ;;  %v1274_v6 = vmul.f32 -0.1436, %v1273_v19 }
 0x79f   :  { %vm1280_vm15 = vcmp.eq.f32.partialorder %v1273_v19, 0.0  ;;  %v1269_v31 = vor.u32 %v1268_v11, %v1267_v33 }
 0x7a0   :  { %v1275_v29 = vadd.f32 %v1274_v6, %v2438_v18  ;;  %p1769_p9 = scmp.lt.s32.totalorder %s2516_s21, 0 }
 0x7a1   :  { %v1931_v25 = vmov (!%p1769_p9), 0   ;;  %s1770_s1 = sld [smem:[#allocation6 + $0x6]] (!%p1769_p9)  ;;  %v1299_v37 = vlaneseq (!%p1769_p9)  ;;  %vm1339_vm0 = vcmask (!%p1769_p9), 1040384   ;;  %vm1401_vm1 = vcmask (!%p1769_p9), 1043456   ;;  %s1772_s22 = sshll.u32 (!%p1769_p9), %s2516_s21, 2 }
 0x7a2   :  { %1824 = vset.pattern.permute.xlu0 (!%p1769_p9), %v1931_v25  ;;  %s1771_s0 = sld [smem:[#allocation8 + $0x6]] (!%p1769_p9)  ;;  %s1441_s5 = scalar_lea.vmem (!%p1769_p9), %s2682_s7, %s1772_s22  ;;  %vm1442_vm2 = vcmask (!%p1769_p9), 3072  }
 0x7a3   :  { %1361 = vperm.xlu0 (!%p1769_p9), %1824, %v2024_v0   ;;  %v2525_v36 = vshrl.u32 (!%p1769_p9), %v1299_v37, 7  ;;  %s1459_s27 = scalar_lea.vmem (!%p1769_p9), %s2685_s10, %s1772_s22  ;;  %s1445_s6 = scalar_lea.vmem (!%p1769_p9), %s2684_s9, %s1772_s22 }
 0x7a4   :  { %s1454_s29 = scalar_lea.vmem (!%p1769_p9), %s2683_s8, %s1772_s22 }
 0x7a5   :  { %v1301_v38 = vsub.s32 (!%p1769_p9), 0, %v2525_v36  ;;  %v1305_v40 = vsub.s32 (!%p1769_p9), 1, %v2525_v36  ;;  %v1309_v45 = vsub.s32 (!%p1769_p9), 2, %v2525_v36  ;;  %v1313_v43 = vsub.s32 (!%p1769_p9), 3, %v2525_v36 }
 0x7a6   :  { %v1317_v48 = vsub.s32 (!%p1769_p9), 4, %v2525_v36  ;;  %v1321_v60 = vsub.s32 (!%p1769_p9), 5, %v2525_v36  ;;  %v1325_v56 = vsub.s32 (!%p1769_p9), 6, %v2525_v36  ;;  %v1329_v12 = vsub.s32 (!%p1769_p9), 7, %v2525_v36 }
 0x7a7   :  { %1382 = vperm.xlu0 (!%p1769_p9), %1824, %v2029_v3   ;;  %v1295_v18 = vstv (!%p1769_p9), %s1770_s1 }
 0x7a8   :  { %v1823_v35 = vpop.eup %1822 }
 0x7a9   :  { %v1277_v27 = vmul.f32 %v1823_v35, %v1273_v19 }
 0x7ab   :  { %v1279_v32 = vsel %vm1278_vm14, %v1273_v19, %v1277_v27  ;;  %1291 = sbr.rel (%p1769_p9) target bundleno = 2258 (0x8d2), region = 81 }
 0x7ac   :  { %v1282_v21 = vsel %vm1280_vm15, %v1281_v24, %v1279_v32 }
 0x7ad   :  { %v1283_v34 = vmul.f32 0.1213, %v1282_v21 }
 0x7af   :  { %v1284_v47 = vmul.f32 %v1283_v34, %v1269_v31 }
 0x7b1   :  { %v2519_v30 = vadd.f32 %v1284_v47, %v1275_v29 }
 0x7b3   :  { %v1293_v50 = vmul.f32 1.442695, %v2519_v30 }
 0x7b5   :  { %1825 = vpow2.f32 %v1293_v50 }
 0x7bf   :  { %v1826_v42 = vpop.eup %1825 }
 0x7c0   :  { %v1296_v16 = vmul.f32 %v1826_v42, %v1295_v18 }
 0x7c2   :  { %v1302_v44 = vrot.slane %v1296_v16, %v1301_v38  ;;  %v1306_v63 = vrot.slane %v1296_v16, %v1305_v40  ;;  %v1310_v39 = vrot.slane %v1296_v16, %v1309_v45  ;;  %v1314_v51 = vrot.slane %v1296_v16, %v1313_v43 }
 0x7c3   :  { %v1318_v28 = vrot.slane %v1296_v16, %v1317_v48  ;;  %v2540_v9 = vrot.slane %v1296_v16, %v1321_v60  ;;  %v2544_v41 = vrot.slane %v1296_v16, %v1325_v56  ;;  %v2548_v4 = vrot.slane %v1296_v16, %v1329_v12 }
 0x7c4   :  { %v1340_v52 = vsel %vm1339_vm0, %v1302_v44, 0.0  ;;  %v1341_v46 = vsel %vm1339_vm0, %v1306_v63, 0.0  ;;  %v1343_v54 = vsel %vm1339_vm0, %v1310_v39, 0.0  ;;  %v1345_v57 = vsel %vm1339_vm0, %v1314_v51, 0.0 }
 0x7c5   :  { %v1342_v58 = vadd.f32 %v1341_v46, %v1340_v52  ;;  %v1347_v53 = vsel %vm1339_vm0, %v1318_v28, 0.0  ;;  %v1349_v1 = vsel %vm1339_vm0, %v2540_v9, 0.0  ;;  %v1351_v59 = vsel %vm1339_vm0, %v2544_v41, 0.0 }
 0x7c6   :  { %v1353_v7 = vsel %vm1339_vm0, %v2548_v4, 0.0 }
 0x7c7   :  { %v1344_v49 = vadd.f32 %v1343_v54, %v1342_v58 }
 0x7c9   :  { %v1346_v61 = vadd.f32 %v1345_v57, %v1344_v49 }
 0x7cb   :  { %v1348_v2 = vadd.f32 %v1347_v53, %v1346_v61 }
 0x7cd   :  { %v1350_v5 = vadd.f32 %v1349_v1, %v1348_v2 }
 0x7cf   :  { %v1352_v20 = vadd.f32 %v1351_v59, %v1350_v5 }
 0x7d1   :  { %v1354_v22 = vadd.f32 %v1353_v7, %v1352_v20 }
 0x7d3   :  { %1355 = vadd.xlane.f32.xlu1 %v1354_v22 }
 0x822   :  { %v1362_v62 = vpop.permute.xlu0 %1361 }
 0x823   :  { %v1364_v23 = vsub.f32 %v1302_v44, %v1362_v62  ;;  %v1365_v26 = vsub.f32 %v1306_v63, %v1362_v62  ;;  %v1366_v10 = vsub.f32 %v1310_v39, %v1362_v62  ;;  %v1367_v55 = vsub.f32 %v1314_v51, %v1362_v62 }
 0x824   :  { %v1368_v13 = vsub.f32 %v1318_v28, %v1362_v62  ;;  %v1369_v19 = vsub.f32 %v2540_v9, %v1362_v62  ;;  %v1370_v24 = vsub.f32 %v2544_v41, %v1362_v62  ;;  %v1371_v34 = vsub.f32 %v2548_v4, %v1362_v62 }
 0x825   :  { %v1372_v14 = vmax.f32 %v1364_v23, 0.0  ;;  %v1373_v15 = vmax.f32 %v1365_v26, 0.0  ;;  %v1374_v8 = vmax.f32 %v1366_v10, 0.0  ;;  %v1375_v33 = vmax.f32 %v1367_v55, 0.0 }
 0x826   :  { %v1383_v17 = vpop.permute.xlu0 %1382  ;;  %v1376_v6 = vmax.f32 %v1368_v13, 0.0  ;;  %v1377_v25 = vmax.f32 %v1369_v19, 0.0  ;;  %v1378_v43 = vmax.f32 %v1370_v24, 0.0 }
 0x827   :  { %v1402_v35 = vsel %vm1401_vm1, %v1372_v14, 0.0  ;;  %v1403_v11 = vsel %vm1401_vm1, %v1373_v15, 0.0  ;;  %v1405_v31 = vsel %vm1401_vm1, %v1374_v8, 0.0  ;;  %v1385_v32 = vsub.f32 %v1302_v44, %v1383_v17 }
 0x828   :  { %v1404_v27 = vadd.f32 %v1403_v11, %v1402_v35  ;;  %v1386_v21 = vsub.f32 %v1306_v63, %v1383_v17  ;;  %v1387_v29 = vsub.f32 %v1310_v39, %v1383_v17  ;;  %v1388_v50 = vsub.f32 %v1314_v51, %v1383_v17 }
 0x829   :  { %v1407_v37 = vsel %vm1401_vm1, %v1375_v33, 0.0  ;;  %v1393_v18 = vmax.f32 %v1385_v32, 0.0  ;;  %v1389_v42 = vsub.f32 %v1318_v28, %v1383_v17  ;;  %v1409_v48 = vsel %vm1401_vm1, %v1376_v6, 0.0 }
 0x82a   :  { %v1406_v47 = vadd.f32 %v1405_v31, %v1404_v27  ;;  %v1394_v40 = vmax.f32 %v1386_v21, 0.0  ;;  %v1395_v16 = vmax.f32 %v1387_v29, 0.0  ;;  %v1390_v63 = vsub.f32 %v2540_v9, %v1383_v17 }
 0x82b   :  { %v1420_v60 = vsel %vm1401_vm1, %v1393_v18, 0.0  ;;  %v1396_v39 = vmax.f32 %v1388_v50, 0.0  ;;  %v1379_v51 = vmax.f32 %v1371_v34, 0.0  ;;  %v1411_v46 = vsel %vm1401_vm1, %v1377_v25, 0.0 }
 0x82c   :  { %v1408_v45 = vadd.f32 %v1407_v37, %v1406_v47  ;;  %v1421_v52 = vsel %vm1401_vm1, %v1394_v40, 0.0  ;;  %v1391_v56 = vsub.f32 %v2544_v41, %v1383_v17  ;;  %v1397_v28 = vmax.f32 %v1389_v42, 0.0 }
 0x82d   :  { %v1422_v54 = vadd.f32 %v1421_v52, %v1420_v60  ;;  %v1423_v57 = vsel %vm1401_vm1, %v1395_v16, 0.0  ;;  %v1413_v49 = vsel %vm1401_vm1, %v1378_v43, 0.0  ;;  %v1392_v61 = vsub.f32 %v2548_v4, %v1383_v17 }
 0x82e   :  { %v1410_v44 = vadd.f32 %v1409_v48, %v1408_v45  ;;  %v1398_v9 = vmax.f32 %v1390_v63, 0.0  ;;  %v1425_v1 = vsel %vm1401_vm1, %v1396_v39, 0.0  ;;  %v1415_v2 = vsel %vm1401_vm1, %v1379_v51, 0.0 }
 0x82f   :  { %v1424_v12 = vadd.f32 %v1423_v57, %v1422_v54  ;;  %v1399_v7 = vmax.f32 %v1391_v56, 0.0  ;;  %v1427_v41 = vsel %vm1401_vm1, %v1397_v28, 0.0  ;;  %v1400_v22 = vmax.f32 %v1392_v61, 0.0 }
 0x830   :  { %v1412_v58 = vadd.f32 %v1411_v46, %v1410_v44  ;;  %v1429_v62 = vsel %vm1401_vm1, %v1398_v9, 0.0  ;;  %v1438_v8 = vstv %s1771_s0 }
 0x831   :  { %v1426_v59 = vadd.f32 %v1425_v1, %v1424_v12  ;;  %v1431_v26 = vsel %vm1401_vm1, %v1399_v7, 0.0  ;;  %v1433_v10 = vsel %vm1401_vm1, %v1400_v22, 0.0 }
 0x832   :  { %v1414_v53 = vadd.f32 %v1413_v49, %v1412_v58 }
 0x833   :  { %v1428_v20 = vadd.f32 %v1427_v41, %v1426_v59 }
 0x834   :  { %v1416_v5 = vadd.f32 %v1415_v2, %v1414_v53 }
 0x835   :  { %v1430_v23 = vadd.f32 %v1429_v62, %v1428_v20 }
 0x836   :  { %1417 = vadd.xlane.f32.xlu1 %v1416_v5 }
 0x837   :  { %v1432_v4 = vadd.f32 %v1431_v26, %v1430_v23 }
 0x839   :  { %v1434_v55 = vadd.f32 %v1433_v10, %v1432_v4 }
 0x83b   :  { %1435 = vadd.xlane.f32.xlu0 %v1434_v55 }
 0x860   :  { %v1356_v13 = vpop.xlane.xlu1 %1355 }
 0x861   :  { %v1358_v14 = vmul.f32 0.0009765625, %v1356_v13 }
 0x863   :  { %v1450_v15 = vrot.slane %v1358_v14, %v1301_v38 }
 0x8c3   :  { %v1418_v17 = vpop.xlane.xlu1 %1417 }
 0x8c4   :  { %v1419_v19 = vmul.f32 0.0009765625, %v1418_v17 }
 0x8c6   :  { %v1439_v33 = vmul.f32 %v1438_v8, %v1419_v19  ;;  %v1456_v35 = vsub.f32 %v1419_v19, %v1450_v15 }
 0x8c8   :  { %1443 = vst.msk [vmem:[%s1441_s5] sm:$0xf] %vm1442_vm2, %v1439_v33  ;;  %v1457_v11 = vadd.f32 %v1456_v35, %v2024_v0  ;;  %v1436_v38 = vpop.xlane.xlu0 %1435 }
 0x8c9   :  { %v1437_v24 = vmul.f32 0.0009765625, %v1436_v38 }
 0x8ca   :  { %v1458_v36 = vmul.f32 %v1457_v11, %v1438_v8 }
 0x8cb   :  { %v1444_v6 = vmul.f32 %v1438_v8, %v1437_v24  ;;  %v1451_v27 = vsub.f32 %v1437_v24, %v1450_v15 }
 0x8cc   :  { %1460 = vst.msk [vmem:[%s1459_s27] sm:$0xf] %vm1442_vm2, %v1458_v36 }
 0x8cd   :  { %1446 = vst.msk [vmem:[%s1445_s6] sm:$0xf] %vm1442_vm2, %v1444_v6  ;;  %v1452_v31 = vadd.f32 %v1451_v27, %v2029_v3 }
 0x8cf   :  { %v1453_v32 = vmul.f32 %v1452_v31, %v1438_v8 }
 0x8d1   :  { %1455 = vst.msk [vmem:[%s1454_s29] sm:$0xf] %vm1442_vm2, %v1453_v32 }
 0x8d2 PF:  { %v1466_v21 = vld [vmem:[#allocation10 + $0x7] ss:$8 sm:$0xf]  ;;  %s2597_s11 = sld [smem:[#allocation3 + $0x7]] }
 0x8d3   :  { %v1467_v29 = vld [vmem:[#allocation10 + $0x7] ss:$8 sm:$0xf0] }
 0x8d4   :  { %v1468_v34 = vor.u32 %v1467_v29, %v1466_v21  ;;  %v1462_v47 = vld [vmem:[#allocation9 + $0x7] ss:$8 sm:$0xf] }
 0x8d5   :  { %v1463_v25 = vld [vmem:[#allocation9 + $0x7] ss:$8 sm:$0xf0] }
 0x8d6   :  { %1827 = vrsqrt.f32 %v1468_v34  ;;  %vm1473_vm3 = vcmp.eq.f32.partialorder %v1468_v34, inf  ;;  %v1476_v37 = vand.u32 2147483648, %v1468_v34  ;;  %v1469_v18 = vmul.f32 -0.1436, %v1468_v34 }
 0x8d7   :  { %vm1475_vm4 = vcmp.eq.f32.partialorder %v1468_v34, 0.0  ;;  %v1464_v45 = vor.u32 %v1463_v25, %v1462_v47 }
 0x8d8   :  { %v1470_v43 = vadd.f32 %v1469_v18, %v2519_v30  ;;  %p1774_p10 = scmp.lt.s32.totalorder %s2597_s11, 0 }
 0x8d9   :  { %v1932_v39 = vmov (!%p1774_p10), 0   ;;  %s1775_s12 = sld [smem:[#allocation6 + $0x7]] (!%p1774_p10)  ;;  %v1494_v52 = vlaneseq (!%p1774_p10)  ;;  %vm1534_vm5 = vcmask (!%p1774_p10), 1040384   ;;  %vm1596_vm6 = vcmask (!%p1774_p10), 1043456   ;;  %s1777_s13 = sshll.u32 (!%p1774_p10), %s2597_s11, 2 }
 0x8da   :  { %1829 = vset.pattern.permute.xlu0 (!%p1774_p10), %v1932_v39  ;;  %s1776_s2 = sld [smem:[#allocation8 + $0x7]] (!%p1774_p10)  ;;  %s1636_s16 = scalar_lea.vmem (!%p1774_p10), %s2682_s7, %s1777_s13  ;;  %vm1637_vm7 = vcmask (!%p1774_p10), 3072  }
 0x8db   :  { %1556 = vperm.xlu0 (!%p1774_p10), %1829, %v2024_v0   ;;  %v2603_v51 = vshrl.u32 (!%p1774_p10), %v1494_v52, 7  ;;  %s1654_s19 = scalar_lea.vmem (!%p1774_p10), %s2685_s10, %s1777_s13  ;;  %s1640_s7 = scalar_lea.vmem (!%p1774_p10), %s2684_s9, %s1777_s13 }
 0x8dc   :  { %s1649_s22 = scalar_lea.vmem (!%p1774_p10), %s2683_s8, %s1777_s13 }
 0x8dd   :  { %v1496_v30 = vsub.s32 (!%p1774_p10), 0, %v2603_v51  ;;  %v1500_v54 = vsub.s32 (!%p1774_p10), 1, %v2603_v51  ;;  %v1504_v58 = vsub.s32 (!%p1774_p10), 2, %v2603_v51  ;;  %v1508_v57 = vsub.s32 (!%p1774_p10), 3, %v2603_v51 }
 0x8de   :  { %v1512_v61 = vsub.s32 (!%p1774_p10), 4, %v2603_v51  ;;  %v1516_v9 = vsub.s32 (!%p1774_p10), 5, %v2603_v51  ;;  %v1520_v20 = vsub.s32 (!%p1774_p10), 6, %v2603_v51  ;;  %v1524_v26 = vsub.s32 (!%p1774_p10), 7, %v2603_v51 }
 0x8df   :  { %1577 = vperm.xlu0 (!%p1774_p10), %1829, %v2029_v3   ;;  %v1490_v46 = vstv (!%p1774_p10), %s1775_s12 }
 0x8e0   :  { %v1828_v50 = vpop.eup %1827 }
 0x8e1   :  { %v1472_v40 = vmul.f32 %v1828_v50, %v1468_v34 }
 0x8e3   :  { %v1474_v42 = vsel %vm1473_vm3, %v1468_v34, %v1472_v40  ;;  %1486 = sbr.rel (%p1774_p10) target bundleno = 2570 (0xa0a), region = 85 }
 0x8e4   :  { %v1477_v16 = vsel %vm1475_vm4, %v1476_v37, %v1474_v42 }
 0x8e5   :  { %v1478_v48 = vmul.f32 0.1213, %v1477_v16 }
 0x8e7   :  { %v1479_v60 = vmul.f32 %v1478_v48, %v1464_v45 }
 0x8e9   :  { %v1480_v44 = vadd.f32 %v1479_v60, %v1470_v43 }
 0x8eb   :  { %v1488_v63 = vmul.f32 1.442695, %v1480_v44 }
 0x8ed   :  { %1830 = vpow2.f32 %v1488_v63 }
 0x8f7   :  { %v1831_v56 = vpop.eup %1830 }
 0x8f8   :  { %v1491_v28 = vmul.f32 %v1831_v56, %v1490_v46 }
 0x8fa   :  { %v1497_v49 = vrot.slane %v1491_v28, %v1496_v30  ;;  %v1501_v12 = vrot.slane %v1491_v28, %v1500_v54  ;;  %v1505_v53 = vrot.slane %v1491_v28, %v1504_v58  ;;  %v1509_v1 = vrot.slane %v1491_v28, %v1508_v57 }
 0x8fb   :  { %v1513_v41 = vrot.slane %v1491_v28, %v1512_v61  ;;  %v2618_v23 = vrot.slane %v1491_v28, %v1516_v9  ;;  %v2622_v55 = vrot.slane %v1491_v28, %v1520_v20  ;;  %v2626_v15 = vrot.slane %v1491_v28, %v1524_v26 }
 0x8fc   :  { %v1535_v2 = vsel %vm1534_vm5, %v1497_v49, 0.0  ;;  %v1536_v59 = vsel %vm1534_vm5, %v1501_v12, 0.0  ;;  %v1538_v5 = vsel %vm1534_vm5, %v1505_v53, 0.0  ;;  %v1540_v22 = vsel %vm1534_vm5, %v1509_v1, 0.0 }
 0x8fd   :  { %v1537_v7 = vadd.f32 %v1536_v59, %v1535_v2  ;;  %v1542_v4 = vsel %vm1534_vm5, %v1513_v41, 0.0  ;;  %v1544_v13 = vsel %vm1534_vm5, %v2618_v23, 0.0  ;;  %v1546_v8 = vsel %vm1534_vm5, %v2622_v55, 0.0 }
 0x8fe   :  { %v1548_v19 = vsel %vm1534_vm5, %v2626_v15, 0.0 }
 0x8ff   :  { %v1539_v62 = vadd.f32 %v1538_v5, %v1537_v7 }
 0x901   :  { %v1541_v10 = vadd.f32 %v1540_v22, %v1539_v62 }
 0x903   :  { %v1543_v14 = vadd.f32 %v1542_v4, %v1541_v10 }
 0x905   :  { %v1545_v17 = vadd.f32 %v1544_v13, %v1543_v14 }
 0x907   :  { %v1547_v33 = vadd.f32 %v1546_v8, %v1545_v17 }
 0x909   :  { %v1549_v35 = vadd.f32 %v1548_v19, %v1547_v33 }
 0x90b   :  { %1550 = vadd.xlane.f32.xlu1 %v1549_v35 }
 0x95a   :  { %v1557_v11 = vpop.permute.xlu0 %1556 }
 0x95b   :  { %v1559_v36 = vsub.f32 %v1497_v49, %v1557_v11  ;;  %v1560_v38 = vsub.f32 %v1501_v12, %v1557_v11  ;;  %v1561_v24 = vsub.f32 %v1505_v53, %v1557_v11  ;;  %v1562_v6 = vsub.f32 %v1509_v1, %v1557_v11 }
 0x95c   :  { %v1563_v27 = vsub.f32 %v1513_v41, %v1557_v11  ;;  %v1564_v34 = vsub.f32 %v2618_v23, %v1557_v11  ;;  %v1565_v37 = vsub.f32 %v2622_v55, %v1557_v11  ;;  %v1566_v48 = vsub.f32 %v2626_v15, %v1557_v11 }
 0x95d   :  { %v1567_v31 = vmax.f32 %v1559_v36, 0.0  ;;  %v1568_v32 = vmax.f32 %v1560_v38, 0.0  ;;  %v1569_v21 = vmax.f32 %v1561_v24, 0.0  ;;  %v1570_v47 = vmax.f32 %v1562_v6, 0.0 }
 0x95e   :  { %v1578_v29 = vpop.permute.xlu0 %1577  ;;  %v1571_v18 = vmax.f32 %v1563_v27, 0.0  ;;  %v1572_v63 = vmax.f32 %v1564_v34, 0.0  ;;  %v1573_v28 = vmax.f32 %v1565_v37, 0.0 }
 0x95f   :  { %v1597_v50 = vsel %vm1596_vm6, %v1567_v31, 0.0  ;;  %v1598_v25 = vsel %vm1596_vm6, %v1568_v32, 0.0  ;;  %v1600_v45 = vsel %vm1596_vm6, %v1569_v21, 0.0  ;;  %v1580_v42 = vsub.f32 %v1497_v49, %v1578_v29 }
 0x960   :  { %v1599_v40 = vadd.f32 %v1598_v25, %v1597_v50  ;;  %v1581_v16 = vsub.f32 %v1501_v12, %v1578_v29  ;;  %v1582_v43 = vsub.f32 %v1505_v53, %v1578_v29  ;;  %v1583_v44 = vsub.f32 %v1509_v1, %v1578_v29 }
 0x961   :  { %v1602_v39 = vsel %vm1596_vm6, %v1570_v47, 0.0  ;;  %v1588_v52 = vmax.f32 %v1580_v42, 0.0  ;;  %v1584_v58 = vsub.f32 %v1513_v41, %v1578_v29  ;;  %v1604_v57 = vsel %vm1596_vm6, %v1571_v18, 0.0 }
 0x962   :  { %v1601_v60 = vadd.f32 %v1600_v45, %v1599_v40  ;;  %v1589_v46 = vmax.f32 %v1581_v16, 0.0  ;;  %v1590_v56 = vmax.f32 %v1582_v43, 0.0  ;;  %v1585_v12 = vsub.f32 %v2618_v23, %v1578_v29 }
 0x963   :  { %v1615_v61 = vsel %vm1596_vm6, %v1588_v52, 0.0  ;;  %v1591_v53 = vmax.f32 %v1583_v44, 0.0  ;;  %v1574_v1 = vmax.f32 %v1566_v48, 0.0  ;;  %v1606_v2 = vsel %vm1596_vm6, %v1572_v63, 0.0 }
 0x964   :  { %v1603_v54 = vadd.f32 %v1602_v39, %v1601_v60  ;;  %v1616_v9 = vsel %vm1596_vm6, %v1589_v46, 0.0  ;;  %v1586_v7 = vsub.f32 %v2622_v55, %v1578_v29  ;;  %v1592_v41 = vmax.f32 %v1584_v58, 0.0 }
 0x965   :  { %v1617_v59 = vadd.f32 %v1616_v9, %v1615_v61  ;;  %v1618_v20 = vsel %vm1596_vm6, %v1590_v56, 0.0  ;;  %v1608_v22 = vsel %vm1596_vm6, %v1573_v28, 0.0  ;;  %v1587_v4 = vsub.f32 %v2626_v15, %v1578_v29 }
 0x966   :  { %v1605_v49 = vadd.f32 %v1604_v57, %v1603_v54  ;;  %v1593_v23 = vmax.f32 %v1585_v12, 0.0  ;;  %v1620_v10 = vsel %vm1596_vm6, %v1591_v53, 0.0  ;;  %v1610_v13 = vsel %vm1596_vm6, %v1574_v1, 0.0 }
 0x967   :  { %v1619_v62 = vadd.f32 %v1618_v20, %v1617_v59  ;;  %v1594_v17 = vmax.f32 %v1586_v7, 0.0  ;;  %v1622_v55 = vsel %vm1596_vm6, %v1592_v41, 0.0  ;;  %v1595_v33 = vmax.f32 %v1587_v4, 0.0 }
 0x968   :  { %v1607_v5 = vadd.f32 %v1606_v2, %v1605_v49  ;;  %v1624_v35 = vsel %vm1596_vm6, %v1593_v23, 0.0  ;;  %v1633_v32 = vstv %s1776_s2 }
 0x969   :  { %v1621_v14 = vadd.f32 %v1620_v10, %v1619_v62  ;;  %v1626_v36 = vsel %vm1596_vm6, %v1594_v17, 0.0  ;;  %v1628_v38 = vsel %vm1596_vm6, %v1595_v33, 0.0 }
 0x96a   :  { %v1609_v26 = vadd.f32 %v1608_v22, %v1607_v5 }
 0x96b   :  { %v1623_v19 = vadd.f32 %v1622_v55, %v1621_v14 }
 0x96c   :  { %v1611_v8 = vadd.f32 %v1610_v13, %v1609_v26 }
 0x96d   :  { %v1625_v11 = vadd.f32 %v1624_v35, %v1623_v19 }
 0x96e   :  { %1612 = vadd.xlane.f32.xlu1 %v1611_v8 }
 0x96f   :  { %v1627_v15 = vadd.f32 %v1626_v36, %v1625_v11 }
 0x971   :  { %v1629_v24 = vadd.f32 %v1628_v38, %v1627_v15 }
 0x973   :  { %1630 = vadd.xlane.f32.xlu0 %v1629_v24 }
 0x998   :  { %v1551_v6 = vpop.xlane.xlu1 %1550 }
 0x999   :  { %v1553_v27 = vmul.f32 0.0009765625, %v1551_v6 }
 0x99b   :  { %v1645_v31 = vrot.slane %v1553_v27, %v1496_v30 }
 0x9fb   :  { %v1613_v21 = vpop.xlane.xlu1 %1612 }
 0x9fc   :  { %v1614_v29 = vmul.f32 0.0009765625, %v1613_v21 }
 0x9fe   :  { %v1634_v34 = vmul.f32 %v1633_v32, %v1614_v29  ;;  %v1651_v47 = vsub.f32 %v1614_v29, %v1645_v31 }
 0xa00   :  { %1638 = vst.msk [vmem:[%s1636_s16] sm:$0xf] %vm1637_vm7, %v1634_v34  ;;  %v1652_v50 = vadd.f32 %v1651_v47, %v2024_v0  ;;  %v1631_v30 = vpop.xlane.xlu0 %1630 }
 0xa01   :  { %v1632_v25 = vmul.f32 0.0009765625, %v1631_v30 }
 0xa02   :  { %v1653_v51 = vmul.f32 %v1652_v50, %v1633_v32 }
 0xa03   :  { %v1639_v37 = vmul.f32 %v1633_v32, %v1632_v25  ;;  %v1646_v18 = vsub.f32 %v1632_v25, %v1645_v31 }
 0xa04   :  { %1655 = vst.msk [vmem:[%s1654_s19] sm:$0xf] %vm1637_vm7, %v1653_v51 }
 0xa05   :  { %1641 = vst.msk [vmem:[%s1640_s7] sm:$0xf] %vm1637_vm7, %v1639_v37  ;;  %v1647_v40 = vadd.f32 %v1646_v18, %v2029_v3 }
 0xa07   :  { %v1648_v0 = vmul.f32 %v1647_v40, %v1633_v32 }
 0xa09   :  { %1650 = vst.msk [vmem:[%s1649_s22] sm:$0xf] %vm1637_vm7, %v1648_v0 }
 0xa0a PF:  { %1673 = vsyncpa [#allocation4], 1 }
 0xa0b   :  { %1674 = vsyncpa [#allocation11], 1 }
 0xa0c   :  { %1675 = vsyncpa [#allocation5], 1 }
 0xa0d   :  { %1676 = vsyncpa [#allocation7], 1 }

</bundles_post_ra>
